<compile_context>
chip_gen: v7x
topology: tpu7x:2x2x1
jax: 0.10.0
libtpu: 0.0.40
codegen_flags: <defaults>
</compile_context>

<pallas_src>
import jax
import jax.numpy as jnp
from jax.experimental import pallas as pl
from jax.experimental.pallas import tpu as pltpu

NEG_SLOPE = 0.01                 # nn.LeakyReLU() default
BN_EPS = 1e-5                    # nn.BatchNorm2d default
LANE = 128                       # TPU lane width: pad channel dims to this
# Per-grid-step VMEM footprint of these kernels is ~1 MiB, so the default
# scoped limit is plenty; kept explicit (and conservative for v7x's 64 MiB).
VMEM_LIMIT = 32 * 1024 * 1024


def _round_up(x, m):
    return (x + m - 1) // m * m


# ----------------------------- Pallas kernels -----------------------------

def _make_conv3_branches_kernel(Ho, Wo, Cin, Cp):
    """3x3 valid conv + folded BN shift + LeakyReLU, three fused branches.

    x_ref:     (H, W, Cin)      bf16   raw NHWC image (one batch element)
    w_ref:     (9, Cin, 3*Cp)   bf16   per-tap weights, branches side by side
    shift_ref: (1, 3*Cp)        f32    folded BN shift (zero in padded lanes)
    o*_ref:    (Ho, Wo, Cp)     bf16   lane-padded branch outputs
    """
    def kernel(x_ref, w_ref, shift_ref, o1_ref, o2_ref, o3_ref):
        shift = shift_ref[...]
        w_taps = [w_ref[t] for t in range(9)]            # (Cin, 3*Cp) each

        def row(i, carry):
            acc = jnp.zeros((Wo, 3 * Cp), jnp.float32)
            for di in range(3):
                for dj in range(3):
                    patch = x_ref[i + di, dj:dj + Wo, :]  # (Wo, Cin) bf16
                    acc = acc + jnp.dot(patch, w_taps[di * 3 + dj],
                                        preferred_element_type=jnp.float32)
            y = acc + shift
            y = jnp.where(y >= 0, y, NEG_SLOPE * y).astype(o1_ref.dtype)
            o1_ref[i] = y[:, 0 * Cp:1 * Cp]
            o2_ref[i] = y[:, 1 * Cp:2 * Cp]
            o3_ref[i] = y[:, 2 * Cp:3 * Cp]
            return carry

        jax.lax.fori_loop(0, Ho, row, 0)
    return kernel


def _make_conv3_residual_kernel(Ho, Wo, Cp, Coutp, Cout):
    """3x3 valid conv + folded BN shift + LeakyReLU + residual add.

    a_ref:     (Ho+2, Wo+2, Cp) bf16   spatially padded attention output
    w_ref:     (9, Cp, Coutp)   bf16   per-tap weights (columns zero-padded)
    shift_ref: (1, Coutp)       f32
    res_ref:   (Ho, Wo, Cout)   f32    residual (original input x)
    o_ref:     (Ho, Wo, Cout)   f32
    """
    def kernel(a_ref, w_ref, shift_ref, res_ref, o_ref):
        shift = shift_ref[...]
        w_taps = [w_ref[t] for t in range(9)]             # (Cp, Coutp) each

        def row(i, carry):
            acc = jnp.zeros((Wo, Coutp), jnp.float32)
            for di in range(3):
                for dj in range(3):
                    patch = a_ref[i + di, dj:dj + Wo, :]   # (Wo, Cp) bf16
                    acc = acc + jnp.dot(patch, w_taps[di * 3 + dj],
                                        preferred_element_type=jnp.float32)
            y = acc + shift
            y = jnp.where(y >= 0, y, NEG_SLOPE * y)
            o_ref[i] = y[:, :Cout] + res_ref[i]
            return carry

        jax.lax.fori_loop(0, Ho, row, 0)
    return kernel


def _attention_kernel(x1_ref, x2_ref, x3_ref, o_ref, acc_ref):
    # Grid = (B, n_key_tiles); key/contraction axis last ("arbitrary").
    #   x1: (L, C)   queries, fully resident every step           (bf16)
    #   x2: (TJ, C)  key tile   -> scores (L, TJ) = x1 @ x2^T
    #   x3: (TJ, C)  value tile
    # torch softmax(dim=1) normalizes over the output-row axis (axis 0 of the
    # score slab), which is fully present in every tile -> exact per-tile
    # softmax; accumulate p @ x3 over key tiles.  Zero-padded key/value rows
    # contribute exactly zero to the output.
    j = pl.program_id(1)

    @pl.when(j == 0)
    def _():
        acc_ref[...] = jnp.zeros_like(acc_ref)

    x1 = x1_ref[...]
    x2 = x2_ref[...]
    x3 = x3_ref[...]
    s = jax.lax.dot_general(x1, x2, (((1,), (1,)), ((), ())),
                            preferred_element_type=jnp.float32)   # (L, TJ)
    m = jnp.max(s, axis=0, keepdims=True)
    e = jnp.exp(s - m)
    denom = jnp.sum(e, axis=0, keepdims=True)
    p = e * pl.reciprocal(denom, approx=True)        # EUP slot, ~free
    acc_ref[...] += jnp.dot(p.astype(x3.dtype), x3,
                            preferred_element_type=jnp.float32)

    @pl.when(j == pl.num_programs(1) - 1)
    def _():
        o_ref[...] = acc_ref[...].astype(o_ref.dtype)


# ----------------------------- wrappers -----------------------------

def conv_branches(x_bf, w_bf, shift):
    """Fused conv1/2/3 + BN + LeakyReLU.  Returns three (B, Ho, Wo, Cp) bf16."""
    B, H, W, Cin = x_bf.shape
    Ho, Wo = H - 2, W - 2
    Cp3 = w_bf.shape[-1]
    Cp = Cp3 // 3
    kernel = _make_conv3_branches_kernel(Ho, Wo, Cin, Cp)
    out_sds = jax.ShapeDtypeStruct((B, Ho, Wo, Cp), jnp.bfloat16)
    out_spec = pl.BlockSpec((None, Ho, Wo, Cp), lambda b: (b, 0, 0, 0))
    return pl.pallas_call(
        kernel,
        out_shape=(out_sds, out_sds, out_sds),
        grid=(B,),
        in_specs=[
            pl.BlockSpec((None, H, W, Cin), lambda b: (b, 0, 0, 0)),
            pl.BlockSpec((9, Cin, Cp3), lambda b: (0, 0, 0)),   # resident
            pl.BlockSpec((1, Cp3), lambda b: (0, 0)),           # resident
        ],
        out_specs=(out_spec, out_spec, out_spec),
        compiler_params=pltpu.CompilerParams(
            dimension_semantics=("parallel",),
            vmem_limit_bytes=VMEM_LIMIT),
    )(x_bf, w_bf, shift)


def conv_residual(a_bf, w_bf, shift, res):
    """conv4: 3x3 valid conv + BN + LeakyReLU + residual.  Returns f32 NHWC."""
    B, Hp, Wp, Cp = a_bf.shape
    Ho, Wo = Hp - 2, Wp - 2
    Coutp = w_bf.shape[-1]
    Cout = res.shape[-1]
    kernel = _make_conv3_residual_kernel(Ho, Wo, Cp, Coutp, Cout)
    return pl.pallas_call(
        kernel,
        out_shape=jax.ShapeDtypeStruct((B, Ho, Wo, Cout), jnp.float32),
        grid=(B,),
        in_specs=[
            pl.BlockSpec((None, Hp, Wp, Cp), lambda b: (b, 0, 0, 0)),
            pl.BlockSpec((9, Cp, Coutp), lambda b: (0, 0, 0)),  # resident
            pl.BlockSpec((1, Coutp), lambda b: (0, 0)),         # resident
            pl.BlockSpec((None, Ho, Wo, Cout), lambda b: (b, 0, 0, 0)),
        ],
        out_specs=pl.BlockSpec((None, Ho, Wo, Cout), lambda b: (b, 0, 0, 0)),
        compiler_params=pltpu.CompilerParams(
            dimension_semantics=("parallel",),
            vmem_limit_bytes=VMEM_LIMIT),
    )(a_bf, w_bf, shift, res)


def nonlocal_attention(x1t, x2t, x3t, *, tj=256):
    """x1t/x2t/x3t: (B, L, C) bf16 (C lane-padded).  Returns (B, L, C) bf16
    equal to softmax(x1t @ x2t^T, axis=0-per-column) @ x3t, matching
    torch matmul(x1, x2).softmax(1) @ x3."""
    B, L, C = x1t.shape
    if L <= tj:
        tj = L                         # single key tile; equals full dim
        Lp = L
    else:
        Lp = _round_up(L, tj)          # tj (default 256) is a multiple of 16
        pad = Lp - L
        if pad:
            # zero-padded value rows contribute exactly zero to the output
            x2t = jnp.pad(x2t, ((0, 0), (0, pad), (0, 0)))
            x3t = jnp.pad(x3t, ((0, 0), (0, pad), (0, 0)))
    nj = Lp // tj

    return pl.pallas_call(
        _attention_kernel,
        out_shape=jax.ShapeDtypeStruct((B, L, C), jnp.bfloat16),
        grid=(B, nj),
        in_specs=[
            pl.BlockSpec((None, L, C), lambda b, j: (b, 0, 0)),
            pl.BlockSpec((None, tj, C), lambda b, j: (b, j, 0)),
            pl.BlockSpec((None, tj, C), lambda b, j: (b, j, 0)),
        ],
        out_specs=pl.BlockSpec((None, L, C), lambda b, j: (b, 0, 0)),
        scratch_shapes=[pltpu.VMEM((L, C), jnp.float32)],
        compiler_params=pltpu.CompilerParams(
            dimension_semantics=("parallel", "arbitrary"),
            vmem_limit_bytes=VMEM_LIMIT),
    )(x1t, x2t, x3t)


# ----------------------------- glue -----------------------------

def _conv_w_to_mat(w):
    # torch Conv2d weight (out_c, in_c, kh, kw) -> (kh*kw*in_c, out_c),
    # rows ordered (tap-major, channel-minor) to match the kernel's tap order.
    out_c, in_c, kh, kw = w.shape
    return jnp.transpose(w, (2, 3, 1, 0)).reshape(kh * kw * in_c, out_c)


def _fold_bn(w_mat, conv_bias, gamma, beta, mean, var):
    # Eval-mode BN: fold scale into the weight columns, bias/mean/beta into a
    # per-channel shift -> kernel epilogue is shift + LeakyReLU only.
    scale = gamma / jnp.sqrt(var + BN_EPS)
    w_eff = w_mat * scale[None, :]
    shift = (conv_bias - mean) * scale + beta
    return w_eff, shift


def non_local_block(x_nchw, params, *, tj=256):
    """Pallas implementation of NonLocalBlock.forward (NCHW in/out)."""
    B, Cin, H, W = x_nchw.shape
    n_c = params["w1"].shape[0]
    Cp = _round_up(n_c, LANE)                  # lane-padded branch channels
    x_nhwc = jnp.transpose(x_nchw, (0, 2, 3, 1))
    Ho, Wo = H - 2, W - 2
    L = Ho * Wo

    # --- conv1/2/3 + BN + LeakyReLU fused into one kernel, 3 padded branches
    w_cols, s_cols = [], []
    for i in (1, 2, 3):
        w_eff, shift = _fold_bn(_conv_w_to_mat(params[f"w{i}"]),
                                params[f"b{i}"], params[f"g{i}"],
                                params[f"be{i}"], params[f"m{i}"],
                                params[f"v{i}"])
        w_cols.append(jnp.pad(w_eff, ((0, 0), (0, Cp - n_c))))
        s_cols.append(jnp.pad(shift, (0, Cp - n_c)))
    w_fused = jnp.concatenate(w_cols, axis=1)                  # (9*Cin, 3*Cp)
    w_fused = w_fused.reshape(9, Cin, 3 * Cp).astype(jnp.bfloat16)
    shift_fused = jnp.concatenate(s_cols).reshape(1, 3 * Cp)   # f32

    x_bf = x_nhwc.astype(jnp.bfloat16)
    x1b, x2b, x3b = conv_branches(x_bf, w_fused, shift_fused)  # (B,Ho,Wo,Cp)

    # (B, Ho, Wo, Cp) -> (B, L, Cp): contiguous reshape, no layout change.
    x1t = x1b.reshape(B, L, Cp)        # == x1.view(...).permute(0, 2, 1)
    x2t = x2b.reshape(B, L, Cp)        # keys, consumed un-transposed
    x3t = x3b.reshape(B, L, Cp)

    att = nonlocal_attention(x1t, x2t, x3t, tj=tj)             # (B, L, Cp) bf16
    att = att.reshape(B, Ho, Wo, Cp)

    # --- conv4: ConvTranspose2d(n_c, in_c, 3) == pad(2) + flipped-kernel conv
    att_pad = jnp.pad(att, ((0, 0), (2, 2), (2, 2), (0, 0)))   # (B, H+2, W+2, Cp)

    w4_k = jnp.transpose(jnp.flip(params["w4"], axis=(2, 3)),
                         (2, 3, 0, 1))                         # (3, 3, n_c, Cin)
    w4_k = jnp.pad(w4_k, ((0, 0), (0, 0), (0, Cp - n_c), (0, 0)))
    w4_mat = w4_k.reshape(9 * Cp, Cin)
    w4_eff, shift4 = _fold_bn(w4_mat, params["b4"], params["g4"],
                              params["be4"], params["m4"], params["v4"])
    Coutp = _round_up(Cin, LANE)
    w4_eff = jnp.pad(w4_eff, ((0, 0), (0, Coutp - Cin)))
    w4_eff = w4_eff.reshape(9, Cp, Coutp).astype(jnp.bfloat16)
    shift4 = jnp.pad(shift4, (0, Coutp - Cin)).reshape(1, Coutp)

    out_nhwc = conv_residual(att_pad, w4_eff, shift4, x_nhwc)  # (B, H, W, Cin)
    return jnp.transpose(out_nhwc, (0, 3, 1, 2))               # back to NCHW


# ----------------------------- parameters -----------------------------

def init_params(key, in_c, n_c):
    # Deterministic synthetic parameters (eval-mode BN running stats).
    ks = list(jax.random.split(key, 24))
    p = {}

    def take():
        return ks.pop(0)

    for i in (1, 2, 3):
        p[f"w{i}"] = 0.1 * jax.random.normal(take(), (n_c, in_c, 3, 3), jnp.float32)
        p[f"b{i}"] = 0.1 * jax.random.normal(take(), (n_c,), jnp.float32)
        p[f"g{i}"] = 1.0 + 0.1 * jax.random.normal(take(), (n_c,), jnp.float32)
        p[f"be{i}"] = 0.1 * jax.random.normal(take(), (n_c,), jnp.float32)
        p[f"m{i}"] = 0.1 * jax.random.normal(take(), (n_c,), jnp.float32)
        p[f"v{i}"] = 1.0 + 0.1 * jax.random.uniform(take(), (n_c,), dtype=jnp.float32)
    # ConvTranspose2d weight: (in_channels=n_c, out_channels=in_c, 3, 3)
    p["w4"] = 0.1 * jax.random.normal(take(), (n_c, in_c, 3, 3), jnp.float32)
    p["b4"] = 0.1 * jax.random.normal(take(), (in_c,), jnp.float32)
    p["g4"] = 1.0 + 0.1 * jax.random.normal(take(), (in_c,), jnp.float32)
    p["be4"] = 0.1 * jax.random.normal(take(), (in_c,), jnp.float32)
    p["m4"] = 0.1 * jax.random.normal(take(), (in_c,), jnp.float32)
    p["v4"] = 1.0 + 0.1 * jax.random.uniform(take(), (in_c,), dtype=jnp.float32)
    return p


# ----------------------------- pure-JAX reference -----------------------------

def reference(x, p):
    def convbn(x, w, b, g, be, m, v):
        y = jax.lax.conv_general_dilated(
            x, w, (1, 1), "VALID",
            dimension_numbers=("NCHW", "OIHW", "NCHW"))
        y = y + b[None, :, None, None]
        y = ((y - m[None, :, None, None])
             / jnp.sqrt(v[None, :, None, None] + BN_EPS)
             * g[None, :, None, None] + be[None, :, None, None])
        return jnp.where(y >= 0, y, NEG_SLOPE * y)

    B, Cin, H, W = x.shape
    n_c = p["w1"].shape[0]
    x1 = convbn(x, p["w1"], p["b1"], p["g1"], p["be1"], p["m1"], p["v1"])
    x2 = convbn(x, p["w2"], p["b2"], p["g2"], p["be2"], p["m2"], p["v2"])
    x3 = convbn(x, p["w3"], p["b3"], p["g3"], p["be3"], p["m3"], p["v3"])
    s1, s2 = x1.shape[2], x1.shape[3]
    L = s1 * s2
    x1r = jnp.transpose(x1.reshape(B, n_c, L), (0, 2, 1))
    x2r = x2.reshape(B, n_c, L)
    x3r = jnp.transpose(x3.reshape(B, n_c, L), (0, 2, 1))
    a = jnp.einsum("blc,bcm->blm", x1r, x2r)
    a = jax.nn.softmax(a, axis=1)
    y = jnp.einsum("blm,bmc->blc", a, x3r)
    att = jnp.transpose(y.reshape(B, s1, s2, n_c), (0, 3, 1, 2))

    att_pad = jnp.pad(att, ((0, 0), (0, 0), (2, 2), (2, 2)))
    wconv = jnp.transpose(jnp.flip(p["w4"], axis=(2, 3)), (1, 0, 2, 3))
    y4 = jax.lax.conv_general_dilated(
        att_pad, wconv, (1, 1), "VALID",
        dimension_numbers=("NCHW", "OIHW", "NCHW"))
    y4 = y4 + p["b4"][None, :, None, None]
    y4 = ((y4 - p["m4"][None, :, None, None])
          / jnp.sqrt(p["v4"][None, :, None, None] + BN_EPS)
          * p["g4"][None, :, None, None] + p["be4"][None, :, None, None])
    y4 = jnp.where(y4 >= 0, y4, NEG_SLOPE * y4)
    return x + y4


# ----------------------------- main -----------------------------

if __name__ == "__main__":
    in_c, n_c = 4, 8
    B, H, W = 2, 16, 16          # 3x3 valid conv -> s1 = s2 = 14, L = 196

    key = jax.random.PRNGKey(0)
    kx, kp = jax.random.split(key)
    x = jax.random.normal(kx, (B, in_c, H, W), jnp.float32)
    params = init_params(kp, in_c, n_c)

    fwd = jax.jit(non_local_block)
    out = jax.block_until_ready(fwd(x, params))
    ref = jax.block_until_ready(reference(x, params))

    err = float(jnp.max(jnp.abs(out - ref)))
    assert out.shape == (B, in_c, H, W), out.shape
    # bf16 MXU operands + approx reciprocal -> loosened tolerance vs f32 ref.
    assert err < 1e-1, f"max abs err {err}"
    print("KERNEL_OK")
</pallas_src>

<mosaic_0001>
module attributes {stable_mosaic.version = 11 : i64} {
  func.func @kernel(%arg0: i32, %arg1: memref<1x16x16x4xbf16, #tpu.memory_space<vmem>>, %arg2: memref<9x4x384xbf16, #tpu.memory_space<vmem>>, %arg3: memref<1x384xf32, #tpu.memory_space<vmem>>, %arg4: memref<1x14x14x128xbf16, #tpu.memory_space<vmem>>, %arg5: memref<1x14x14x128xbf16, #tpu.memory_space<vmem>>, %arg6: memref<1x14x14x128xbf16, #tpu.memory_space<vmem>>) attributes {dimension_semantics = [#tpu.dimension_semantics<parallel>], iteration_bounds = array<i64: 2>, scalar_prefetch = 0 : i64, scratch_operands = 0 : i64, tpu.core_type = #tpu.core_type<tc>, window_params = [{transform_indices = @transform_0, window_bounds = array<i64: 1, 16, 16, 4>}, {pipeline_mode = #tpu.pipeline_mode<synchronous>, transform_indices = @transform_1, window_bounds = array<i64: 9, 4, 384>}, {pipeline_mode = #tpu.pipeline_mode<synchronous>, transform_indices = @transform_2, window_bounds = array<i64: 1, 384>}, {transform_indices = @transform_3, window_bounds = array<i64: 1, 14, 14, 128>}, {transform_indices = @transform_4, window_bounds = array<i64: 1, 14, 14, 128>}, {transform_indices = @transform_5, window_bounds = array<i64: 1, 14, 14, 128>}]} {
    %c0 = arith.constant 0 : index
    %c0_0 = arith.constant 0 : index
    %0 = vector.load %arg3[%c0, %c0_0] : memref<1x384xf32, #tpu.memory_space<vmem>>, vector<1x384xf32>
    %c0_1 = arith.constant 0 : index
    %c0_2 = arith.constant 0 : index
    %c0_3 = arith.constant 0 : index
    %1 = vector.load %arg2[%c0_1, %c0_2, %c0_3] : memref<9x4x384xbf16, #tpu.memory_space<vmem>>, vector<1x4x384xbf16>
    %2 = vector.shape_cast %1 : vector<1x4x384xbf16> to vector<4x384xbf16>
    %c1 = arith.constant 1 : index
    %c0_4 = arith.constant 0 : index
    %c0_5 = arith.constant 0 : index
    %3 = vector.load %arg2[%c1, %c0_4, %c0_5] : memref<9x4x384xbf16, #tpu.memory_space<vmem>>, vector<1x4x384xbf16>
    %4 = vector.shape_cast %3 : vector<1x4x384xbf16> to vector<4x384xbf16>
    %c2 = arith.constant 2 : index
    %c0_6 = arith.constant 0 : index
    %c0_7 = arith.constant 0 : index
    %5 = vector.load %arg2[%c2, %c0_6, %c0_7] : memref<9x4x384xbf16, #tpu.memory_space<vmem>>, vector<1x4x384xbf16>
    %6 = vector.shape_cast %5 : vector<1x4x384xbf16> to vector<4x384xbf16>
    %c3 = arith.constant 3 : index
    %c0_8 = arith.constant 0 : index
    %c0_9 = arith.constant 0 : index
    %7 = vector.load %arg2[%c3, %c0_8, %c0_9] : memref<9x4x384xbf16, #tpu.memory_space<vmem>>, vector<1x4x384xbf16>
    %8 = vector.shape_cast %7 : vector<1x4x384xbf16> to vector<4x384xbf16>
    %c4 = arith.constant 4 : index
    %c0_10 = arith.constant 0 : index
    %c0_11 = arith.constant 0 : index
    %9 = vector.load %arg2[%c4, %c0_10, %c0_11] : memref<9x4x384xbf16, #tpu.memory_space<vmem>>, vector<1x4x384xbf16>
    %10 = vector.shape_cast %9 : vector<1x4x384xbf16> to vector<4x384xbf16>
    %c5 = arith.constant 5 : index
    %c0_12 = arith.constant 0 : index
    %c0_13 = arith.constant 0 : index
    %11 = vector.load %arg2[%c5, %c0_12, %c0_13] : memref<9x4x384xbf16, #tpu.memory_space<vmem>>, vector<1x4x384xbf16>
    %12 = vector.shape_cast %11 : vector<1x4x384xbf16> to vector<4x384xbf16>
    %c6 = arith.constant 6 : index
    %c0_14 = arith.constant 0 : index
    %c0_15 = arith.constant 0 : index
    %13 = vector.load %arg2[%c6, %c0_14, %c0_15] : memref<9x4x384xbf16, #tpu.memory_space<vmem>>, vector<1x4x384xbf16>
    %14 = vector.shape_cast %13 : vector<1x4x384xbf16> to vector<4x384xbf16>
    %c7 = arith.constant 7 : index
    %c0_16 = arith.constant 0 : index
    %c0_17 = arith.constant 0 : index
    %15 = vector.load %arg2[%c7, %c0_16, %c0_17] : memref<9x4x384xbf16, #tpu.memory_space<vmem>>, vector<1x4x384xbf16>
    %16 = vector.shape_cast %15 : vector<1x4x384xbf16> to vector<4x384xbf16>
    %c8 = arith.constant 8 : index
    %c0_18 = arith.constant 0 : index
    %c0_19 = arith.constant 0 : index
    %17 = vector.load %arg2[%c8, %c0_18, %c0_19] : memref<9x4x384xbf16, #tpu.memory_space<vmem>>, vector<1x4x384xbf16>
    %18 = vector.shape_cast %17 : vector<1x4x384xbf16> to vector<4x384xbf16>
    %c0_i32 = arith.constant 0 : i32
    %c14_i32 = arith.constant 14 : i32
    %19 = arith.addi %c0_i32, %c14_i32 : i32
    %c1_i32 = arith.constant 1 : i32
    scf.for %arg7 = %c0_i32 to %19 step %c1_i32  : i32 {
      %cst = arith.constant 0.000000e+00 : f32
      %20 = vector.broadcast %cst : f32 to vector<14x384xf32>
      %c0_i32_21 = arith.constant 0 : i32
      %21 = arith.addi %arg7, %c0_i32_21 : i32
      %c0_22 = arith.constant 0 : index
      %22 = arith.index_cast %21 : i32 to index
      %c0_23 = arith.constant 0 : index
      %c0_24 = arith.constant 0 : index
      %23 = vector.load %arg1[%c0_22, %22, %c0_23, %c0_24] : memref<1x16x16x4xbf16, #tpu.memory_space<vmem>>, vector<1x1x14x4xbf16>
      %24 = vector.shape_cast %23 : vector<1x1x14x4xbf16> to vector<14x4xbf16>
      %cst_25 = arith.constant dense<0.000000e+00> : vector<14x384xf32>
      %25 = tpu.matmul %24, %2, %cst_25 {dimension_numbers = #tpu.dot_dimension_numbers<[1], [0], [0], [1], [0, 0, 1, 1], [], []>} : vector<14x4xbf16>, vector<4x384xbf16>, vector<14x384xf32> -> vector<14x384xf32>
      %26 = arith.addf %20, %25 : vector<14x384xf32>
      %c0_i32_26 = arith.constant 0 : i32
      %27 = arith.addi %arg7, %c0_i32_26 : i32
      %c0_27 = arith.constant 0 : index
      %28 = arith.index_cast %27 : i32 to index
      %c1_28 = arith.constant 1 : index
      %c0_29 = arith.constant 0 : index
      %29 = vector.load %arg1[%c0_27, %28, %c1_28, %c0_29] : memref<1x16x16x4xbf16, #tpu.memory_space<vmem>>, vector<1x1x14x4xbf16>
      %30 = vector.shape_cast %29 : vector<1x1x14x4xbf16> to vector<14x4xbf16>
      %cst_30 = arith.constant dense<0.000000e+00> : vector<14x384xf32>
      %31 = tpu.matmul %30, %4, %cst_30 {dimension_numbers = #tpu.dot_dimension_numbers<[1], [0], [0], [1], [0, 0, 1, 1], [], []>} : vector<14x4xbf16>, vector<4x384xbf16>, vector<14x384xf32> -> vector<14x384xf32>
      %32 = arith.addf %26, %31 : vector<14x384xf32>
      %c0_i32_31 = arith.constant 0 : i32
      %33 = arith.addi %arg7, %c0_i32_31 : i32
      %c0_32 = arith.constant 0 : index
      %34 = arith.index_cast %33 : i32 to index
      %c2_33 = arith.constant 2 : index
      %c0_34 = arith.constant 0 : index
      %35 = vector.load %arg1[%c0_32, %34, %c2_33, %c0_34] : memref<1x16x16x4xbf16, #tpu.memory_space<vmem>>, vector<1x1x14x4xbf16>
      %36 = vector.shape_cast %35 : vector<1x1x14x4xbf16> to vector<14x4xbf16>
      %cst_35 = arith.constant dense<0.000000e+00> : vector<14x384xf32>
      %37 = tpu.matmul %36, %6, %cst_35 {dimension_numbers = #tpu.dot_dimension_numbers<[1], [0], [0], [1], [0, 0, 1, 1], [], []>} : vector<14x4xbf16>, vector<4x384xbf16>, vector<14x384xf32> -> vector<14x384xf32>
      %38 = arith.addf %32, %37 : vector<14x384xf32>
      %c1_i32_36 = arith.constant 1 : i32
      %39 = arith.addi %arg7, %c1_i32_36 : i32
      %c0_37 = arith.constant 0 : index
      %40 = arith.index_cast %39 : i32 to index
      %c0_38 = arith.constant 0 : index
      %c0_39 = arith.constant 0 : index
      %41 = vector.load %arg1[%c0_37, %40, %c0_38, %c0_39] : memref<1x16x16x4xbf16, #tpu.memory_space<vmem>>, vector<1x1x14x4xbf16>
      %42 = vector.shape_cast %41 : vector<1x1x14x4xbf16> to vector<14x4xbf16>
      %cst_40 = arith.constant dense<0.000000e+00> : vector<14x384xf32>
      %43 = tpu.matmul %42, %8, %cst_40 {dimension_numbers = #tpu.dot_dimension_numbers<[1], [0], [0], [1], [0, 0, 1, 1], [], []>} : vector<14x4xbf16>, vector<4x384xbf16>, vector<14x384xf32> -> vector<14x384xf32>
      %44 = arith.addf %38, %43 : vector<14x384xf32>
      %c1_i32_41 = arith.constant 1 : i32
      %45 = arith.addi %arg7, %c1_i32_41 : i32
      %c0_42 = arith.constant 0 : index
      %46 = arith.index_cast %45 : i32 to index
      %c1_43 = arith.constant 1 : index
      %c0_44 = arith.constant 0 : index
      %47 = vector.load %arg1[%c0_42, %46, %c1_43, %c0_44] : memref<1x16x16x4xbf16, #tpu.memory_space<vmem>>, vector<1x1x14x4xbf16>
      %48 = vector.shape_cast %47 : vector<1x1x14x4xbf16> to vector<14x4xbf16>
      %cst_45 = arith.constant dense<0.000000e+00> : vector<14x384xf32>
      %49 = tpu.matmul %48, %10, %cst_45 {dimension_numbers = #tpu.dot_dimension_numbers<[1], [0], [0], [1], [0, 0, 1, 1], [], []>} : vector<14x4xbf16>, vector<4x384xbf16>, vector<14x384xf32> -> vector<14x384xf32>
      %50 = arith.addf %44, %49 : vector<14x384xf32>
      %c1_i32_46 = arith.constant 1 : i32
      %51 = arith.addi %arg7, %c1_i32_46 : i32
      %c0_47 = arith.constant 0 : index
      %52 = arith.index_cast %51 : i32 to index
      %c2_48 = arith.constant 2 : index
      %c0_49 = arith.constant 0 : index
      %53 = vector.load %arg1[%c0_47, %52, %c2_48, %c0_49] : memref<1x16x16x4xbf16, #tpu.memory_space<vmem>>, vector<1x1x14x4xbf16>
      %54 = vector.shape_cast %53 : vector<1x1x14x4xbf16> to vector<14x4xbf16>
      %cst_50 = arith.constant dense<0.000000e+00> : vector<14x384xf32>
      %55 = tpu.matmul %54, %12, %cst_50 {dimension_numbers = #tpu.dot_dimension_numbers<[1], [0], [0], [1], [0, 0, 1, 1], [], []>} : vector<14x4xbf16>, vector<4x384xbf16>, vector<14x384xf32> -> vector<14x384xf32>
      %56 = arith.addf %50, %55 : vector<14x384xf32>
      %c2_i32 = arith.constant 2 : i32
      %57 = arith.addi %arg7, %c2_i32 : i32
      %c0_51 = arith.constant 0 : index
      %58 = arith.index_cast %57 : i32 to index
      %c0_52 = arith.constant 0 : index
      %c0_53 = arith.constant 0 : index
      %59 = vector.load %arg1[%c0_51, %58, %c0_52, %c0_53] : memref<1x16x16x4xbf16, #tpu.memory_space<vmem>>, vector<1x1x14x4xbf16>
      %60 = vector.shape_cast %59 : vector<1x1x14x4xbf16> to vector<14x4xbf16>
      %cst_54 = arith.constant dense<0.000000e+00> : vector<14x384xf32>
      %61 = tpu.matmul %60, %14, %cst_54 {dimension_numbers = #tpu.dot_dimension_numbers<[1], [0], [0], [1], [0, 0, 1, 1], [], []>} : vector<14x4xbf16>, vector<4x384xbf16>, vector<14x384xf32> -> vector<14x384xf32>
      %62 = arith.addf %56, %61 : vector<14x384xf32>
      %c2_i32_55 = arith.constant 2 : i32
      %63 = arith.addi %arg7, %c2_i32_55 : i32
      %c0_56 = arith.constant 0 : index
      %64 = arith.index_cast %63 : i32 to index
      %c1_57 = arith.constant 1 : index
      %c0_58 = arith.constant 0 : index
      %65 = vector.load %arg1[%c0_56, %64, %c1_57, %c0_58] : memref<1x16x16x4xbf16, #tpu.memory_space<vmem>>, vector<1x1x14x4xbf16>
      %66 = vector.shape_cast %65 : vector<1x1x14x4xbf16> to vector<14x4xbf16>
      %cst_59 = arith.constant dense<0.000000e+00> : vector<14x384xf32>
      %67 = tpu.matmul %66, %16, %cst_59 {dimension_numbers = #tpu.dot_dimension_numbers<[1], [0], [0], [1], [0, 0, 1, 1], [], []>} : vector<14x4xbf16>, vector<4x384xbf16>, vector<14x384xf32> -> vector<14x384xf32>
      %68 = arith.addf %62, %67 : vector<14x384xf32>
      %c2_i32_60 = arith.constant 2 : i32
      %69 = arith.addi %arg7, %c2_i32_60 : i32
      %c0_61 = arith.constant 0 : index
      %70 = arith.index_cast %69 : i32 to index
      %c2_62 = arith.constant 2 : index
      %c0_63 = arith.constant 0 : index
      %71 = vector.load %arg1[%c0_61, %70, %c2_62, %c0_63] : memref<1x16x16x4xbf16, #tpu.memory_space<vmem>>, vector<1x1x14x4xbf16>
      %72 = vector.shape_cast %71 : vector<1x1x14x4xbf16> to vector<14x4xbf16>
      %cst_64 = arith.constant dense<0.000000e+00> : vector<14x384xf32>
      %73 = tpu.matmul %72, %18, %cst_64 {dimension_numbers = #tpu.dot_dimension_numbers<[1], [0], [0], [1], [0, 0, 1, 1], [], []>} : vector<14x4xbf16>, vector<4x384xbf16>, vector<14x384xf32> -> vector<14x384xf32>
      %74 = arith.addf %68, %73 : vector<14x384xf32>
      %75 = vector.broadcast %0 : vector<1x384xf32> to vector<14x384xf32>
      %76 = arith.addf %74, %75 : vector<14x384xf32>
      %cst_65 = arith.constant 0.000000e+00 : f32
      %77 = vector.broadcast %cst_65 : f32 to vector<14x384xf32>
      %78 = arith.cmpf oge, %76, %77 : vector<14x384xf32>
      %cst_66 = arith.constant 0.00999999977 : f32
      %79 = vector.broadcast %cst_66 : f32 to vector<14x384xf32>
      %80 = arith.mulf %79, %76 : vector<14x384xf32>
      %81 = arith.select %78, %76, %80 : vector<14x384xi1>, vector<14x384xf32>
      %82 = arith.truncf %81 : vector<14x384xf32> to vector<14x384xbf16>
      %83 = vector.extract_strided_slice %82 {offsets = [0, 0], sizes = [14, 128], strides = [1, 1]} : vector<14x384xbf16> to vector<14x128xbf16>
      %c0_67 = arith.constant 0 : index
      %84 = arith.index_cast %arg7 : i32 to index
      %c0_68 = arith.constant 0 : index
      %c0_69 = arith.constant 0 : index
      %85 = vector.load %arg4[%c0_67, %84, %c0_68, %c0_69] : memref<1x14x14x128xbf16, #tpu.memory_space<vmem>>, vector<1x1x14x128xbf16>
      %86 = vector.shape_cast %85 : vector<1x1x14x128xbf16> to vector<14x128xbf16>
      %87 = vector.shape_cast %83 : vector<14x128xbf16> to vector<1x1x14x128xbf16>
      tpu.vector_store %arg4[%c0_67, %84, %c0_68, %c0_69], %87 {strides = array<i32>} : memref<1x14x14x128xbf16, #tpu.memory_space<vmem>>, vector<1x1x14x128xbf16>,
      %88 = vector.extract_strided_slice %82 {offsets = [0, 128], sizes = [14, 128], strides = [1, 1]} : vector<14x384xbf16> to vector<14x128xbf16>
      %c0_70 = arith.constant 0 : index
      %89 = arith.index_cast %arg7 : i32 to index
      %c0_71 = arith.constant 0 : index
      %c0_72 = arith.constant 0 : index
      %90 = vector.load %arg5[%c0_70, %89, %c0_71, %c0_72] : memref<1x14x14x128xbf16, #tpu.memory_space<vmem>>, vector<1x1x14x128xbf16>
      %91 = vector.shape_cast %90 : vector<1x1x14x128xbf16> to vector<14x128xbf16>
      %92 = vector.shape_cast %88 : vector<14x128xbf16> to vector<1x1x14x128xbf16>
      tpu.vector_store %arg5[%c0_70, %89, %c0_71, %c0_72], %92 {strides = array<i32>} : memref<1x14x14x128xbf16, #tpu.memory_space<vmem>>, vector<1x1x14x128xbf16>,
      %93 = vector.extract_strided_slice %82 {offsets = [0, 256], sizes = [14, 128], strides = [1, 1]} : vector<14x384xbf16> to vector<14x128xbf16>
      %c0_73 = arith.constant 0 : index
      %94 = arith.index_cast %arg7 : i32 to index
      %c0_74 = arith.constant 0 : index
      %c0_75 = arith.constant 0 : index
      %95 = vector.load %arg6[%c0_73, %94, %c0_74, %c0_75] : memref<1x14x14x128xbf16, #tpu.memory_space<vmem>>, vector<1x1x14x128xbf16>
      %96 = vector.shape_cast %95 : vector<1x1x14x128xbf16> to vector<14x128xbf16>
      %97 = vector.shape_cast %93 : vector<14x128xbf16> to vector<1x1x14x128xbf16>
      tpu.vector_store %arg6[%c0_73, %94, %c0_74, %c0_75], %97 {strides = array<i32>} : memref<1x14x14x128xbf16, #tpu.memory_space<vmem>>, vector<1x1x14x128xbf16>,
    }
    %c14_i32_20 = arith.constant 14 : i32
    return
  }
  func.func @transform_0(%arg0: i32) -> (i32, i32, i32, i32) {
    %c0_i32 = arith.constant 0 : i32
    %c0_i32_0 = arith.constant 0 : i32
    %c0_i32_1 = arith.constant 0 : i32
    %c0_i32_2 = arith.constant 0 : i32
    return %arg0, %c0_i32, %c0_i32_0, %c0_i32_1 : i32, i32, i32, i32
  }
  func.func @transform_1(%arg0: i32) -> (i32, i32, i32) {
    %c0_i32 = arith.constant 0 : i32
    %c0_i32_0 = arith.constant 0 : i32
    %c0_i32_1 = arith.constant 0 : i32
    %c0_i32_2 = arith.constant 0 : i32
    return %c0_i32, %c0_i32_0, %c0_i32_1 : i32, i32, i32
  }
  func.func @transform_2(%arg0: i32) -> (i32, i32) {
    %c0_i32 = arith.constant 0 : i32
    %c0_i32_0 = arith.constant 0 : i32
    %c0_i32_1 = arith.constant 0 : i32
    return %c0_i32, %c0_i32_0 : i32, i32
  }
  func.func @transform_3(%arg0: i32) -> (i32, i32, i32, i32) {
    %c0_i32 = arith.constant 0 : i32
    %c0_i32_0 = arith.constant 0 : i32
    %c0_i32_1 = arith.constant 0 : i32
    %c0_i32_2 = arith.constant 0 : i32
    return %arg0, %c0_i32, %c0_i32_0, %c0_i32_1 : i32, i32, i32, i32
  }
  func.func @transform_4(%arg0: i32) -> (i32, i32, i32, i32) {
    %c0_i32 = arith.constant 0 : i32
    %c0_i32_0 = arith.constant 0 : i32
    %c0_i32_1 = arith.constant 0 : i32
    %c0_i32_2 = arith.constant 0 : i32
    return %arg0, %c0_i32, %c0_i32_0, %c0_i32_1 : i32, i32, i32, i32
  }
  func.func @transform_5(%arg0: i32) -> (i32, i32, i32, i32) {
    %c0_i32 = arith.constant 0 : i32
    %c0_i32_0 = arith.constant 0 : i32
    %c0_i32_1 = arith.constant 0 : i32
    %c0_i32_2 = arith.constant 0 : i32
    return %arg0, %c0_i32, %c0_i32_0, %c0_i32_1 : i32, i32, i32, i32
  }
}

module attributes {stable_mosaic.version = 11 : i64} {
  func.func @_attention_kernel(%arg0: i32, %arg1: i32, %arg2: memref<1x196x128xbf16, #tpu.memory_space<vmem>>, %arg3: memref<1x196x128xbf16, #tpu.memory_space<vmem>>, %arg4: memref<1x196x128xbf16, #tpu.memory_space<vmem>>, %arg5: memref<1x196x128xbf16, #tpu.memory_space<vmem>>, %arg6: memref<196x128xf32, #tpu.memory_space<vmem>>) attributes {dimension_semantics = [#tpu.dimension_semantics<parallel>, #tpu.dimension_semantics<arbitrary>], iteration_bounds = array<i64: 2, 1>, scalar_prefetch = 0 : i64, scratch_operands = 1 : i64, tpu.core_type = #tpu.core_type<tc>, window_params = [{transform_indices = @transform_0, window_bounds = array<i64: 1, 196, 128>}, {transform_indices = @transform_1, window_bounds = array<i64: 1, 196, 128>}, {transform_indices = @transform_2, window_bounds = array<i64: 1, 196, 128>}, {transform_indices = @transform_3, window_bounds = array<i64: 1, 196, 128>}]} {
    %c0_i32 = arith.constant 0 : i32
    %0 = arith.cmpi eq, %arg1, %c0_i32 : i32
    %1 = arith.extui %0 : i1 to i32
    %c0_i32_0 = arith.constant 0 : i32
    %2 = arith.cmpi ne, %1, %c0_i32_0 : i32
    scf.if %2 {
      %cst_18 = arith.constant 0.000000e+00 : f32
      %28 = vector.broadcast %cst_18 : f32 to vector<196x128xf32>
      %c0_19 = arith.constant 0 : index
      %c0_20 = arith.constant 0 : index
      %29 = vector.load %arg6[%c0_19, %c0_20] : memref<196x128xf32, #tpu.memory_space<vmem>>, vector<196x128xf32>
      tpu.vector_store %arg6[%c0_19, %c0_20], %28 {strides = array<i32>} : memref<196x128xf32, #tpu.memory_space<vmem>>, vector<196x128xf32>,
    } else {
    }
    %c0 = arith.constant 0 : index
    %c0_1 = arith.constant 0 : index
    %c0_2 = arith.constant 0 : index
    %3 = vector.load %arg2[%c0, %c0_1, %c0_2] : memref<1x196x128xbf16, #tpu.memory_space<vmem>>, vector<1x196x128xbf16>
    %4 = vector.shape_cast %3 : vector<1x196x128xbf16> to vector<196x128xbf16>
    %c0_3 = arith.constant 0 : index
    %c0_4 = arith.constant 0 : index
    %c0_5 = arith.constant 0 : index
    %5 = vector.load %arg3[%c0_3, %c0_4, %c0_5] : memref<1x196x128xbf16, #tpu.memory_space<vmem>>, vector<1x196x128xbf16>
    %6 = vector.shape_cast %5 : vector<1x196x128xbf16> to vector<196x128xbf16>
    %c0_6 = arith.constant 0 : index
    %c0_7 = arith.constant 0 : index
    %c0_8 = arith.constant 0 : index
    %7 = vector.load %arg4[%c0_6, %c0_7, %c0_8] : memref<1x196x128xbf16, #tpu.memory_space<vmem>>, vector<1x196x128xbf16>
    %8 = vector.shape_cast %7 : vector<1x196x128xbf16> to vector<196x128xbf16>
    %cst = arith.constant dense<0.000000e+00> : vector<196x196xf32>
    %9 = tpu.matmul %4, %6, %cst {dimension_numbers = #tpu.dot_dimension_numbers<[1], [1], [0], [0], [0, 0, 1, 0], [], []>} : vector<196x128xbf16>, vector<196x128xbf16>, vector<196x196xf32> -> vector<196x196xf32>
    %cst_9 = arith.constant dense<0xFF800000> : vector<196xf32>
    %10 = vector.multi_reduction <maximumf>, %9, %cst_9 [0] : vector<196x196xf32> to vector<196xf32>
    %11 = vector.shape_cast %10 : vector<196xf32> to vector<1x196xf32>
    %12 = vector.broadcast %11 : vector<1x196xf32> to vector<196x196xf32>
    %13 = arith.subf %9, %12 : vector<196x196xf32>
    %14 = math.exp %13 : vector<196x196xf32>
    %cst_10 = arith.constant dense<0.000000e+00> : vector<196xf32>
    %15 = vector.multi_reduction <add>, %14, %cst_10 [0] : vector<196x196xf32> to vector<196xf32>
    %16 = vector.shape_cast %15 : vector<196xf32> to vector<1x196xf32>
    %17 = tpu.reciprocal %16 {approx = true} : vector<1x196xf32> -> vector<1x196xf32>
    %18 = vector.broadcast %17 : vector<1x196xf32> to vector<196x196xf32>
    %19 = arith.mulf %14, %18 : vector<196x196xf32>
    %c0_11 = arith.constant 0 : index
    %c0_12 = arith.constant 0 : index
    %20 = vector.load %arg6[%c0_11, %c0_12] : memref<196x128xf32, #tpu.memory_space<vmem>>, vector<196x128xf32>
    %21 = arith.truncf %19 : vector<196x196xf32> to vector<196x196xbf16>
    %cst_13 = arith.constant dense<0.000000e+00> : vector<196x128xf32>
    %22 = tpu.matmul %21, %8, %cst_13 {dimension_numbers = #tpu.dot_dimension_numbers<[1], [0], [0], [1], [0, 0, 1, 1], [], []>} : vector<196x196xbf16>, vector<196x128xbf16>, vector<196x128xf32> -> vector<196x128xf32>
    %23 = arith.addf %20, %22 : vector<196x128xf32>
    %c0_14 = arith.constant 0 : index
    %c0_15 = arith.constant 0 : index
    %24 = vector.load %arg6[%c0_14, %c0_15] : memref<196x128xf32, #tpu.memory_space<vmem>>, vector<196x128xf32>
    tpu.vector_store %arg6[%c0_14, %c0_15], %23 {strides = array<i32>} : memref<196x128xf32, #tpu.memory_space<vmem>>, vector<196x128xf32>,
    %c0_i32_16 = arith.constant 0 : i32
    %25 = arith.cmpi eq, %arg1, %c0_i32_16 : i32
    %26 = arith.extui %25 : i1 to i32
    %c0_i32_17 = arith.constant 0 : i32
    %27 = arith.cmpi ne, %26, %c0_i32_17 : i32
    scf.if %27 {
      %c0_18 = arith.constant 0 : index
      %c0_19 = arith.constant 0 : index
      %28 = vector.load %arg6[%c0_18, %c0_19] : memref<196x128xf32, #tpu.memory_space<vmem>>, vector<196x128xf32>
      %29 = arith.truncf %28 : vector<196x128xf32> to vector<196x128xbf16>
      %c0_20 = arith.constant 0 : index
      %c0_21 = arith.constant 0 : index
      %c0_22 = arith.constant 0 : index
      %30 = vector.load %arg5[%c0_20, %c0_21, %c0_22] : memref<1x196x128xbf16, #tpu.memory_space<vmem>>, vector<1x196x128xbf16>
      %31 = vector.shape_cast %30 : vector<1x196x128xbf16> to vector<196x128xbf16>
      %32 = vector.shape_cast %29 : vector<196x128xbf16> to vector<1x196x128xbf16>
      tpu.vector_store %arg5[%c0_20, %c0_21, %c0_22], %32 {strides = array<i32>} : memref<1x196x128xbf16, #tpu.memory_space<vmem>>, vector<1x196x128xbf16>,
    } else {
    }
    return
  }
  func.func @transform_0(%arg0: i32, %arg1: i32) -> (i32, i32, i32) {
    %c0_i32 = arith.constant 0 : i32
    %c0_i32_0 = arith.constant 0 : i32
    %c0_i32_1 = arith.constant 0 : i32
    return %arg0, %c0_i32, %c0_i32_0 : i32, i32, i32
  }
  func.func @transform_1(%arg0: i32, %arg1: i32) -> (i32, i32, i32) {
    %c0_i32 = arith.constant 0 : i32
    %c0_i32_0 = arith.constant 0 : i32
    return %arg0, %arg1, %c0_i32 : i32, i32, i32
  }
  func.func @transform_2(%arg0: i32, %arg1: i32) -> (i32, i32, i32) {
    %c0_i32 = arith.constant 0 : i32
    %c0_i32_0 = arith.constant 0 : i32
    return %arg0, %arg1, %c0_i32 : i32, i32, i32
  }
  func.func @transform_3(%arg0: i32, %arg1: i32) -> (i32, i32, i32) {
    %c0_i32 = arith.constant 0 : i32
    %c0_i32_0 = arith.constant 0 : i32
    %c0_i32_1 = arith.constant 0 : i32
    return %arg0, %c0_i32, %c0_i32_0 : i32, i32, i32
  }
}

module attributes {stable_mosaic.version = 11 : i64} {
  func.func @kernel(%arg0: i32, %arg1: memref<1x18x18x128xbf16, #tpu.memory_space<vmem>>, %arg2: memref<9x128x128xbf16, #tpu.memory_space<vmem>>, %arg3: memref<1x128xf32, #tpu.memory_space<vmem>>, %arg4: memref<1x16x16x4xf32, #tpu.memory_space<vmem>>, %arg5: memref<1x16x16x4xf32, #tpu.memory_space<vmem>>) attributes {dimension_semantics = [#tpu.dimension_semantics<parallel>], iteration_bounds = array<i64: 2>, scalar_prefetch = 0 : i64, scratch_operands = 0 : i64, tpu.core_type = #tpu.core_type<tc>, window_params = [{transform_indices = @transform_0, window_bounds = array<i64: 1, 18, 18, 128>}, {pipeline_mode = #tpu.pipeline_mode<synchronous>, transform_indices = @transform_1, window_bounds = array<i64: 9, 128, 128>}, {pipeline_mode = #tpu.pipeline_mode<synchronous>, transform_indices = @transform_2, window_bounds = array<i64: 1, 128>}, {transform_indices = @transform_3, window_bounds = array<i64: 1, 16, 16, 4>}, {transform_indices = @transform_4, window_bounds = array<i64: 1, 16, 16, 4>}]} {
    %c0 = arith.constant 0 : index
    %c0_0 = arith.constant 0 : index
    %0 = vector.load %arg3[%c0, %c0_0] : memref<1x128xf32, #tpu.memory_space<vmem>>, vector<1x128xf32>
    %c0_1 = arith.constant 0 : index
    %c0_2 = arith.constant 0 : index
    %c0_3 = arith.constant 0 : index
    %1 = vector.load %arg2[%c0_1, %c0_2, %c0_3] : memref<9x128x128xbf16, #tpu.memory_space<vmem>>, vector<1x128x128xbf16>
    %2 = vector.shape_cast %1 : vector<1x128x128xbf16> to vector<128x128xbf16>
    %c1 = arith.constant 1 : index
    %c0_4 = arith.constant 0 : index
    %c0_5 = arith.constant 0 : index
    %3 = vector.load %arg2[%c1, %c0_4, %c0_5] : memref<9x128x128xbf16, #tpu.memory_space<vmem>>, vector<1x128x128xbf16>
    %4 = vector.shape_cast %3 : vector<1x128x128xbf16> to vector<128x128xbf16>
    %c2 = arith.constant 2 : index
    %c0_6 = arith.constant 0 : index
    %c0_7 = arith.constant 0 : index
    %5 = vector.load %arg2[%c2, %c0_6, %c0_7] : memref<9x128x128xbf16, #tpu.memory_space<vmem>>, vector<1x128x128xbf16>
    %6 = vector.shape_cast %5 : vector<1x128x128xbf16> to vector<128x128xbf16>
    %c3 = arith.constant 3 : index
    %c0_8 = arith.constant 0 : index
    %c0_9 = arith.constant 0 : index
    %7 = vector.load %arg2[%c3, %c0_8, %c0_9] : memref<9x128x128xbf16, #tpu.memory_space<vmem>>, vector<1x128x128xbf16>
    %8 = vector.shape_cast %7 : vector<1x128x128xbf16> to vector<128x128xbf16>
    %c4 = arith.constant 4 : index
    %c0_10 = arith.constant 0 : index
    %c0_11 = arith.constant 0 : index
    %9 = vector.load %arg2[%c4, %c0_10, %c0_11] : memref<9x128x128xbf16, #tpu.memory_space<vmem>>, vector<1x128x128xbf16>
    %10 = vector.shape_cast %9 : vector<1x128x128xbf16> to vector<128x128xbf16>
    %c5 = arith.constant 5 : index
    %c0_12 = arith.constant 0 : index
    %c0_13 = arith.constant 0 : index
    %11 = vector.load %arg2[%c5, %c0_12, %c0_13] : memref<9x128x128xbf16, #tpu.memory_space<vmem>>, vector<1x128x128xbf16>
    %12 = vector.shape_cast %11 : vector<1x128x128xbf16> to vector<128x128xbf16>
    %c6 = arith.constant 6 : index
    %c0_14 = arith.constant 0 : index
    %c0_15 = arith.constant 0 : index
    %13 = vector.load %arg2[%c6, %c0_14, %c0_15] : memref<9x128x128xbf16, #tpu.memory_space<vmem>>, vector<1x128x128xbf16>
    %14 = vector.shape_cast %13 : vector<1x128x128xbf16> to vector<128x128xbf16>
    %c7 = arith.constant 7 : index
    %c0_16 = arith.constant 0 : index
    %c0_17 = arith.constant 0 : index
    %15 = vector.load %arg2[%c7, %c0_16, %c0_17] : memref<9x128x128xbf16, #tpu.memory_space<vmem>>, vector<1x128x128xbf16>
    %16 = vector.shape_cast %15 : vector<1x128x128xbf16> to vector<128x128xbf16>
    %c8 = arith.constant 8 : index
    %c0_18 = arith.constant 0 : index
    %c0_19 = arith.constant 0 : index
    %17 = vector.load %arg2[%c8, %c0_18, %c0_19] : memref<9x128x128xbf16, #tpu.memory_space<vmem>>, vector<1x128x128xbf16>
    %18 = vector.shape_cast %17 : vector<1x128x128xbf16> to vector<128x128xbf16>
    %c0_i32 = arith.constant 0 : i32
    %c16_i32 = arith.constant 16 : i32
    %19 = arith.addi %c0_i32, %c16_i32 : i32
    %c1_i32 = arith.constant 1 : i32
    scf.for %arg6 = %c0_i32 to %19 step %c1_i32  : i32 {
      %cst = arith.constant 0.000000e+00 : f32
      %20 = vector.broadcast %cst : f32 to vector<16x128xf32>
      %c0_i32_21 = arith.constant 0 : i32
      %21 = arith.addi %arg6, %c0_i32_21 : i32
      %c0_22 = arith.constant 0 : index
      %22 = arith.index_cast %21 : i32 to index
      %c0_23 = arith.constant 0 : index
      %c0_24 = arith.constant 0 : index
      %23 = vector.load %arg1[%c0_22, %22, %c0_23, %c0_24] : memref<1x18x18x128xbf16, #tpu.memory_space<vmem>>, vector<1x1x16x128xbf16>
      %24 = vector.shape_cast %23 : vector<1x1x16x128xbf16> to vector<16x128xbf16>
      %cst_25 = arith.constant dense<0.000000e+00> : vector<16x128xf32>
      %25 = tpu.matmul %24, %2, %cst_25 {dimension_numbers = #tpu.dot_dimension_numbers<[1], [0], [0], [1], [0, 0, 1, 1], [], []>} : vector<16x128xbf16>, vector<128x128xbf16>, vector<16x128xf32> -> vector<16x128xf32>
      %26 = arith.addf %20, %25 : vector<16x128xf32>
      %c0_i32_26 = arith.constant 0 : i32
      %27 = arith.addi %arg6, %c0_i32_26 : i32
      %c0_27 = arith.constant 0 : index
      %28 = arith.index_cast %27 : i32 to index
      %c1_28 = arith.constant 1 : index
      %c0_29 = arith.constant 0 : index
      %29 = vector.load %arg1[%c0_27, %28, %c1_28, %c0_29] : memref<1x18x18x128xbf16, #tpu.memory_space<vmem>>, vector<1x1x16x128xbf16>
      %30 = vector.shape_cast %29 : vector<1x1x16x128xbf16> to vector<16x128xbf16>
      %cst_30 = arith.constant dense<0.000000e+00> : vector<16x128xf32>
      %31 = tpu.matmul %30, %4, %cst_30 {dimension_numbers = #tpu.dot_dimension_numbers<[1], [0], [0], [1], [0, 0, 1, 1], [], []>} : vector<16x128xbf16>, vector<128x128xbf16>, vector<16x128xf32> -> vector<16x128xf32>
      %32 = arith.addf %26, %31 : vector<16x128xf32>
      %c0_i32_31 = arith.constant 0 : i32
      %33 = arith.addi %arg6, %c0_i32_31 : i32
      %c0_32 = arith.constant 0 : index
      %34 = arith.index_cast %33 : i32 to index
      %c2_33 = arith.constant 2 : index
      %c0_34 = arith.constant 0 : index
      %35 = vector.load %arg1[%c0_32, %34, %c2_33, %c0_34] : memref<1x18x18x128xbf16, #tpu.memory_space<vmem>>, vector<1x1x16x128xbf16>
      %36 = vector.shape_cast %35 : vector<1x1x16x128xbf16> to vector<16x128xbf16>
      %cst_35 = arith.constant dense<0.000000e+00> : vector<16x128xf32>
      %37 = tpu.matmul %36, %6, %cst_35 {dimension_numbers = #tpu.dot_dimension_numbers<[1], [0], [0], [1], [0, 0, 1, 1], [], []>} : vector<16x128xbf16>, vector<128x128xbf16>, vector<16x128xf32> -> vector<16x128xf32>
      %38 = arith.addf %32, %37 : vector<16x128xf32>
      %c1_i32_36 = arith.constant 1 : i32
      %39 = arith.addi %arg6, %c1_i32_36 : i32
      %c0_37 = arith.constant 0 : index
      %40 = arith.index_cast %39 : i32 to index
      %c0_38 = arith.constant 0 : index
      %c0_39 = arith.constant 0 : index
      %41 = vector.load %arg1[%c0_37, %40, %c0_38, %c0_39] : memref<1x18x18x128xbf16, #tpu.memory_space<vmem>>, vector<1x1x16x128xbf16>
      %42 = vector.shape_cast %41 : vector<1x1x16x128xbf16> to vector<16x128xbf16>
      %cst_40 = arith.constant dense<0.000000e+00> : vector<16x128xf32>
      %43 = tpu.matmul %42, %8, %cst_40 {dimension_numbers = #tpu.dot_dimension_numbers<[1], [0], [0], [1], [0, 0, 1, 1], [], []>} : vector<16x128xbf16>, vector<128x128xbf16>, vector<16x128xf32> -> vector<16x128xf32>
      %44 = arith.addf %38, %43 : vector<16x128xf32>
      %c1_i32_41 = arith.constant 1 : i32
      %45 = arith.addi %arg6, %c1_i32_41 : i32
      %c0_42 = arith.constant 0 : index
      %46 = arith.index_cast %45 : i32 to index
      %c1_43 = arith.constant 1 : index
      %c0_44 = arith.constant 0 : index
      %47 = vector.load %arg1[%c0_42, %46, %c1_43, %c0_44] : memref<1x18x18x128xbf16, #tpu.memory_space<vmem>>, vector<1x1x16x128xbf16>
      %48 = vector.shape_cast %47 : vector<1x1x16x128xbf16> to vector<16x128xbf16>
      %cst_45 = arith.constant dense<0.000000e+00> : vector<16x128xf32>
      %49 = tpu.matmul %48, %10, %cst_45 {dimension_numbers = #tpu.dot_dimension_numbers<[1], [0], [0], [1], [0, 0, 1, 1], [], []>} : vector<16x128xbf16>, vector<128x128xbf16>, vector<16x128xf32> -> vector<16x128xf32>
      %50 = arith.addf %44, %49 : vector<16x128xf32>
      %c1_i32_46 = arith.constant 1 : i32
      %51 = arith.addi %arg6, %c1_i32_46 : i32
      %c0_47 = arith.constant 0 : index
      %52 = arith.index_cast %51 : i32 to index
      %c2_48 = arith.constant 2 : index
      %c0_49 = arith.constant 0 : index
      %53 = vector.load %arg1[%c0_47, %52, %c2_48, %c0_49] : memref<1x18x18x128xbf16, #tpu.memory_space<vmem>>, vector<1x1x16x128xbf16>
      %54 = vector.shape_cast %53 : vector<1x1x16x128xbf16> to vector<16x128xbf16>
      %cst_50 = arith.constant dense<0.000000e+00> : vector<16x128xf32>
      %55 = tpu.matmul %54, %12, %cst_50 {dimension_numbers = #tpu.dot_dimension_numbers<[1], [0], [0], [1], [0, 0, 1, 1], [], []>} : vector<16x128xbf16>, vector<128x128xbf16>, vector<16x128xf32> -> vector<16x128xf32>
      %56 = arith.addf %50, %55 : vector<16x128xf32>
      %c2_i32 = arith.constant 2 : i32
      %57 = arith.addi %arg6, %c2_i32 : i32
      %c0_51 = arith.constant 0 : index
      %58 = arith.index_cast %57 : i32 to index
      %c0_52 = arith.constant 0 : index
      %c0_53 = arith.constant 0 : index
      %59 = vector.load %arg1[%c0_51, %58, %c0_52, %c0_53] : memref<1x18x18x128xbf16, #tpu.memory_space<vmem>>, vector<1x1x16x128xbf16>
      %60 = vector.shape_cast %59 : vector<1x1x16x128xbf16> to vector<16x128xbf16>
      %cst_54 = arith.constant dense<0.000000e+00> : vector<16x128xf32>
      %61 = tpu.matmul %60, %14, %cst_54 {dimension_numbers = #tpu.dot_dimension_numbers<[1], [0], [0], [1], [0, 0, 1, 1], [], []>} : vector<16x128xbf16>, vector<128x128xbf16>, vector<16x128xf32> -> vector<16x128xf32>
      %62 = arith.addf %56, %61 : vector<16x128xf32>
      %c2_i32_55 = arith.constant 2 : i32
      %63 = arith.addi %arg6, %c2_i32_55 : i32
      %c0_56 = arith.constant 0 : index
      %64 = arith.index_cast %63 : i32 to index
      %c1_57 = arith.constant 1 : index
      %c0_58 = arith.constant 0 : index
      %65 = vector.load %arg1[%c0_56, %64, %c1_57, %c0_58] : memref<1x18x18x128xbf16, #tpu.memory_space<vmem>>, vector<1x1x16x128xbf16>
      %66 = vector.shape_cast %65 : vector<1x1x16x128xbf16> to vector<16x128xbf16>
      %cst_59 = arith.constant dense<0.000000e+00> : vector<16x128xf32>
      %67 = tpu.matmul %66, %16, %cst_59 {dimension_numbers = #tpu.dot_dimension_numbers<[1], [0], [0], [1], [0, 0, 1, 1], [], []>} : vector<16x128xbf16>, vector<128x128xbf16>, vector<16x128xf32> -> vector<16x128xf32>
      %68 = arith.addf %62, %67 : vector<16x128xf32>
      %c2_i32_60 = arith.constant 2 : i32
      %69 = arith.addi %arg6, %c2_i32_60 : i32
      %c0_61 = arith.constant 0 : index
      %70 = arith.index_cast %69 : i32 to index
      %c2_62 = arith.constant 2 : index
      %c0_63 = arith.constant 0 : index
      %71 = vector.load %arg1[%c0_61, %70, %c2_62, %c0_63] : memref<1x18x18x128xbf16, #tpu.memory_space<vmem>>, vector<1x1x16x128xbf16>
      %72 = vector.shape_cast %71 : vector<1x1x16x128xbf16> to vector<16x128xbf16>
      %cst_64 = arith.constant dense<0.000000e+00> : vector<16x128xf32>
      %73 = tpu.matmul %72, %18, %cst_64 {dimension_numbers = #tpu.dot_dimension_numbers<[1], [0], [0], [1], [0, 0, 1, 1], [], []>} : vector<16x128xbf16>, vector<128x128xbf16>, vector<16x128xf32> -> vector<16x128xf32>
      %74 = arith.addf %68, %73 : vector<16x128xf32>
      %75 = vector.broadcast %0 : vector<1x128xf32> to vector<16x128xf32>
      %76 = arith.addf %74, %75 : vector<16x128xf32>
      %cst_65 = arith.constant 0.000000e+00 : f32
      %77 = vector.broadcast %cst_65 : f32 to vector<16x128xf32>
      %78 = arith.cmpf oge, %76, %77 : vector<16x128xf32>
      %cst_66 = arith.constant 0.00999999977 : f32
      %79 = vector.broadcast %cst_66 : f32 to vector<16x128xf32>
      %80 = arith.mulf %79, %76 : vector<16x128xf32>
      %81 = arith.select %78, %76, %80 : vector<16x128xi1>, vector<16x128xf32>
      %82 = vector.extract_strided_slice %81 {offsets = [0, 0], sizes = [16, 4], strides = [1, 1]} : vector<16x128xf32> to vector<16x4xf32>
      %c0_67 = arith.constant 0 : index
      %83 = arith.index_cast %arg6 : i32 to index
      %c0_68 = arith.constant 0 : index
      %c0_69 = arith.constant 0 : index
      %84 = vector.load %arg4[%c0_67, %83, %c0_68, %c0_69] : memref<1x16x16x4xf32, #tpu.memory_space<vmem>>, vector<1x1x16x4xf32>
      %85 = vector.shape_cast %84 : vector<1x1x16x4xf32> to vector<16x4xf32>
      %86 = arith.addf %82, %85 : vector<16x4xf32>
      %c0_70 = arith.constant 0 : index
      %87 = arith.index_cast %arg6 : i32 to index
      %c0_71 = arith.constant 0 : index
      %c0_72 = arith.constant 0 : index
      %88 = vector.load %arg5[%c0_70, %87, %c0_71, %c0_72] : memref<1x16x16x4xf32, #tpu.memory_space<vmem>>, vector<1x1x16x4xf32>
      %89 = vector.shape_cast %88 : vector<1x1x16x4xf32> to vector<16x4xf32>
      %90 = vector.shape_cast %86 : vector<16x4xf32> to vector<1x1x16x4xf32>
      tpu.vector_store %arg5[%c0_70, %87, %c0_71, %c0_72], %90 {strides = array<i32>} : memref<1x16x16x4xf32, #tpu.memory_space<vmem>>, vector<1x1x16x4xf32>,
    }
    %c16_i32_20 = arith.constant 16 : i32
    return
  }
  func.func @transform_0(%arg0: i32) -> (i32, i32, i32, i32) {
    %c0_i32 = arith.constant 0 : i32
    %c0_i32_0 = arith.constant 0 : i32
    %c0_i32_1 = arith.constant 0 : i32
    %c0_i32_2 = arith.constant 0 : i32
    return %arg0, %c0_i32, %c0_i32_0, %c0_i32_1 : i32, i32, i32, i32
  }
  func.func @transform_1(%arg0: i32) -> (i32, i32, i32) {
    %c0_i32 = arith.constant 0 : i32
    %c0_i32_0 = arith.constant 0 : i32
    %c0_i32_1 = arith.constant 0 : i32
    %c0_i32_2 = arith.constant 0 : i32
    return %c0_i32, %c0_i32_0, %c0_i32_1 : i32, i32, i32
  }
  func.func @transform_2(%arg0: i32) -> (i32, i32) {
    %c0_i32 = arith.constant 0 : i32
    %c0_i32_0 = arith.constant 0 : i32
    %c0_i32_1 = arith.constant 0 : i32
    return %c0_i32, %c0_i32_0 : i32, i32
  }
  func.func @transform_3(%arg0: i32) -> (i32, i32, i32, i32) {
    %c0_i32 = arith.constant 0 : i32
    %c0_i32_0 = arith.constant 0 : i32
    %c0_i32_1 = arith.constant 0 : i32
    %c0_i32_2 = arith.constant 0 : i32
    return %arg0, %c0_i32, %c0_i32_0, %c0_i32_1 : i32, i32, i32, i32
  }
  func.func @transform_4(%arg0: i32) -> (i32, i32, i32, i32) {
    %c0_i32 = arith.constant 0 : i32
    %c0_i32_0 = arith.constant 0 : i32
    %c0_i32_1 = arith.constant 0 : i32
    %c0_i32_2 = arith.constant 0 : i32
    return %arg0, %c0_i32, %c0_i32_0, %c0_i32_1 : i32, i32, i32, i32
  }
}

</mosaic_0001>

<bundles_post_ra>
// kernel: non_local_block.3
= control target key start
LH: loop header
LB: loop body
LE: loop exit
PB: predicated region body
PF: predicated region fallthrough
CT: control target
= control target key end

     0   :  { %s1923_s18 = smov 0   ;;  %s2183_s0 = inlined_call_operand.vmem [shape: bf16[2,16,16,4], index: 0, kind: input, shape index: {}]   ;;  %s2184_s1 = inlined_call_operand.vmem [shape: bf16[9,4,384], index: 1, kind: input, shape index: {}]   ;;  %s2185_s2 = inlined_call_operand.vmem [shape: f32[1,384], index: 2, kind: input, shape index: {}]   ;;  %s2186_s3 = inlined_call_operand.vmem [shape: bf16[2,14,14,128], index: 3, kind: output, shape index: {0}]   ;;  %s2187_s4 = inlined_call_operand.vmem [shape: bf16[2,14,14,128], index: 4, kind: output, shape index: {1}]   ;;  %s2188_s5 = inlined_call_operand.vmem [shape: bf16[2,14,14,128], index: 5, kind: output, shape index: {2}]  }
   0x1 LB: > { %s1647_s19 = sadd.s32 4294967295, %s1883_s18   ;;  %p1651_p0 = scmp.ge.s32.totalorder %s1883_s18, 1  ;;  %s1883_s18 = sphi %s1923_s18, %s16_s18  }
   0x2   : > { %p192_p1 = scmp.lt.s32.totalorder %s1883_s18, 3 }
   0x4   : > { %p193_p2 = pnand %p1651_p0, %p192_p1 }
   0x5   : > { %p230_p3 = scmp.lt.s32.totalorder (!%p193_p2), %s1647_s19, 1  ;;  %v1934_v0 = vld [vmem:[%s2185_s2] sm:$0x7] (!%p193_p2)  ;;  %v1944_v2 = vld [vmem:[%s2184_s1 + $0x6] sm:$0x3f] (!%p193_p2)  ;;  %s2000_s30 = smov (!%p193_p2), 0  }
   0x6   : > { %196 = sbr.rel (%p193_p2) target bundleno = 352 (0x160), region = 32  ;;  %v1939_v1 = vld [vmem:[%s2184_s1] sm:$0x3f] (!%p193_p2)  ;;  %v1949_v3 = vld [vmem:[%s2184_s1 + $0xc] sm:$0x3f] (!%p193_p2) }
   0x7   : > { %v1954_v4 = vld [vmem:[%s2184_s1 + $0x12] sm:$0x3f] (!%p193_p2)  ;;  %v1959_v5 = vld [vmem:[%s2184_s1 + $0x18] sm:$0x3f] (!%p193_p2)  ;;  %v1964_v6 = vld [vmem:[%s2184_s1 + $0x1e] sm:$0x3f] (!%p193_p2) }
   0x8   : > { %v1969_v7 = vld [vmem:[%s2184_s1 + $0x24] sm:$0x3f] (!%p193_p2)  ;;  %v1974_v8 = vld [vmem:[%s2184_s1 + $0x2a] sm:$0x3f] (!%p193_p2)  ;;  %v1979_v9 = vld [vmem:[%s2184_s1 + $0x30] sm:$0x3f] (!%p193_p2) }
   0xd   : > { %s2190_s19 = smov (!%p230_p3, %s1647_s19), 1 }
   0xe   : > { %s1728_s15 = sshll.u32 %s2190_s19, 7  ;;  %s1981_s16 = smul.u32 112, %s2190_s19 }
   0xf   : > { %s1986_s21 = scalar_lea.vmem %s2183_s0, %s1728_s15 }
  0x10   : > { %s239_s24 = scalar_lea.vmem %s2186_s3, %s1981_s16  ;;  %s244_s27 = scalar_lea.vmem %s2187_s4, %s1981_s16 }
  0x11   : > { %s249_s19 = scalar_lea.vmem %s2188_s5, %s1981_s16 }
  0x12 LB: >> { %v298_v10 = vlaneseq  ;;  %v1889_v11 = vmov 0.0   ;;  %v1890_v12 = vmov 1983009808   ;;  %vm1891_vm0 = vmmov 0   ;;  %s2011_s6 = sshll.u32 %s1887_s30, 3  ;;  %s274_s30 = sadd.s32 1, %s1887_s30   ;;  %s1887_s30 = sphi %s2000_s30, %s274_s30  }
  0x13   : >> { %1757 = vmatprep.subr.bf16.mxu1 %v1889_v11  ;;  %v296_v13 = vunpack.c.l.s4 %v1890_v12  ;;  %1759 = vmatprep.mubr.msk.bf16.mxu1 %vm1891_vm0, %v1889_v11  ;;  %v294_v15 = vcombine.high %v1944_v2, %v1944_v2  ;;  %s2017_s7 = scalar_lea.vmem %s1986_s21, %s2011_s6  ;;  %v1892_v17 = vmov 0   ;;  %v412_v20 = vcombine.high %v1939_v1, %v1939_v1  ;;  %s1504_s10 = scalar_lea.vmem %s249_s19, %s2011_s6 }
  0x14   : >> { %v2006_v14 = vshrl.u32 %v298_v10, 7  ;;  %356 = vmatprep.mubr.bf16.mxu0 %v1892_v17  ;;  %v278_v18 = vld [vmem:[%s2017_s7] sm:$0xf]  ;;  %v280_v19 = vld [vmem:[%s2017_s7 + $0x4] sm:$0xf]  ;;  %vm314_vm1 = vcmask 1041408   ;;  %v533_v37 = vcombine.high %v1949_v3, %v1949_v3  ;;  %v663_v44 = vcombine.high %v1954_v4, %v1954_v4  ;;  %s1482_s13 = scalar_lea.vmem %s239_s24, %s2011_s6  ;;  %s1493_s17 = scalar_lea.vmem %s244_s27, %s2011_s6 }
  0x15   : >> { %v297_v16 = vunpack.c.0.s8 %v296_v13  ;;  %v1667_v22 = vcombine.low %v278_v18, %v280_v19  ;;  %vm310_vm2 = vcmask 31744   ;;  %v279_v40 = vld [vmem:[%s2017_s7 + $0x4] sm:$0x7]  ;;  %v796_v52 = vcombine.high %v1959_v5, %v1959_v5  ;;  %v1868_v53 = vld [vmem:[%s2017_s7 + $0x8] sm:$0xff]   ;;  %p271_p4 = scmp.ge.s32.totalorder %s274_s30, 14  }
  0x16   : >> { %v1671_v42 = vcombine.low %v278_v18, %v279_v40  ;;  %v1866_v45 = vld [vmem:[%s2017_s7] sm:$0xfe]   ;;  %v1867_v55 = vld [vmem:[%s2017_s7 + $0x8] sm:$0x7f]   ;;  %v791_v56 = vshll.u32 %v1868_v53, 16  ;;  %v923_v59 = vcombine.high %v1964_v6, %v1964_v6  ;;  %v789_v61 = vshrl.u32 %v1868_v53, 16 }
  0x17   : >> { %v2025_v21 = vsub.s32 %v297_v16, %v2006_v14  ;;  %v287_v25 = vshrl.u32 %v1667_v22, 16  ;;  %v289_v26 = vshll.u32 %v1667_v22, 16  ;;  %v531_v49 = vrot.slane %v1866_v45, 1  ;;  %v1869_v16 = vld [vmem:[%s2017_s7 + $0x8] sm:$0xfe]  }
  0x18   : >> { %v793_v62 = vrot.slane %v791_v56, 1  ;;  %v921_v22 = vrot.slane %v1869_v16, 1  ;;  %v1872_v40 = vld [vmem:[%s2017_s7 + $0x10] sm:$0xfe]  }
  0x19   : >> { %v308_v23 = vrot.slane %v294_v15, %v2025_v21  ;;  %v301_v24 = vrot.slane %v1944_v2, %v2025_v21  ;;  %v419_v27 = vrot.slane %v1939_v1, %v2025_v21  ;;  %v426_v28 = vrot.slane %v412_v20, %v2025_v21 }
  0x1a   : >> { %v540_v29 = vrot.slane %v1949_v3, %v2025_v21  ;;  %v291_v33 = vrot.slane %v289_v26, 1  ;;  %v547_v41 = vrot.slane %v533_v37, %v2025_v21  ;;  %v670_v46 = vrot.slane %v1954_v4, %v2025_v21  ;;  %v1871_v26 = vld [vmem:[%s2017_s7 + $0x10] sm:$0xff]  }
  0x1b   : >> { %v322_v30 = vsel %vm314_vm1, %v308_v23, 0  ;;  %v309_v31 = vcombine.high %v301_v24, %v301_v24  ;;  %v316_v32 = vsel %vm314_vm1, %v301_v24, 0  ;;  %v427_v34 = vcombine.high %v419_v27, %v419_v27 }
  0x1c   : >> { %1758 = vmatpush3.bf16.msra.mxu1 %v322_v30  ;;  %v292_v35 = vor.u32 %v291_v33, %v287_v25  ;;  %v438_v36 = vsel %vm314_vm1, %v426_v28, 0  ;;  %v432_v38 = vsel %vm314_vm1, %v419_v27, 0  ;;  %v548_v39 = vcombine.high %v540_v29, %v540_v29  ;;  %v1870_v28 = vld [vmem:[%s2017_s7 + $0x10] sm:$0x7f]  }
  0x1d   : >> { %1668 = vmatprep.subr.msk.bf16.mxu0 %vm314_vm1, %v309_v31  ;;  %1763 = vmatprep.subr.bf16.mxu1 %v1889_v11  ;;  %v559_v43 = vsel %vm314_vm1, %v547_v41, 0  ;;  %v677_v47 = vrot.slane %v663_v44, %v2025_v21  ;;  %v553_v48 = vsel %vm314_vm1, %v540_v29, 0  ;;  %v678_v50 = vcombine.high %v670_v46, %v670_v46 }
  0x1e   : >> { %325 = vmatpush1.bf16.msra.mxu0 %v316_v32  ;;  %v810_v54 = vrot.slane %v796_v52, %v2025_v21  ;;  %v803_v57 = vrot.slane %v1959_v5, %v2025_v21  ;;  %v683_v60 = vsel %vm314_vm1, %v670_v46, 0  ;;  %v937_v10 = vrot.slane %v923_v59, %v2025_v21 }
  0x1f   : >> { %1760 = vmatmul.mubr.msk.bf16.vlgmr.msra.gmra.mrb[0].mxu1 %vm310_vm2, %v292_v35  ;;  %1672 = vmatprep.subr.msk.bf16.mxu0 %vm314_vm1, %v427_v34  ;;  %v689_v51 = vsel %vm314_vm1, %v677_v47, 0  ;;  %v794_v12 = vor.u32 %v793_v62, %v789_v61  ;;  %v1053_v15 = vcombine.high %v1969_v7, %v1969_v7  ;;  %v930_v18 = vrot.slane %v1964_v6, %v2025_v21 }
  0x20   : >> { %1764 = vmatpush3.bf16.msra.mxu1 %v438_v36  ;;  %1765 = vmatprep.mubr.msk.bf16.mxu1 %vm1891_vm0, %v1889_v11  ;;  %v822_v58 = vsel %vm314_vm1, %v810_v54, 0  ;;  %v811_v63 = vcombine.high %v803_v57, %v803_v57  ;;  %v949_v13 = vsel %vm314_vm1, %v937_v10, 0  ;;  %v816_v20 = vsel %vm314_vm1, %v803_v57, 0 }
  0x21   : >> { %1669 = vmatmul.mubr.msk.bf16.vlgmr.msra.gmra.mrb[0].mxu0 %vm310_vm2, %v292_v35  ;;  %1769 = vmatprep.subr.bf16.mxu1 %v1889_v11  ;;  %v1067_v19 = vrot.slane %v1053_v15, %v2025_v21  ;;  %v938_v23 = vcombine.high %v930_v18, %v930_v18  ;;  %v1186_v25 = vcombine.high %v1974_v8, %v1974_v8  ;;  %v1181_v29 = vshll.u32 %v1871_v26, 16 }
  0x22   : >> { %441 = vmatpush1.bf16.msra.mxu0 %v432_v38  ;;  %472 = vmatprep.mubr.bf16.mxu0 %v1892_v17  ;;  %v1060_v30 = vrot.slane %v1969_v7, %v2025_v21  ;;  %v1313_v32 = vcombine.high %v1979_v9, %v1979_v9  ;;  %v943_v33 = vsel %vm314_vm1, %v930_v18, 0  ;;  %v1179_v34 = vshrl.u32 %v1871_v26, 16 }
  0x23   : >> { %1676 = vmatprep.subr.msk.bf16.mxu0 %vm314_vm1, %v548_v39  ;;  %v1079_v24 = vsel %vm314_vm1, %v1067_v19, 0  ;;  %v1200_v27 = vrot.slane %v1186_v25, %v2025_v21  ;;  %v1183_v35 = vrot.slane %v1181_v29, 1  ;;  %v1193_v41 = vrot.slane %v1974_v8, %v2025_v21 }
  0x24   : >> { %v1068_v36 = vcombine.high %v1060_v30, %v1060_v30  ;;  %v1327_v37 = vrot.slane %v1313_v32, %v2025_v21  ;;  %v1320_v45 = vrot.slane %v1979_v9, %v2025_v21 }
  0x25   : >> { %v1212_v31 = vsel %vm314_vm1, %v1200_v27, 0  ;;  %v1184_v38 = vor.u32 %v1183_v35, %v1179_v34  ;;  %v1201_v44 = vcombine.high %v1193_v41, %v1193_v41  ;;  %v1206_v46 = vsel %vm314_vm1, %v1193_v41, 0 }
  0x26   : >> { %v1339_v39 = vsel %vm314_vm1, %v1327_v37, 0  ;;  %v1328_v47 = vcombine.high %v1320_v45, %v1320_v45 }
  0x27   : >> { %1766 = vmatmul.mubr.msk.bf16.vlgmr.msra.gmra.mrb[4].mxu1 %vm310_vm2, %v1671_v42 }
  0x28   : >> { %1770 = vmatpush3.bf16.msra.mxu1 %v559_v43  ;;  %1771 = vmatprep.mubr.msk.bf16.mxu1 %vm1891_vm0, %v1889_v11  ;;  %v1311_v43 = vrot.slane %v1872_v40, 1 }
  0x29   : >> { %1775 = vmatprep.subr.bf16.mxu1 %v1889_v11 }
  0x2d   : >> { %1673 = vmatmul.mubr.msk.bf16.vlgmr.msra.gmra.mrb[0].mxu0 %vm310_vm2, %v1671_v42  ;;  %v1073_v42 = vsel %vm314_vm1, %v1060_v30, 0 }
  0x2e   : >> { %562 = vmatpush1.bf16.msra.mxu0 %v553_v48  ;;  %593 = vmatprep.mubr.bf16.mxu0 %v1892_v17 }
  0x2f   : >> { %1772 = vmatmul.mubr.msk.bf16.vlgmr.msra.gmra.mrb[8].mxu1 %vm310_vm2, %v531_v49  ;;  %1683 = vmatprep.subr.msk.bf16.mxu0 %vm314_vm1, %v678_v50 }
  0x30   : >> { %1776 = vmatpush3.bf16.msra.mxu1 %v689_v51  ;;  %1777 = vmatprep.mubr.msk.bf16.mxu1 %vm1891_vm0, %v1889_v11 }
  0x31   : >> { %1781 = vmatprep.subr.bf16.mxu1 %v1889_v11 }
  0x37   : >> { %1778 = vmatmul.mubr.msk.bf16.vlgmr.msra.gmra.mrb[12].mxu1 %vm310_vm2, %v1867_v55 }
  0x38   : >> { %1782 = vmatpush3.bf16.msra.mxu1 %v822_v58  ;;  %1783 = vmatprep.mubr.msk.bf16.mxu1 %vm1891_vm0, %v1889_v11 }
  0x39   : >> { %1677 = vmatmul.mubr.msk.bf16.vlgmr.msra.gmra.mrb[0].mxu0 %vm310_vm2, %v531_v49  ;;  %1787 = vmatprep.subr.bf16.mxu1 %v1889_v11 }
  0x3a   : >> { %692 = vmatpush1.bf16.msra.mxu0 %v683_v60  ;;  %723 = vmatprep.mubr.bf16.mxu0 %v1892_v17 }
  0x3b   : >> { %1689 = vmatprep.subr.msk.bf16.mxu0 %vm314_vm1, %v811_v63 }
  0x3f   : >> { %1784 = vmatmul.mubr.msk.bf16.vlgmr.msra.gmra.mrb[16].mxu1 %vm310_vm2, %v794_v12 }
  0x40   : >> { %1788 = vmatpush3.bf16.msra.mxu1 %v949_v13  ;;  %1789 = vmatprep.mubr.msk.bf16.mxu1 %vm1891_vm0, %v1889_v11 }
  0x41   : >> { %1793 = vmatprep.subr.bf16.mxu1 %v1889_v11 }
  0x45   : >> { %1684 = vmatmul.mubr.msk.bf16.vlgmr.msra.gmra.mrb[0].mxu0 %vm310_vm2, %v1867_v55 }
  0x46   : >> { %825 = vmatpush1.bf16.msra.mxu0 %v816_v20  ;;  %856 = vmatprep.mubr.bf16.mxu0 %v1892_v17 }
  0x47   : >> { %1790 = vmatmul.mubr.msk.bf16.vlgmr.msra.gmra.mrb[20].mxu1 %vm310_vm2, %v921_v22  ;;  %1695 = vmatprep.subr.msk.bf16.mxu0 %vm314_vm1, %v938_v23 }
  0x48   : >> { %1794 = vmatpush3.bf16.msra.mxu1 %v1079_v24  ;;  %1795 = vmatprep.mubr.msk.bf16.mxu1 %vm1891_vm0, %v1889_v11 }
  0x49   : >> { %1799 = vmatprep.subr.bf16.mxu1 %v1889_v11 }
  0x4f   : >> { %1796 = vmatmul.mubr.msk.bf16.vlgmr.msra.gmra.mrb[24].mxu1 %vm310_vm2, %v1870_v28 }
  0x50   : >> { %1800 = vmatpush3.bf16.msra.mxu1 %v1212_v31  ;;  %1801 = vmatprep.mubr.msk.bf16.mxu1 %vm1891_vm0, %v1889_v11 }
  0x51   : >> { %1690 = vmatmul.mubr.msk.bf16.vlgmr.msra.gmra.mrb[0].mxu0 %vm310_vm2, %v794_v12  ;;  %1805 = vmatprep.subr.bf16.mxu1 %v1889_v11 }
  0x52   : >> { %952 = vmatpush1.bf16.msra.mxu0 %v943_v33  ;;  %983 = vmatprep.mubr.bf16.mxu0 %v1892_v17 }
  0x53   : >> { %1702 = vmatprep.subr.msk.bf16.mxu0 %vm314_vm1, %v1068_v36 }
  0x57   : >> { %1802 = vmatmul.mubr.msk.bf16.vlgmr.msra.gmra.mrb[28].mxu1 %vm310_vm2, %v1184_v38 }
  0x58   : >> { %1806 = vmatpush3.bf16.msra.mxu1 %v1339_v39  ;;  %1807 = vmatprep.mubr.msk.bf16.mxu1 %vm1891_vm0, %v1889_v11  ;;  %v1333_v11 = vsel %vm314_vm1, %v1320_v45, 0 }
  0x5d   : >> { %1696 = vmatmul.mubr.msk.bf16.vlgmr.msra.gmra.mrb[0].mxu0 %vm310_vm2, %v921_v22 }
  0x5e   : >> { %1082 = vmatpush1.bf16.msra.mxu0 %v1073_v42  ;;  %1113 = vmatprep.mubr.bf16.mxu0 %v1892_v17  ;;  %v1442_v42 = vsub.s32 2, %v2006_v14 }
  0x5f   : >> { %1808 = vmatmul.mubr.msk.bf16.vlgmr.msra.gmra.mrb[32].mxu1 %vm310_vm2, %v1311_v43  ;;  %1708 = vmatprep.subr.msk.bf16.mxu0 %vm314_vm1, %v1201_v44 }
  0x69   : >> { %1703 = vmatmul.mubr.msk.bf16.vlgmr.msra.gmra.mrb[0].mxu0 %vm310_vm2, %v1870_v28 }
  0x6a   : >> { %1215 = vmatpush1.bf16.msra.mxu0 %v1206_v46  ;;  %1246 = vmatprep.mubr.bf16.mxu0 %v1892_v17 }
  0x6b   : >> { %1714 = vmatprep.subr.msk.bf16.mxu0 %vm314_vm1, %v1328_v47 }
  0x75   : >> { %1709 = vmatmul.mubr.msk.bf16.vlgmr.msra.gmra.mrb[0].mxu0 %vm310_vm2, %v1184_v38 }
  0x76   : >> { %1342 = vmatpush1.bf16.msra.mxu0 %v1333_v11  ;;  %1373 = vmatprep.mubr.bf16.mxu0 %v1892_v17 }
  0x81   : >> { %1715 = vmatmul.mubr.msk.bf16.vlgmr.msra.gmra.mrb[0].mxu0 %vm310_vm2, %v1311_v43  ;;  %v1443_v43 = vrot.slane %v1934_v0, %v1442_v42 }
  0xf2   : >> { %v401_v21 = vpop.f32.mrb[0].mxu1 }
  0xf3   : >> { %v1761_v48 = vpop.f32.mrb[1].mxu1 }
  0xf4   : >> { %v404_v49 = vpop.f32.mrb[2].mxu1 }
  0xf5   : >> { %v1762_v50 = vpop.f32.mrb[3].mxu1 }
  0xfa   : >> { %v517_v51 = vpop.f32.mrb[4].mxu1 }
  0xfb   : >> { %v518_v52 = vadd.f32 %v517_v51, %v401_v21  ;;  %v1767_v53 = vpop.f32.mrb[5].mxu1 }
  0xfc   : >> { %v520_v54 = vpop.f32.mrb[6].mxu1 }
  0xfd   : >> { %v521_v55 = vadd.f32 %v520_v54, %v404_v49  ;;  %v1768_v56 = vpop.f32.mrb[7].mxu1 }
  0xfe   : >> { %v1434_v56 = vsub.s32 0, %v2006_v14 }
 0x102   : >> { %v638_v57 = vpop.f32.mrb[8].mxu1 }
 0x103   : >> { %v647_v58 = vadd.f32 %v638_v57, %v518_v52  ;;  %v1773_v59 = vpop.f32.mrb[9].mxu1  ;;  %v1438_v57 = vsub.s32 1, %v2006_v14 }
 0x104   : >> { %v641_v60 = vpop.f32.mrb[10].mxu1 }
 0x105   : >> { %v650_v61 = vadd.f32 %v641_v60, %v521_v55  ;;  %v1774_v62 = vpop.f32.mrb[11].mxu1  ;;  %v1439_v59 = vrot.slane %v1934_v0, %v1438_v57 }
 0x10a   : >> { %v768_v63 = vpop.f32.mrb[12].mxu1 }
 0x10b   : >> { %v777_v17 = vadd.f32 %v768_v63, %v647_v58  ;;  %v1779_v10 = vpop.f32.mrb[13].mxu1  ;;  %v1435_v58 = vrot.slane %v1934_v0, %v1434_v56 }
 0x10c   : >> { %v771_v12 = vpop.f32.mrb[14].mxu1 }
 0x10d   : >> { %v780_v13 = vadd.f32 %v771_v12, %v650_v61  ;;  %v1780_v15 = vpop.f32.mrb[15].mxu1 }
 0x112   : >> { %v901_v16 = vpop.f32.mrb[16].mxu1 }
 0x113   : >> { %v910_v18 = vadd.f32 %v901_v16, %v777_v17  ;;  %v1785_v19 = vpop.f32.mrb[17].mxu1 }
 0x114   : >> { %v904_v20 = vpop.f32.mrb[18].mxu1 }
 0x115   : >> { %v913_v22 = vadd.f32 %v904_v20, %v780_v13  ;;  %v1786_v23 = vpop.f32.mrb[19].mxu1 }
 0x11a   : >> { %v1028_v24 = vpop.f32.mrb[20].mxu1 }
 0x11b   : >> { %v1037_v25 = vadd.f32 %v1028_v24, %v910_v18  ;;  %v1791_v26 = vpop.f32.mrb[21].mxu1 }
 0x11c   : >> { %v1031_v27 = vpop.f32.mrb[22].mxu1 }
 0x11d   : >> { %v1040_v28 = vadd.f32 %v1031_v27, %v913_v22  ;;  %v1792_v29 = vpop.f32.mrb[23].mxu1 }
 0x122   : >> { %v1158_v30 = vpop.f32.mrb[24].mxu1 }
 0x123   : >> { %v1167_v31 = vadd.f32 %v1158_v30, %v1037_v25  ;;  %v1797_v32 = vpop.f32.mrb[25].mxu1 }
 0x124   : >> { %v1161_v33 = vpop.f32.mrb[26].mxu1 }
 0x125   : >> { %v1170_v34 = vadd.f32 %v1161_v33, %v1040_v28  ;;  %v1798_v35 = vpop.f32.mrb[27].mxu1 }
 0x12a   : >> { %v1291_v36 = vpop.f32.mrb[28].mxu1 }
 0x12b   : >> { %v1300_v37 = vadd.f32 %v1291_v36, %v1167_v31  ;;  %v1803_v38 = vpop.f32.mrb[29].mxu1 }
 0x12c   : >> { %v1294_v39 = vpop.f32.mrb[30].mxu1 }
 0x12d   : >> { %v1303_v40 = vadd.f32 %v1294_v39, %v1170_v34  ;;  %v1804_v41 = vpop.f32.mrb[31].mxu1 }
 0x132   : >> { %v1418_v44 = vpop.f32.mrb[32].mxu1 }
 0x133   : >> { %v1427_v45 = vadd.f32 %v1418_v44, %v1300_v37  ;;  %v1809_v46 = vpop.f32.mrb[33].mxu1 }
 0x134   : >> { %v1421_v47 = vpop.f32.mrb[34].mxu1 }
 0x135   : >> { %v1449_v11 = vadd.f32 %v1443_v43, %v1427_v45  ;;  %v1430_v21 = vadd.f32 %v1421_v47, %v1303_v40  ;;  %v1810_v48 = vpop.f32.mrb[35].mxu1 }
 0x137   : >> { %vm1455_vm3 = vcmp.ge.f32.partialorder %v1449_v11, 0.0  ;;  %v1461_v49 = vmul.f32 0.01, %v1449_v11  ;;  %v1452_v50 = vadd.f32 %v1443_v43, %v1430_v21 }
 0x139   : >> { %v1467_v51 = vsel %vm1455_vm3, %v1449_v11, %v1461_v49  ;;  %vm1458_vm4 = vcmp.ge.f32.partialorder %v1452_v50, 0.0  ;;  %v1464_v52 = vmul.f32 0.01, %v1452_v50 }
 0x13a   : >> { %v1736_v53 = vpack.c.bf16 %v1467_v51, %v1467_v51 }
 0x13b   : >> { %v1470_v54 = vsel %vm1458_vm4, %v1452_v50, %v1464_v52 }
 0x13c   : >> { %1505 = vst [vmem:[%s1504_s10] sm:$0xf] %v1736_v53  ;;  %v1737_v55 = vpack.c.bf16 %v1470_v54, %v1470_v54 }
 0x13e   : >> { %1506 = vst [vmem:[%s1504_s10 + $0x4] sm:$0x7] %v1737_v55 }
 0x154   : >> { %v1375_v60 = vpop.f32.mrb[0].mxu0 }
 0x155   : >> { %v1447_v61 = vadd.f32 %v1435_v58, %v1375_v60  ;;  %v1377_v62 = vpop.f32.mrb[1].mxu0 }
 0x156   : >> { %v1448_v63 = vadd.f32 %v1439_v59, %v1377_v62  ;;  %v1379_v17 = vpop.f32.mrb[2].mxu0 }
 0x157   : >> { %vm1453_vm5 = vcmp.ge.f32.partialorder %v1447_v61, 0.0  ;;  %v1459_v10 = vmul.f32 0.01, %v1447_v61  ;;  %v1450_v12 = vadd.f32 %v1435_v58, %v1379_v17  ;;  %v1381_v13 = vpop.f32.mrb[3].mxu0 }
 0x158   : >> { %vm1454_vm6 = vcmp.ge.f32.partialorder %v1448_v63, 0.0  ;;  %v1460_v15 = vmul.f32 0.01, %v1448_v63  ;;  %v1451_v14 = vadd.f32 %v1439_v59, %v1381_v13 }
 0x159   : >> { %v1465_v16 = vsel %vm1453_vm5, %v1447_v61, %v1459_v10  ;;  %vm1456_vm7 = vcmp.ge.f32.partialorder %v1450_v12, 0.0  ;;  %v1462_v18 = vmul.f32 0.01, %v1450_v12  ;;  %273 = sbr.rel (!%p271_p4) target bundleno = 18 (0x12), region = 107 }
 0x15a   : >> { %v1730_v19 = vpack.c.bf16 %v1465_v16, %v1465_v16  ;;  %v1466_v20 = vsel %vm1454_vm6, %v1448_v63, %v1460_v15  ;;  %vm1457_vm8 = vcmp.ge.f32.partialorder %v1451_v14, 0.0  ;;  %v1463_v22 = vmul.f32 0.01, %v1451_v14 }
 0x15b   : >> { %v1733_v23 = vpack.c.bf16 %v1466_v20, %v1466_v20  ;;  %v1468_v24 = vsel %vm1456_vm7, %v1450_v12, %v1462_v18 }
 0x15c   : >> { %1483 = vst [vmem:[%s1482_s13] sm:$0xf] %v1730_v19  ;;  %v1731_v25 = vpack.c.bf16 %v1468_v24, %v1468_v24  ;;  %v1469_v26 = vsel %vm1457_vm8, %v1451_v14, %v1463_v22 }
 0x15d   : >> { %1494 = vst [vmem:[%s1493_s17] sm:$0xf] %v1733_v23  ;;  %v1734_v27 = vpack.c.bf16 %v1469_v26, %v1469_v26 }
 0x15e   : >> { %1484 = vst [vmem:[%s1482_s13 + $0x4] sm:$0x7] %v1731_v25 }
 0x15f   : >> { %1495 = vst [vmem:[%s1493_s17 + $0x4] sm:$0x7] %v1734_v27 }
 0x160 PF: > { %s16_s18 = sadd.s32 1, %s1883_s18  }
 0x161   : > { %p13_p5 = scmp.ge.s32.totalorder %s16_s18, 4  }
 0x163   :  { %15 = sbr.rel (!%p13_p5) target bundleno = 1 (0x1), region = 118 }

// kernel: non_local_block.4
= control target key start
LH: loop header
LB: loop body
LE: loop exit
PB: predicated region body
PF: predicated region fallthrough
CT: control target
= control target key end

     0   :  { %s2058_s12 = smov 0   ;;  %s2060_s13 = smov 0   ;;  %s2932_s0 = inlined_call_operand.vmem [shape: bf16[2,196,128], index: 0, kind: input, shape index: {}]   ;;  %s2933_s1 = inlined_call_operand.vmem [shape: bf16[2,196,128], index: 1, kind: input, shape index: {}]   ;;  %s2934_s2 = inlined_call_operand.vmem [shape: bf16[2,196,128], index: 2, kind: input, shape index: {}]   ;;  %s2935_s3 = inlined_call_operand.vmem [shape: bf16[2,196,128], index: 3, kind: output, shape index: {}]  }
   0x1   :  { %s2062_s14 = smov 0  }
   0x2 LB: > { %s25_s15 = sadd.s32 1, %s2030_s13  ;;  %p1662_p0 = scmp.ge.s32.totalorder %s2034_s14, 1  ;;  %s2034_s14 = sphi %s2062_s14, %s13_s14   ;;  %s2030_s13 = sphi %s2060_s13, %s2995_s13   ;;  %s2026_s12 = sphi %s2058_s12, %s2994_s12  }
   0x3   : > { %p27_p1 = scmp.ge.s32.totalorder %s25_s15, 2  ;;  %p183_p2 = scmp.lt.s32.totalorder %s2034_s14, 3 }
   0x5   : > { %s2997_s15 = smov (%p27_p1, %s25_s15), 0  ;;  %p184_p3 = pnand %p1662_p0, %p183_p2 }
   0x7   : > { %187 = sbr.rel (%p184_p3) target bundleno = 888 (0x378), region = 32 }
   0xe   : > { %p225_p4 = scmp.lt.s32.totalorder %s2026_s12, 1  ;;  %v2036_v0 = vmov 0   ;;  %vm705_vm0 = vcmask 556032   ;;  %vm695_vm1 = vcmask 1043456   ;;  %vm752_vm2 = vcmask 551936  }
   0xf   : > { %512 = vmatprep.subr.bf16.mxu0 %v2036_v0  ;;  %544 = vmatprep.mubr.bf16.mxu0 %v2036_v0  ;;  %vm1215_vm3 = vcmask 1041408  }
  0x10   : > { %s2999_s12 = smov (!%p225_p4, %s2026_s12), 1  ;;  %1219 = vmatprep.subr.bf16.mxu1 %v2036_v0 }
  0x11   : > { %s2079_s16 = smul.u32 100, %s2999_s12 }
  0x13   : > { %s2085_s19 = scalar_lea.vmem %s2933_s1, %s2079_s16  ;;  %s2095_s22 = scalar_lea.vmem %s2932_s0, %s2079_s16 }
  0x14   : > { %v1869_v1 = vld [vmem:[%s2085_s19] sm:$0xff]   ;;  %v1870_v2 = vld [vmem:[%s2085_s19 + $0x8] sm:$0xff]   ;;  %v1871_v3 = vld [vmem:[%s2085_s19 + $0x10] sm:$0xff]   ;;  %s2287_s25 = scalar_lea.vmem %s2934_s2, %s2079_s16  ;;  %s2908_s28 = scalar_lea.vmem %s2935_s3, %s2079_s16 }
  0x15   : > { %513 = vmatpush1.bf16.xpose.msra.mxu0 %v1869_v1  ;;  %v1872_v4 = vld [vmem:[%s2085_s19 + $0x18] sm:$0xff]   ;;  %v1873_v5 = vld [vmem:[%s2085_s19 + $0x20] sm:$0xff]   ;;  %v1874_v6 = vld [vmem:[%s2085_s19 + $0x28] sm:$0xff]  }
  0x16   : > { %514 = vmatprep.subr.bf16.mxu0 %v2036_v0  ;;  %v1875_v7 = vld [vmem:[%s2085_s19 + $0x30] sm:$0xff]   ;;  %v1876_v8 = vld [vmem:[%s2085_s19 + $0x38] sm:$0xff]   ;;  %v1877_v9 = vld [vmem:[%s2085_s19 + $0x40] sm:$0xff]  }
  0x17   : > { %v1878_v10 = vld [vmem:[%s2085_s19 + $0x48] sm:$0xff]   ;;  %v1879_v11 = vld [vmem:[%s2085_s19 + $0x50] sm:$0xff]   ;;  %v1880_v12 = vld [vmem:[%s2085_s19 + $0x58] sm:$0xff]  }
  0x18   : > { %v1881_v13 = vld [vmem:[%s2085_s19 + $0x60] ss:$0 sps:$4 sm:$0x33]   ;;  %v1883_v15 = vld [vmem:[%s2095_s22 + $0x8] sm:$0xff]   ;;  %v1884_v16 = vld [vmem:[%s2095_s22 + $0x10] sm:$0xff]  }
  0x19   : > { %v1882_v14 = vld [vmem:[%s2095_s22] sm:$0xff]   ;;  %v1885_v17 = vld [vmem:[%s2095_s22 + $0x18] sm:$0xff]   ;;  %v1887_v19 = vld [vmem:[%s2095_s22 + $0x28] sm:$0xff]  }
  0x1a   : > { %v1886_v18 = vld [vmem:[%s2095_s22 + $0x20] sm:$0xff]   ;;  %v1888_v20 = vld [vmem:[%s2095_s22 + $0x30] sm:$0xff]   ;;  %v1889_v21 = vld [vmem:[%s2095_s22 + $0x38] sm:$0xff]  }
  0x1b   : > { %v1890_v22 = vld [vmem:[%s2095_s22 + $0x40] sm:$0xff]   ;;  %v1891_v23 = vld [vmem:[%s2095_s22 + $0x48] sm:$0xff]   ;;  %v1892_v24 = vld [vmem:[%s2095_s22 + $0x50] sm:$0xff]  }
  0x1c   : > { %v1893_v25 = vld [vmem:[%s2095_s22 + $0x58] sm:$0xff]   ;;  %v1894_v26 = vld [vmem:[%s2095_s22 + $0x60] ss:$0 sps:$4 sm:$0x33]  }
  0x1d   : > { %515 = vmatpush1.bf16.xpose.msra.mxu0 %v1870_v2 }
  0x1e   : > { %516 = vmatprep.subr.bf16.mxu0 %v2036_v0 }
  0x25   : > { %517 = vmatpush1.bf16.xpose.msra.mxu0 %v1871_v3 }
  0x26   : > { %518 = vmatprep.subr.bf16.mxu0 %v2036_v0 }
  0x2d   : > { %519 = vmatpush1.bf16.xpose.msra.mxu0 %v1872_v4 }
  0x2e   : > { %520 = vmatprep.subr.bf16.mxu0 %v2036_v0 }
  0x35   : > { %521 = vmatpush1.bf16.xpose.msra.mxu0 %v1873_v5 }
  0x36   : > { %522 = vmatprep.subr.bf16.mxu0 %v2036_v0 }
  0x3d   : > { %523 = vmatpush1.bf16.xpose.msra.mxu0 %v1874_v6 }
  0x3e   : > { %524 = vmatprep.subr.bf16.mxu0 %v2036_v0 }
  0x45   : > { %525 = vmatpush1.bf16.xpose.msra.mxu0 %v1875_v7 }
  0x46   : > { %526 = vmatprep.subr.bf16.mxu0 %v2036_v0 }
  0x4d   : > { %527 = vmatpush1.bf16.xpose.msra.mxu0 %v1876_v8 }
  0x4e   : > { %528 = vmatprep.subr.bf16.mxu0 %v2036_v0 }
  0x55   : > { %529 = vmatpush1.bf16.xpose.msra.mxu0 %v1877_v9 }
  0x56   : > { %530 = vmatprep.subr.bf16.mxu0 %v2036_v0 }
  0x5d   : > { %531 = vmatpush1.bf16.xpose.msra.mxu0 %v1878_v10 }
  0x5e   : > { %532 = vmatprep.subr.bf16.mxu0 %v2036_v0 }
  0x65   : > { %533 = vmatpush1.bf16.xpose.msra.mxu0 %v1879_v11 }
  0x66   : > { %534 = vmatprep.subr.bf16.mxu0 %v2036_v0 }
  0x6d   : > { %535 = vmatpush1.bf16.xpose.msra.mxu0 %v1880_v12 }
  0x6e   : > { %536 = vmatprep.subr.bf16.mxu0 %v2036_v0 }
  0x75   : > { %537 = vmatpush1.bf16.xpose.msra.mxu0 %v1881_v13 }
  0x7c   : > { %545 = vmatmul.mubr.bf16.vlgmr.msra.gmra.mrb[0].mxu0 %v1882_v14 }
  0x7d   : > { %554 = vmatprep.mubr.bf16.mxu0 %v2036_v0 }
  0x84   : > { %555 = vmatmul.mubr.bf16.gmra.mrb[4].mxu0 %v1883_v15 }
  0x85   : > { %564 = vmatprep.mubr.bf16.mxu0 %v2036_v0 }
  0x8c   : > { %565 = vmatmul.mubr.bf16.gmra.mrb[8].mxu0 %v1884_v16 }
  0x8d   : > { %574 = vmatprep.mubr.bf16.mxu0 %v2036_v0 }
  0x94   : > { %575 = vmatmul.mubr.bf16.gmra.mrb[12].mxu0 %v1885_v17 }
  0x95   : > { %584 = vmatprep.mubr.bf16.mxu0 %v2036_v0 }
  0x9c   : > { %585 = vmatmul.mubr.bf16.gmra.mrb[16].mxu0 %v1886_v18 }
  0x9d   : > { %594 = vmatprep.mubr.bf16.mxu0 %v2036_v0 }
  0xa4   : > { %595 = vmatmul.mubr.bf16.gmra.mrb[20].mxu0 %v1887_v19 }
  0xa5   : > { %604 = vmatprep.mubr.bf16.mxu0 %v2036_v0 }
  0xac   : > { %605 = vmatmul.mubr.bf16.gmra.mrb[24].mxu0 %v1888_v20 }
  0xad   : > { %614 = vmatprep.mubr.bf16.mxu0 %v2036_v0 }
  0xb4   : > { %615 = vmatmul.mubr.bf16.gmra.mrb[28].mxu0 %v1889_v21 }
  0xb5   : > { %624 = vmatprep.mubr.bf16.mxu0 %v2036_v0 }
  0xbc   : > { %625 = vmatmul.mubr.bf16.gmra.mrb[32].mxu0 %v1890_v22 }
  0xbd   : > { %634 = vmatprep.mubr.bf16.mxu0 %v2036_v0 }
  0xc4   : > { %635 = vmatmul.mubr.bf16.gmra.mrb[36].mxu0 %v1891_v23 }
  0xc5   : > { %644 = vmatprep.mubr.bf16.mxu0 %v2036_v0 }
  0xcc   : > { %645 = vmatmul.mubr.bf16.gmra.mrb[40].mxu0 %v1892_v24 }
  0xcd   : > { %654 = vmatprep.mubr.bf16.mxu0 %v2036_v0 }
  0xd4   : > { %655 = vmatmul.mubr.bf16.gmra.mrb[44].mxu0 %v1893_v25 }
  0xd5   : > { %664 = vmatprep.mubr.bf16.mxu0 %v2036_v0 }
  0xdc   : > { %665 = vmatmul.mubr.bf16.gmra.mrb[48].mxu0 %v1894_v26 }
 0x14f   : > { %v2143_v27 = vpop.f32.mrb[0].mxu0 }
 0x150   : > { %v2145_v28 = vpop.f32.mrb[1].mxu0 }
 0x151   : > { %v2147_v29 = vpop.f32.mrb[2].mxu0  ;;  %v706_v34 = vsel %vm705_vm0, %v2145_v28, -inf }
 0x152   : > { %v2149_v30 = vpop.f32.mrb[3].mxu0 }
 0x153   : > { %v707_v40 = vsel %vm705_vm0, %v2149_v30, -inf }
 0x157   : > { %v2151_v31 = vpop.f32.mrb[4].mxu0 }
 0x158   : > { %v673_v32 = vmax.f32 %v2143_v27, %v2151_v31  ;;  %v2155_v33 = vpop.f32.mrb[5].mxu0 }
 0x159   : > { %v708_v35 = vsel %vm705_vm0, %v2155_v33, -inf  ;;  %v2161_v36 = vpop.f32.mrb[6].mxu0 }
 0x15a   : > { %v709_v37 = vmax.f32 %v706_v34, %v708_v35  ;;  %v674_v38 = vmax.f32 %v2147_v29, %v2161_v36  ;;  %v2165_v39 = vpop.f32.mrb[7].mxu0 }
 0x15b   : > { %v710_v41 = vsel %vm705_vm0, %v2165_v39, -inf }
 0x15c   : > { %v711_v42 = vmax.f32 %v707_v40, %v710_v41 }
 0x15f   : > { %v2171_v43 = vpop.f32.mrb[8].mxu0 }
 0x160   : > { %v675_v44 = vmax.f32 %v673_v32, %v2171_v43  ;;  %v2174_v45 = vpop.f32.mrb[9].mxu0 }
 0x161   : > { %v712_v46 = vsel %vm705_vm0, %v2174_v45, -inf  ;;  %v2178_v47 = vpop.f32.mrb[10].mxu0 }
 0x162   : > { %v713_v48 = vmax.f32 %v709_v37, %v712_v46  ;;  %v676_v49 = vmax.f32 %v674_v38, %v2178_v47  ;;  %v2181_v50 = vpop.f32.mrb[11].mxu0 }
 0x163   : > { %v714_v51 = vsel %vm705_vm0, %v2181_v50, -inf }
 0x164   : > { %v715_v52 = vmax.f32 %v711_v42, %v714_v51 }
 0x167   : > { %v2185_v53 = vpop.f32.mrb[12].mxu0 }
 0x168   : > { %v677_v54 = vmax.f32 %v675_v44, %v2185_v53  ;;  %v2188_v55 = vpop.f32.mrb[13].mxu0 }
 0x169   : > { %v716_v56 = vsel %vm705_vm0, %v2188_v55, -inf  ;;  %v2192_v57 = vpop.f32.mrb[14].mxu0 }
 0x16a   : > { %v717_v58 = vmax.f32 %v713_v48, %v716_v56  ;;  %v678_v59 = vmax.f32 %v676_v49, %v2192_v57  ;;  %v2195_v60 = vpop.f32.mrb[15].mxu0 }
 0x16b   : > { %v718_v61 = vsel %vm705_vm0, %v2195_v60, -inf }
 0x16c   : > { %v719_v62 = vmax.f32 %v715_v52, %v718_v61 }
 0x16f   : > { %v2199_v63 = vpop.f32.mrb[16].mxu0 }
 0x170   : > { %v679_v1 = vmax.f32 %v677_v54, %v2199_v63  ;;  %v2202_v2 = vpop.f32.mrb[17].mxu0 }
 0x171   : > { %v720_v3 = vsel %vm705_vm0, %v2202_v2, -inf  ;;  %v2206_v4 = vpop.f32.mrb[18].mxu0 }
 0x172   : > { %v721_v5 = vmax.f32 %v717_v58, %v720_v3  ;;  %v680_v6 = vmax.f32 %v678_v59, %v2206_v4  ;;  %v2209_v7 = vpop.f32.mrb[19].mxu0 }
 0x173   : > { %v722_v8 = vsel %vm705_vm0, %v2209_v7, -inf }
 0x174   : > { %v723_v9 = vmax.f32 %v719_v62, %v722_v8 }
 0x177   : > { %v2213_v10 = vpop.f32.mrb[20].mxu0 }
 0x178   : > { %v681_v11 = vmax.f32 %v679_v1, %v2213_v10  ;;  %v2216_v12 = vpop.f32.mrb[21].mxu0 }
 0x179   : > { %v724_v13 = vsel %vm705_vm0, %v2216_v12, -inf  ;;  %v2220_v14 = vpop.f32.mrb[22].mxu0 }
 0x17a   : > { %v725_v15 = vmax.f32 %v721_v5, %v724_v13  ;;  %v682_v16 = vmax.f32 %v680_v6, %v2220_v14  ;;  %v2223_v17 = vpop.f32.mrb[23].mxu0 }
 0x17b   : > { %v726_v18 = vsel %vm705_vm0, %v2223_v17, -inf }
 0x17c   : > { %v727_v19 = vmax.f32 %v723_v9, %v726_v18 }
 0x17f   : > { %v2227_v20 = vpop.f32.mrb[24].mxu0 }
 0x180   : > { %v683_v21 = vmax.f32 %v681_v11, %v2227_v20  ;;  %v2230_v22 = vpop.f32.mrb[25].mxu0 }
 0x181   : > { %v728_v23 = vsel %vm705_vm0, %v2230_v22, -inf  ;;  %v2234_v24 = vpop.f32.mrb[26].mxu0 }
 0x182   : > { %v729_v25 = vmax.f32 %v725_v15, %v728_v23  ;;  %v684_v26 = vmax.f32 %v682_v16, %v2234_v24  ;;  %v2237_v32 = vpop.f32.mrb[27].mxu0  ;;  %v1895_v23 = vld [vmem:[%s2287_s25] sm:$0xff]  }
 0x183   : > { %v730_v34 = vsel %vm705_vm0, %v2237_v32, -inf  ;;  %1220 = vmatpush1.bf16.msra.mxu1 %v1895_v23  ;;  %v1899_v23 = vld [vmem:[%s2287_s25 + $0x20] sm:$0xff]  }
 0x184   : > { %v731_v35 = vmax.f32 %v727_v19, %v730_v34  ;;  %1221 = vmatprep.subr.bf16.mxu1 %v2036_v0 }
 0x187   : > { %v2241_v37 = vpop.f32.mrb[28].mxu0 }
 0x188   : > { %v685_v38 = vmax.f32 %v683_v21, %v2241_v37  ;;  %v2244_v40 = vpop.f32.mrb[29].mxu0 }
 0x189   : > { %v732_v41 = vsel %vm705_vm0, %v2244_v40, -inf  ;;  %v2248_v42 = vpop.f32.mrb[30].mxu0 }
 0x18a   : > { %v733_v44 = vmax.f32 %v729_v25, %v732_v41  ;;  %v686_v46 = vmax.f32 %v684_v26, %v2248_v42  ;;  %v2251_v48 = vpop.f32.mrb[31].mxu0  ;;  %v1896_v41 = vld [vmem:[%s2287_s25 + $0x8] sm:$0xff]  }
 0x18b   : > { %v734_v49 = vsel %vm705_vm0, %v2251_v48, -inf  ;;  %1222 = vmatpush1.bf16.msra.mxu1 %v1896_v41  ;;  %v1900_v41 = vld [vmem:[%s2287_s25 + $0x28] sm:$0xff]  }
 0x18c   : > { %v735_v51 = vmax.f32 %v731_v35, %v734_v49  ;;  %1223 = vmatprep.subr.bf16.mxu1 %v2036_v0 }
 0x18f   : > { %v2255_v52 = vpop.f32.mrb[32].mxu0 }
 0x190   : > { %v687_v54 = vmax.f32 %v685_v38, %v2255_v52  ;;  %v2258_v56 = vpop.f32.mrb[33].mxu0 }
 0x191   : > { %v736_v58 = vsel %vm705_vm0, %v2258_v56, -inf  ;;  %v2262_v59 = vpop.f32.mrb[34].mxu0 }
 0x192   : > { %v737_v61 = vmax.f32 %v733_v44, %v736_v58  ;;  %v688_v62 = vmax.f32 %v686_v46, %v2262_v59  ;;  %v2265_v1 = vpop.f32.mrb[35].mxu0  ;;  %v1897_v58 = vld [vmem:[%s2287_s25 + $0x10] sm:$0xff]  }
 0x193   : > { %v738_v3 = vsel %vm705_vm0, %v2265_v1, -inf  ;;  %1224 = vmatpush1.bf16.msra.mxu1 %v1897_v58 }
 0x194   : > { %v739_v5 = vmax.f32 %v735_v51, %v738_v3  ;;  %1225 = vmatprep.subr.bf16.mxu1 %v2036_v0 }
 0x197   : > { %v2269_v6 = vpop.f32.mrb[36].mxu0 }
 0x198   : > { %v689_v8 = vmax.f32 %v687_v54, %v2269_v6  ;;  %v2272_v9 = vpop.f32.mrb[37].mxu0 }
 0x199   : > { %v740_v11 = vsel %vm705_vm0, %v2272_v9, -inf  ;;  %v2276_v13 = vpop.f32.mrb[38].mxu0 }
 0x19a   : > { %v741_v15 = vmax.f32 %v737_v61, %v740_v11  ;;  %v690_v16 = vmax.f32 %v688_v62, %v2276_v13  ;;  %v2279_v18 = vpop.f32.mrb[39].mxu0  ;;  %v1898_v11 = vld [vmem:[%s2287_s25 + $0x18] sm:$0xff]  }
 0x19b   : > { %2946 = vst [vmem:[#allocation3_spill] sm:$0xff] %v2279_v18  ;;  %v742_v19 = vsel %vm705_vm0, %v2279_v18, -inf  ;;  %1226 = vmatpush1.bf16.msra.mxu1 %v1898_v11  ;;  %v1902_v18 = vld [vmem:[%s2287_s25 + $0x38] sm:$0xff]  }
 0x19c   : > { %v743_v21 = vmax.f32 %v739_v5, %v742_v19  ;;  %1227 = vmatprep.subr.bf16.mxu1 %v2036_v0 }
 0x19f   : > { %v2290_v25 = vpop.f32.mrb[40].mxu0  ;;  %1228 = vmatpush1.bf16.msra.mxu1 %v1899_v23  ;;  %v1901_v23 = vld [vmem:[%s2287_s25 + $0x30] sm:$0xff]  }
 0x1a0   : > { %v691_v26 = vmax.f32 %v689_v8, %v2290_v25  ;;  %v2293_v34 = vpop.f32.mrb[41].mxu0  ;;  %1229 = vmatprep.subr.bf16.mxu1 %v2036_v0 }
 0x1a1   : > { %2947 = vst [vmem:[#allocation4_spill] sm:$0xff] %v2293_v34  ;;  %v744_v35 = vsel %vm705_vm0, %v2293_v34, -inf  ;;  %v2298_v38 = vpop.f32.mrb[42].mxu0 }
 0x1a2   : > { %v745_v44 = vmax.f32 %v741_v15, %v744_v35  ;;  %v692_v46 = vmax.f32 %v690_v16, %v2298_v38  ;;  %v2302_v49 = vpop.f32.mrb[43].mxu0 }
 0x1a3   : > { %2948 = vst [vmem:[#allocation5_spill] sm:$0xff] %v2302_v49  ;;  %v746_v51 = vsel %vm705_vm0, %v2302_v49, -inf  ;;  %1230 = vmatpush1.bf16.msra.mxu1 %v1900_v41 }
 0x1a4   : > { %v747_v54 = vmax.f32 %v743_v21, %v746_v51  ;;  %1231 = vmatprep.subr.bf16.mxu1 %v2036_v0 }
 0x1a7   : > { %v2308_v61 = vpop.f32.mrb[44].mxu0  ;;  %1232 = vmatpush1.bf16.msra.mxu1 %v1901_v23 }
 0x1a8   : > { %v693_v62 = vmax.f32 %v691_v26, %v2308_v61  ;;  %v2311_v3 = vpop.f32.mrb[45].mxu0  ;;  %1233 = vmatprep.subr.bf16.mxu1 %v2036_v0 }
 0x1a9   : > { %2949 = vst [vmem:[#allocation6_spill] sm:$0xff] %v2311_v3  ;;  %v748_v5 = vsel %vm705_vm0, %v2311_v3, -inf  ;;  %v2316_v8 = vpop.f32.mrb[46].mxu0 }
 0x1aa   : > { %v749_v15 = vmax.f32 %v745_v44, %v748_v5  ;;  %v694_v16 = vmax.f32 %v692_v46, %v2316_v8  ;;  %v2320_v19 = vpop.f32.mrb[47].mxu0 }
 0x1ab   : > { %2950 = vst [vmem:[#allocation7_spill] sm:$0xff] %v2320_v19  ;;  %v750_v21 = vsel %vm705_vm0, %v2320_v19, -inf  ;;  %1234 = vmatpush1.bf16.msra.mxu1 %v1902_v18 }
 0x1ac   : > { %v751_v26 = vmax.f32 %v747_v54, %v750_v21  ;;  %1235 = vmatprep.subr.bf16.mxu1 %v2036_v0 }
 0x1af   : > { %v2326_v35 = vpop.f32.mrb[48].mxu0 }
 0x1b0   : > { %v696_v44 = vsel %vm695_vm1, %v2326_v35, -inf  ;;  %v2331_v46 = vpop.f32.mrb[49].mxu0 }
 0x1b1   : > { %v697_v51 = vmax.f32 %v693_v62, %v696_v44  ;;  %v753_v54 = vsel %vm752_vm2, %v2331_v46, -inf  ;;  %v670_v58 = vpop.f32.mrb[50].mxu0 }
 0x1b2   : > { %v754_v5 = vmax.f32 %v749_v15, %v753_v54  ;;  %v671_v11 = vpop.f32.mrb[51].mxu0 }
 0x1b3   : > { %v698_v21 = vmax.f32 %v697_v51, %v694_v16  ;;  %v1903_v16 = vld [vmem:[%s2287_s25 + $0x40] sm:$0xff]  }
 0x1b4   : > { %v755_v19 = vmax.f32 %v754_v5, %v751_v26  ;;  %1236 = vmatpush1.bf16.msra.mxu1 %v1903_v16 }
 0x1b5   : > { %v699_v3 = vrot.slane %v698_v21, 4  ;;  %1237 = vmatprep.subr.bf16.mxu1 %v2036_v0 }
 0x1b6   : > { %v756_v49 = vrot.slane %v755_v19, 4 }
 0x1b7   : > { %v700_v34 = vmax.f32 %v698_v21, %v699_v3  ;;  %v1904_v3 = vld [vmem:[%s2287_s25 + $0x48] sm:$0xff]  }
 0x1b8   : > { %v757_v62 = vmax.f32 %v755_v19, %v756_v49  ;;  %1238 = vmatpush1.bf16.msra.mxu1 %v1904_v3 }
 0x1b9   : > { %v701_v44 = vrot.slane %v700_v34, 2  ;;  %1239 = vmatprep.subr.bf16.mxu1 %v2036_v0 }
 0x1ba   : > { %v758_v58 = vrot.slane %v757_v62, 2 }
 0x1bb   : > { %v702_v15 = vmax.f32 %v700_v34, %v701_v44 }
 0x1bc   : > { %v759_v51 = vmax.f32 %v757_v62, %v758_v58  ;;  %v1906_v62 = vld [vmem:[%s2287_s25 + $0x58] sm:$0xff]  }
 0x1bd   : > { %v703_v26 = vrot.slane %v702_v15, 1 }
 0x1be   : > { %v760_v41 = vrot.slane %v759_v51, 1 }
 0x1bf   : > { %v2342_v54 = vmax.f32 %v702_v15, %v703_v26  ;;  %v1907_v26 = vld [vmem:[%s2287_s25 + $0x60] ss:$0 sps:$4 sm:$0x33]  }
 0x1c0   : > { %v2345_v5 = vmax.f32 %v759_v51, %v760_v41 }
 0x1c1   : > { %v762_v49 = vsub.f32 %v2143_v27, %v2342_v54  ;;  %v764_v18 = vsub.f32 %v2147_v29, %v2342_v54  ;;  %v766_v34 = vsub.f32 %v2151_v31, %v2342_v54  ;;  %v768_v19 = vsub.f32 %v2161_v36, %v2342_v54 }
 0x1c2   : > { %v770_v11 = vsub.f32 %v2171_v43, %v2342_v54  ;;  %v772_v21 = vsub.f32 %v2178_v47, %v2342_v54  ;;  %v774_v23 = vsub.f32 %v2185_v53, %v2342_v54  ;;  %v776_v27 = vsub.f32 %v2192_v57, %v2342_v54  ;;  %v1905_v47 = vld [vmem:[%s2287_s25 + $0x50] sm:$0xff]  }
 0x1c3   : > { %v778_v29 = vsub.f32 %v2199_v63, %v2342_v54  ;;  %v780_v31 = vsub.f32 %v2206_v4, %v2342_v54  ;;  %v782_v36 = vsub.f32 %v2213_v10, %v2342_v54  ;;  %v784_v43 = vsub.f32 %v2220_v14, %v2342_v54  ;;  %1240 = vmatpush1.bf16.msra.mxu1 %v1905_v47  ;;  %v2954_v4 = vld [vmem:[#allocation6_spill] sm:$0xff] }
 0x1c4   : > { %v786_v53 = vsub.f32 %v2227_v20, %v2342_v54  ;;  %v788_v57 = vsub.f32 %v2234_v24, %v2342_v54  ;;  %v790_v63 = vsub.f32 %v2241_v37, %v2342_v54  ;;  %v810_v58 = vsub.f32 %v2326_v35, %v2342_v54  ;;  %1241 = vmatprep.subr.bf16.mxu1 %v2036_v0 }
 0x1c5   : > { %v812_v44 = vmul.f32 1.442695, %v762_v49  ;;  %v816_v15 = vmul.f32 1.442695, %v764_v18  ;;  %v820_v16 = vmul.f32 1.442695, %v766_v34  ;;  %v765_v34 = vsub.f32 %v2149_v30, %v2345_v5 }
 0x1c6   : > { %v824_v41 = vmul.f32 1.442695, %v768_v19  ;;  %v828_v3 = vmul.f32 1.442695, %v770_v11  ;;  %v1217_v49 = vsel %vm1215_vm3, %v1907_v26, 0  ;;  %v767_v51 = vsub.f32 %v2155_v33, %v2345_v5  ;;  %v2955_v30 = vld [vmem:[#allocation7_spill] sm:$0xff] }
 0x1c7   : > { %1908 = vpow2.f32 %v812_v44  ;;  %1242 = vmatpush1.bf16.msra.mxu1 %v1906_v62  ;;  %v832_v18 = vmul.f32 1.442695, %v772_v21  ;;  %v836_v47 = vmul.f32 1.442695, %v774_v23  ;;  %v769_v19 = vsub.f32 %v2165_v39, %v2345_v5 }
 0x1c8   : > { %1910 = vpow2.f32 %v816_v15  ;;  %1243 = vmatprep.subr.bf16.mxu1 %v2036_v0  ;;  %v771_v11 = vsub.f32 %v2174_v45, %v2345_v5  ;;  %v773_v0 = vsub.f32 %v2181_v50, %v2345_v5  ;;  %v840_v62 = vmul.f32 1.442695, %v776_v27 }
 0x1c9   : > { %1912 = vpow2.f32 %v820_v16  ;;  %v844_v15 = vmul.f32 1.442695, %v778_v29  ;;  %v848_v16 = vmul.f32 1.442695, %v780_v31  ;;  %v2953_v29 = vld [vmem:[#allocation5_spill] sm:$0xff]  ;;  %v2956_v24 = vsub.f32 %v2145_v28, %v2345_v5 }
 0x1ca   : > { %1914 = vpow2.f32 %v824_v41  ;;  %v809_v41 = vsub.f32 %v2955_v30, %v2345_v5  ;;  %v856_v39 = vmul.f32 1.442695, %v784_v43  ;;  %v860_v44 = vmul.f32 1.442695, %v786_v53 }
 0x1cb   : > { %1244 = vmatpush1.bf16.msra.mxu1 %v1217_v49  ;;  %1916 = vpow2.f32 %v828_v3  ;;  %v868_v14 = vmul.f32 1.442695, %v790_v63  ;;  %v908_v43 = vmul.f32 1.442695, %v810_v58  ;;  %v822_v63 = vmul.f32 1.442695, %v767_v51 }
 0x1cc   : > { %1918 = vpow2.f32 %v832_v18  ;;  %v2952_v18 = vld [vmem:[#allocation4_spill] sm:$0xff]  ;;  %v826_v58 = vmul.f32 1.442695, %v769_v19  ;;  %v2958_v51 = vsub.f32 %v2255_v52, %v2342_v54  ;;  %v2959_v45 = vsub.f32 %v2262_v59, %v2342_v54 }
 0x1cd   : > { %1920 = vpow2.f32 %v836_v47  ;;  %v2951_v47 = vld [vmem:[#allocation3_spill] sm:$0xff]  ;;  %v803_v23 = vsub.f32 %v2952_v18, %v2345_v5  ;;  %v2961_v50 = vsub.f32 %v2269_v6, %v2342_v54 }
 0x1ce   : > { %1922 = vpow2.f32 %v840_v62  ;;  %v852_v62 = vmul.f32 1.442695, %v782_v36  ;;  %v876_v19 = vmul.f32 1.442695, %v2958_v51 }
 0x1cf   : > { %1924 = vpow2.f32 %v844_v15  ;;  %v864_v15 = vmul.f32 1.442695, %v788_v57  ;;  %v814_v57 = vmul.f32 1.442695, %v2956_v24 }
 0x1d0   : > { %1926 = vpow2.f32 %v848_v16  ;;  %v818_v16 = vmul.f32 1.442695, %v765_v34  ;;  %v830_v34 = vmul.f32 1.442695, %v771_v11  ;;  %v880_v11 = vmul.f32 1.442695, %v2959_v45 }
 0x1d1   : > { %v2428_v27 = vpop.eup %1908  ;;  %1928 = vpow2.f32 %v852_v62 }
 0x1d2   : > { %v2436_v3 = vpop.eup %1910  ;;  %1930 = vpow2.f32 %v856_v39 }
 0x1d3   : > { %v912_v26 = vadd.f32 %v2436_v3, %v2428_v27  ;;  %v2453_v49 = vpop.eup %1912  ;;  %1932 = vpow2.f32 %v860_v44  ;;  %v2957_v44 = vsub.f32 %v2248_v42, %v2342_v54  ;;  %v834_v42 = vmul.f32 1.442695, %v773_v0 }
 0x1d4   : > { %v2466_v21 = vpop.eup %1914  ;;  %1934 = vpow2.f32 %v864_v15  ;;  %v884_v0 = vmul.f32 1.442695, %v2961_v50 }
 0x1d5   : > { %v913_v33 = vadd.f32 %v2453_v49, %v912_v26  ;;  %v2475_v26 = vpop.eup %1916  ;;  %1936 = vpow2.f32 %v868_v14 }
 0x1d6   : > { %v2484_v36 = vpop.eup %1918  ;;  %1938 = vpow2.f32 %v908_v43  ;;  %v2960_v43 = vsub.f32 %v2188_v55, %v2345_v5  ;;  %v2963_v55 = vsub.f32 %v2276_v13, %v2342_v54 }
 0x1d7   : > { %v914_v31 = vadd.f32 %v2466_v21, %v913_v33  ;;  %v2493_v53 = vpop.eup %1920  ;;  %1940 = vpow2.f32 %v814_v57 }
 0x1d8   : > { %v2499_v37 = vpop.eup %1922  ;;  %1942 = vpow2.f32 %v818_v16 }
 0x1d9   : > { %v915_v10 = vadd.f32 %v2475_v26, %v914_v31  ;;  %v2502_v39 = vpop.eup %1924  ;;  %v872_v31 = vmul.f32 1.442695, %v2957_v44  ;;  %1944 = vpow2.f32 %v822_v63  ;;  %v2964_v44 = vsub.f32 %v2202_v2, %v2345_v5 }
 0x1da   : > { %v2511_v62 = vpop.eup %1926  ;;  %1946 = vpow2.f32 %v826_v58  ;;  %v2966_v2 = vsub.f32 %v2209_v7, %v2345_v5  ;;  %v2968_v7 = vsub.f32 %v2216_v12, %v2345_v5  ;;  %v2970_v12 = vsub.f32 %v2223_v17, %v2345_v5 }
 0x1db   : > { %v916_v20 = vadd.f32 %v2484_v36, %v915_v10  ;;  %v2520_v10 = vpop.eup %1928  ;;  %1948 = vpow2.f32 %v872_v31  ;;  %v846_v31 = vmul.f32 1.442695, %v2964_v44  ;;  %v2972_v17 = vsub.f32 %v2230_v22, %v2345_v5 }
 0x1dc   : > { %v2525_v14 = vpop.eup %1930  ;;  %1950 = vpow2.f32 %v830_v34  ;;  %v854_v50 = vmul.f32 1.442695, %v2968_v7 }
 0x1dd   : > { %v917_v33 = vadd.f32 %v2493_v53, %v916_v20  ;;  %v838_v20 = vmul.f32 1.442695, %v2960_v43  ;;  %v2531_v24 = vpop.eup %1932  ;;  %1952 = vpow2.f32 %v876_v19 }
 0x1de   : > { %v2536_v57 = vpop.eup %1934  ;;  %1954 = vpow2.f32 %v834_v42 }
 0x1df   : > { %v918_v35 = vadd.f32 %v2499_v37, %v917_v33  ;;  %v2962_v33 = vsub.f32 %v2195_v60, %v2345_v5  ;;  %v2542_v63 = vpop.eup %1936  ;;  %1956 = vpow2.f32 %v880_v11  ;;  %v2965_v60 = vsub.f32 %v2290_v25, %v2342_v54 }
 0x1e0   : > { %v2547_v58 = vpop.eup %1938  ;;  %1958 = vpow2.f32 %v838_v20  ;;  %v2967_v25 = vsub.f32 %v2298_v38, %v2342_v54  ;;  %v2969_v38 = vsub.f32 %v2308_v61, %v2342_v54  ;;  %v2971_v61 = vsub.f32 %v2316_v8, %v2342_v54 }
 0x1e1   : > { %v919_v28 = vadd.f32 %v2502_v39, %v918_v35  ;;  %v842_v16 = vmul.f32 1.442695, %v2962_v33  ;;  %v888_v35 = vmul.f32 1.442695, %v2963_v55  ;;  %1960 = vpow2.f32 %v884_v0 }
 0x1e2   : > { %v892_v34 = vmul.f32 1.442695, %v2965_v60  ;;  %v2560_v13 = vsel %vm695_vm1, %v2547_v58, 0.0  ;;  %v896_v11 = vmul.f32 1.442695, %v2967_v25 }
 0x1e3   : > { %v920_v15 = vadd.f32 %v2511_v62, %v919_v28  ;;  %v2553_v28 = vpop.eup %1940  ;;  %1962 = vpow2.f32 %v842_v16  ;;  %v900_v33 = vmul.f32 1.442695, %v2969_v38  ;;  %v904_v60 = vmul.f32 1.442695, %v2971_v61 }
 0x1e4   : > { %v2562_v51 = vpop.eup %1942  ;;  %v943_v42 = vsel %vm705_vm0, %v2553_v28, 0.0  ;;  %1964 = vpow2.f32 %v888_v35  ;;  %v2975_v61 = vsub.f32 %v2251_v48, %v2345_v5 }
 0x1e5   : > { %v921_v52 = vadd.f32 %v2520_v10, %v920_v15  ;;  %v850_v15 = vmul.f32 1.442695, %v2966_v2  ;;  %v2570_v45 = vpop.eup %1944  ;;  %1966 = vpow2.f32 %v846_v31 }
 0x1e6   : > { %v2577_v43 = vpop.eup %1946  ;;  %1968 = vpow2.f32 %v892_v34  ;;  %v946_v16 = vsel %vm705_vm0, %v2570_v45, 0.0 }
 0x1e7   : > { %v922_v59 = vadd.f32 %v2525_v14, %v921_v52  ;;  %v944_v52 = vsel %vm705_vm0, %v2562_v51, 0.0  ;;  %1970 = vpow2.f32 %v850_v15  ;;  %v948_v34 = vsel %vm705_vm0, %v2577_v43, 0.0 }
 0x1e8   : > { %v945_v0 = vadd.f32 %v944_v52, %v943_v42  ;;  %1972 = vpow2.f32 %v896_v11  ;;  %v862_v15 = vmul.f32 1.442695, %v2972_v17  ;;  %v2973_v52 = vsub.f32 %v2237_v32, %v2345_v5 }
 0x1e9   : > { %v923_v6 = vadd.f32 %v2531_v24, %v922_v59  ;;  %v2583_v59 = vpop.eup %1948  ;;  %1974 = vpow2.f32 %v854_v50 }
 0x1ea   : > { %v2590_v55 = vpop.eup %1950  ;;  %v947_v44 = vadd.f32 %v946_v16, %v945_v0  ;;  %1976 = vpow2.f32 %v900_v33  ;;  %v2974_v33 = vsub.f32 %v2244_v40, %v2345_v5 }
 0x1eb   : > { %v924_v19 = vadd.f32 %v2536_v57, %v923_v6  ;;  %v858_v6 = vmul.f32 1.442695, %v2970_v12  ;;  %v2596_v31 = vpop.eup %1952  ;;  %v950_v8 = vsel %vm705_vm0, %v2590_v55, 0.0 }
 0x1ec   : > { %v949_v42 = vadd.f32 %v948_v34, %v947_v44  ;;  %v870_v16 = vmul.f32 1.442695, %v2974_v33 }
 0x1ed   : > { %v925_v20 = vadd.f32 %v2542_v63, %v924_v19  ;;  %v2603_v19 = vpop.eup %1954  ;;  %1978 = vpow2.f32 %v858_v6 }
 0x1ee   : > { %v2609_v25 = vpop.eup %1956  ;;  %v951_v7 = vadd.f32 %v950_v8, %v949_v42  ;;  %1980 = vpow2.f32 %v904_v60  ;;  %v952_v22 = vsel %vm705_vm0, %v2603_v19, 0.0  ;;  %v874_v60 = vmul.f32 1.442695, %v2975_v61 }
 0x1ef   : > { %v926_v35 = vadd.f32 %v2583_v59, %v925_v20  ;;  %v2613_v54 = vpop.eup %1958  ;;  %v866_v20 = vmul.f32 1.442695, %v2973_v52  ;;  %1982 = vpow2.f32 %v862_v15  ;;  %v2976_v42 = vsub.f32 %v2258_v56, %v2345_v5 }
 0x1f0   : > { %v2619_v50 = vpop.eup %1960  ;;  %v954_v32 = vsel %vm705_vm0, %v2613_v54, 0.0 }
 0x1f1   : > { %v927_v2 = vadd.f32 %v2596_v31, %v926_v35  ;;  %v2623_v0 = vpop.eup %1962  ;;  %v953_v35 = vadd.f32 %v952_v22, %v951_v7  ;;  %1984 = vpow2.f32 %v866_v20  ;;  %v878_v8 = vmul.f32 1.442695, %v2976_v42 }
 0x1f2   : > { %v2629_v12 = vpop.eup %1964  ;;  %v956_v40 = vsel %vm705_vm0, %v2623_v0, 0.0  ;;  %1986 = vpow2.f32 %v870_v16  ;;  %v2977_v22 = vsub.f32 %v2265_v1, %v2345_v5  ;;  %v2979_v42 = vsub.f32 %v2951_v47, %v2345_v5 }
 0x1f3   : > { %v928_v11 = vadd.f32 %v2609_v25, %v927_v2  ;;  %v2633_v6 = vpop.eup %1966  ;;  %v955_v34 = vadd.f32 %v954_v32, %v953_v35  ;;  %1988 = vpow2.f32 %v874_v60 }
 0x1f4   : > { %v2639_v2 = vpop.eup %1968  ;;  %v958_v48 = vsel %vm705_vm0, %v2633_v6, 0.0  ;;  %1990 = vpow2.f32 %v878_v8 }
 0x1f5   : > { %v929_v38 = vadd.f32 %v2619_v50, %v928_v11  ;;  %v2643_v17 = vpop.eup %1970  ;;  %v957_v11 = vadd.f32 %v956_v40, %v955_v34 }
 0x1f6   : > { %v2649_v52 = vpop.eup %1972  ;;  %v960_v56 = vsel %vm705_vm0, %v2643_v17, 0.0 }
 0x1f7   : > { %v930_v44 = vadd.f32 %v2629_v12, %v929_v38  ;;  %v2653_v20 = vpop.eup %1974  ;;  %v882_v38 = vmul.f32 1.442695, %v2977_v22  ;;  %v959_v33 = vadd.f32 %v958_v48, %v957_v11  ;;  %v890_v11 = vmul.f32 1.442695, %v2979_v42 }
 0x1f8   : > { %v2659_v16 = vpop.eup %1976  ;;  %v962_v1 = vsel %vm705_vm0, %v2653_v20, 0.0  ;;  %v894_v22 = vmul.f32 1.442695, %v803_v23  ;;  %v2981_v23 = vsub.f32 %v2954_v4, %v2345_v5 }
 0x1f9   : > { %v931_v15 = vadd.f32 %v2639_v2, %v930_v44  ;;  %v2663_v35 = vpop.eup %1978  ;;  %v2978_v44 = vsub.f32 %v2272_v9, %v2345_v5  ;;  %v961_v60 = vadd.f32 %v960_v56, %v959_v33  ;;  %1992 = vpow2.f32 %v882_v38 }
 0x1fa   : > { %v2669_v34 = vpop.eup %1980  ;;  %v964_v9 = vsel %vm705_vm0, %v2663_v35, 0.0 }
 0x1fb   : > { %v932_v7 = vadd.f32 %v2649_v52, %v931_v15  ;;  %v886_v61 = vmul.f32 1.442695, %v2978_v44  ;;  %v2673_v40 = vpop.eup %1982  ;;  %v963_v8 = vadd.f32 %v962_v1, %v961_v60  ;;  %v902_v1 = vmul.f32 1.442695, %v2981_v23 }
 0x1fc   : > { %v2681_v48 = vpop.eup %1984  ;;  %v966_v38 = vsel %vm705_vm0, %v2673_v40, 0.0 }
 0x1fd   : > { %v933_v32 = vadd.f32 %v2659_v16, %v932_v7  ;;  %1994 = vpow2.f32 %v886_v61  ;;  %v965_v33 = vadd.f32 %v964_v9, %v963_v8  ;;  %v2689_v56 = vpop.eup %1986  ;;  %v906_v8 = vmul.f32 1.442695, %v809_v41 }
 0x1fe   : > { %1996 = vpow2.f32 %v890_v11  ;;  %v2696_v61 = vpop.eup %1988  ;;  %v970_v42 = vsel %vm705_vm0, %v2689_v56, 0.0 }
 0x1ff   : > { %v934_v15 = vadd.f32 %v2669_v34, %v933_v32  ;;  %v2980_v32 = vsub.f32 %v2953_v29, %v2345_v5  ;;  %v967_v60 = vadd.f32 %v966_v38, %v965_v33  ;;  %1998 = vpow2.f32 %v894_v22  ;;  %v2703_v11 = vpop.eup %1990 }
 0x200   : > { %v2982_v33 = vsub.f32 %v2331_v46, %v2345_v5 }
 0x201   : > { %v936_v7 = vadd.f32 %v2560_v13, %v934_v15  ;;  %v898_v44 = vmul.f32 1.442695, %v2980_v32  ;;  %v968_v13 = vsel %vm705_vm0, %v2681_v48, 0.0  ;;  %v974_v32 = vsel %vm705_vm0, %v2703_v11, 0.0 }
 0x202   : > { %v969_v15 = vadd.f32 %v968_v13, %v967_v60  ;;  %v910_v38 = vmul.f32 1.442695, %v2982_v33 }
 0x203   : > { %v937_v47 = vrot.slane %v936_v7, 4  ;;  %2000 = vpow2.f32 %v898_v44  ;;  %v2710_v22 = vpop.eup %1992 }
 0x204   : > { %v971_v9 = vadd.f32 %v970_v42, %v969_v15  ;;  %2002 = vpow2.f32 %v902_v1  ;;  %v976_v60 = vsel %vm705_vm0, %v2710_v22, 0.0 }
 0x205   : > { %v938_v18 = vadd.f32 %v937_v47, %v936_v7  ;;  %v972_v7 = vsel %vm705_vm0, %v2696_v61, 0.0  ;;  %2004 = vpow2.f32 %v906_v8 }
 0x206   : > { %v973_v47 = vadd.f32 %v972_v7, %v971_v9  ;;  %2006 = vpow2.f32 %v910_v38 }
 0x207   : > { %v939_v29 = vrot.slane %v938_v18, 2  ;;  %v2717_v44 = vpop.eup %1994 }
 0x208   : > { %v975_v41 = vadd.f32 %v974_v32, %v973_v47  ;;  %v2721_v13 = vpop.eup %1996  ;;  %v978_v46 = vsel %vm705_vm0, %v2717_v44, 0.0 }
 0x209   : > { %v940_v4 = vadd.f32 %v939_v29, %v938_v18  ;;  %v2725_v5 = vpop.eup %1998  ;;  %v980_v15 = vsel %vm705_vm0, %v2721_v13, 0.0 }
 0x20a   : > { %v977_v23 = vadd.f32 %v976_v60, %v975_v41  ;;  %v982_v8 = vsel %vm705_vm0, %v2725_v5, 0.0 }
 0x20b   : > { %v941_v30 = vrot.slane %v940_v4, 1 }
 0x20c   : > { %v979_v1 = vadd.f32 %v978_v46, %v977_v23  ;;  %v2037_v46 = vmov 0.0  }
 0x20d   : > { %v942_v18 = vadd.f32 %v941_v30, %v940_v4  ;;  %v2729_v42 = vpop.eup %2000  ;;  %284 = vst [vmem:[#allocation2 + $0xc0] sm:$0xf] %v2037_v46 }
 0x20e   : > { %v981_v29 = vadd.f32 %v980_v15, %v979_v1  ;;  %v2733_v9 = vpop.eup %2002  ;;  %v984_v4 = vsel %vm705_vm0, %v2729_v42, 0.0 }
 0x20f   : > { %2008 = vrcp.f32 %v942_v18  ;;  %v2737_v33 = vpop.eup %2004  ;;  %v986_v47 = vsel %vm705_vm0, %v2733_v9, 0.0 }
 0x210   : > { %v983_v7 = vadd.f32 %v982_v8, %v981_v29  ;;  %v2741_v32 = vpop.eup %2006  ;;  %v988_v41 = vsel %vm705_vm0, %v2737_v33, 0.0 }
 0x211   : > { %v990_v23 = vsel %vm752_vm2, %v2741_v32, 0.0 }
 0x212   : > { %v985_v38 = vadd.f32 %v984_v4, %v983_v7 }
 0x214   : > { %v987_v30 = vadd.f32 %v986_v47, %v985_v38 }
 0x216   : > { %v989_v18 = vadd.f32 %v988_v41, %v987_v30 }
 0x218   : > { %v991_v1 = vadd.f32 %v990_v23, %v989_v18 }
 0x219   : > { %v2009_v60 = vpop.eup %2008 }
 0x21a   : > { %v2748_v15 = vmul.f32 %v2009_v60, %v2475_v26  ;;  %v2751_v29 = vmul.f32 %v2009_v60, %v2484_v36  ;;  %v2754_v8 = vmul.f32 %v2009_v60, %v2493_v53  ;;  %v2757_v7 = vmul.f32 %v2009_v60, %v2499_v37 }
 0x21b   : > { %v2760_v4 = vmul.f32 %v2009_v60, %v2502_v39  ;;  %v992_v38 = vrot.slane %v991_v1, 4  ;;  %v2765_v30 = vmul.f32 %v2009_v60, %v2511_v62  ;;  %v2768_v26 = vmul.f32 %v2009_v60, %v2520_v10 }
 0x21c   : > { %v2773_v53 = vmul.f32 %v2009_v60, %v2525_v14  ;;  %v2776_v37 = vmul.f32 %v2009_v60, %v2531_v24  ;;  %v2779_v39 = vmul.f32 %v2009_v60, %v2536_v57  ;;  %v2784_v18 = vmul.f32 %v2009_v60, %v2542_v63 }
 0x21d   : > { %v993_v41 = vadd.f32 %v992_v38, %v991_v1  ;;  %v2787_v10 = vmul.f32 %v2009_v60, %v2583_v59  ;;  %v2794_v23 = vmul.f32 %v2009_v60, %v2596_v31  ;;  %v2797_v57 = vmul.f32 %v2009_v60, %v2609_v25 }
 0x21e   : > { %v2802_v1 = vmul.f32 %v2009_v60, %v2619_v50  ;;  %v2805_v59 = vmul.f32 %v2009_v60, %v2629_v12  ;;  %v2810_v24 = vmul.f32 %v2009_v60, %v2639_v2  ;;  %v2813_v31 = vmul.f32 %v2009_v60, %v2649_v52 }
 0x21f   : > { %v994_v46 = vrot.slane %v993_v41, 2  ;;  %v2816_v25 = vmul.f32 %v2009_v60, %v2659_v16  ;;  %v2821_v63 = vmul.f32 %v2009_v60, %v2669_v34  ;;  %v2824_v12 = vmul.f32 %v2009_v60, %v2547_v58 }
 0x221   : > { %v995_v14 = vadd.f32 %v994_v46, %v993_v41  ;;  %2983 = vst [vmem:[#allocation3_spill] sm:$0xff] %v2824_v12  ;;  %v1097_v52 = vpack.c.bf16 %v2821_v63, %v2816_v25  ;;  %v1000_v41 = vmul.f32 %v2009_v60, %v2428_v27  ;;  %v1002_v46 = vmul.f32 %v2009_v60, %v2436_v3 }
 0x222   : > { %v1004_v12 = vmul.f32 %v2009_v60, %v2453_v49 }
 0x223   : > { %v996_v38 = vrot.slane %v995_v14, 1  ;;  %v1075_v47 = vpack.c.bf16 %v1002_v46, %v1000_v41 }
 0x225   : > { %v997_v62 = vadd.f32 %v996_v38, %v995_v14  ;;  %v1006_v14 = vmul.f32 %v2009_v60, %v2466_v21 }
 0x227   : > { %2010 = vrcp.f32 %v997_v62 }
 0x231   : > { %v2011_v16 = vpop.eup %2010 }
 0x232   : > { %v1001_v34 = vmul.f32 %v2011_v16, %v2553_v28  ;;  %v1003_v50 = vmul.f32 %v2011_v16, %v2562_v51  ;;  %v1005_v58 = vmul.f32 %v2011_v16, %v2570_v45  ;;  %v1007_v36 = vmul.f32 %v2011_v16, %v2577_v43 }
 0x233   : > { %v1025_v27 = vmul.f32 %v2011_v16, %v2673_v40  ;;  %v1027_v3 = vmul.f32 %v2011_v16, %v2681_v48  ;;  %v1029_v28 = vmul.f32 %v2011_v16, %v2689_v56  ;;  %v1009_v51 = vmul.f32 %v2011_v16, %v2590_v55 }
 0x234   : > { %v1076_v2 = vpack.c.bf16 %v1003_v50, %v1001_v34  ;;  %v1078_v62 = vpack.c.bf16 %v1007_v36, %v1005_v58  ;;  %v1031_v45 = vmul.f32 %v2011_v16, %v2696_v61  ;;  %v1033_v43 = vmul.f32 %v2011_v16, %v2703_v11 }
 0x235   : > { %v1035_v49 = vmul.f32 %v2011_v16, %v2710_v22  ;;  %v1088_v21 = vpack.c.bf16 %v1027_v3, %v1025_v27  ;;  %v1037_v60 = vmul.f32 %v2011_v16, %v2717_v44  ;;  %v1039_v40 = vmul.f32 %v2011_v16, %v2721_v13 }
 0x236   : > { %1706 = vmatprep.mubr.msk.bf16.mxu1 %vm705_vm0, %v1076_v2  ;;  %v1041_v48 = vmul.f32 %v2011_v16, %v2725_v5  ;;  %v1090_v36 = vpack.c.bf16 %v1031_v45, %v1029_v28  ;;  %v1045_v55 = vmul.f32 %v2011_v16, %v2733_v9  ;;  %v1011_v61 = vmul.f32 %v2011_v16, %v2603_v19 }
 0x237   : > { %1252 = vmatmul.mubr.bf16.vlgmr.msra.gmra.mrb[0].mxu1 %v1075_v47  ;;  %v1092_v56 = vpack.c.bf16 %v1035_v49, %v1033_v43  ;;  %v1043_v47 = vmul.f32 %v2011_v16, %v2729_v42  ;;  %v1094_v11 = vpack.c.bf16 %v1039_v40, %v1037_v60  ;;  %v1047_v22 = vmul.f32 %v2011_v16, %v2737_v33 }
 0x238   : > { %1707 = vmatprep.mubr.msk.bf16.mxu1 %vm705_vm0, %v1078_v62  ;;  %v1049_v38 = vmul.f32 %v2011_v16, %v2741_v32  ;;  %v1077_v44 = vpack.c.bf16 %v1006_v14, %v1004_v12  ;;  %v1080_v41 = vpack.c.bf16 %v1011_v61, %v1009_v51  ;;  %v1013_v13 = vmul.f32 %v2011_v16, %v2613_v54 }
 0x239   : > { %v1096_v50 = vpack.c.bf16 %v1043_v47, %v1041_v48  ;;  %v1098_v2 = vpack.c.bf16 %v1047_v22, %v1045_v55  ;;  %v1015_v5 = vmul.f32 %v2011_v16, %v2623_v0  ;;  %v2984_v19 = vpack.c.bf16 %v2751_v29, %v2748_v15 }
 0x23a   : > { %v1017_v9 = vmul.f32 %v2011_v16, %v2633_v6  ;;  %v1019_v33 = vmul.f32 %v2011_v16, %v2643_v17  ;;  %v2985_v12 = vpack.c.bf16 %v2757_v7, %v2754_v8  ;;  %v1021_v54 = vmul.f32 %v2011_v16, %v2653_v20 }
 0x23b   : > { %v1082_v42 = vpack.c.bf16 %v1015_v5, %v1013_v13  ;;  %v1023_v0 = vmul.f32 %v2011_v16, %v2663_v35  ;;  %v2986_v15 = vpack.c.bf16 %v2765_v30, %v2760_v4  ;;  %v2987_v6 = vpack.c.bf16 %v2773_v53, %v2768_v26  ;;  %v2993_v4 = vld [vmem:[#allocation3_spill] sm:$0xff] }
 0x23c   : > { %v1084_v32 = vpack.c.bf16 %v1019_v33, %v1017_v9  ;;  %v2988_v17 = vpack.c.bf16 %v2779_v39, %v2776_v37  ;;  %v2989_v20 = vpack.c.bf16 %v2787_v10, %v2784_v18  ;;  %v2990_v35 = vpack.c.bf16 %v2797_v57, %v2794_v23 }
 0x23d   : > { %v1086_v46 = vpack.c.bf16 %v1023_v0, %v1021_v54  ;;  %v2991_v29 = vpack.c.bf16 %v2805_v59, %v2802_v1  ;;  %v2992_v8 = vpack.c.bf16 %v2813_v31, %v2810_v24  ;;  %v1100_v7 = vpack.c.bf16 %v1049_v38, %v1049_v38 }
 0x23e   : > { %v1099_v30 = vpack.c.bf16 %v2993_v4, %v2993_v4 }
 0x23f   : > { %1260 = vmatmul.mubr.bf16.gmra.mrb[4].mxu1 %v1077_v44 }
 0x240   : > { %1708 = vmatprep.mubr.msk.bf16.mxu1 %vm705_vm0, %v1080_v41 }
 0x247   : > { %1268 = vmatmul.mubr.bf16.gmra.mrb[8].mxu1 %v2984_v19 }
 0x248   : > { %1709 = vmatprep.mubr.msk.bf16.mxu1 %vm705_vm0, %v1082_v42 }
 0x24f   : > { %1276 = vmatmul.mubr.bf16.gmra.mrb[12].mxu1 %v2985_v12 }
 0x250   : > { %1710 = vmatprep.mubr.msk.bf16.mxu1 %vm705_vm0, %v1084_v32 }
 0x257   : > { %1284 = vmatmul.mubr.bf16.gmra.mrb[16].mxu1 %v2986_v15 }
 0x258   : > { %1711 = vmatprep.mubr.msk.bf16.mxu1 %vm705_vm0, %v1086_v46 }
 0x25f   : > { %1292 = vmatmul.mubr.bf16.gmra.mrb[20].mxu1 %v2987_v6 }
 0x260   : > { %1712 = vmatprep.mubr.msk.bf16.mxu1 %vm705_vm0, %v1088_v21 }
 0x267   : > { %1300 = vmatmul.mubr.bf16.gmra.mrb[24].mxu1 %v2988_v17 }
 0x268   : > { %1713 = vmatprep.mubr.msk.bf16.mxu1 %vm705_vm0, %v1090_v36 }
 0x26f   : > { %1308 = vmatmul.mubr.bf16.gmra.mrb[28].mxu1 %v2989_v20 }
 0x270   : > { %1714 = vmatprep.mubr.msk.bf16.mxu1 %vm705_vm0, %v1092_v56 }
 0x277   : > { %1316 = vmatmul.mubr.bf16.gmra.mrb[32].mxu1 %v2990_v35 }
 0x278   : > { %1715 = vmatprep.mubr.msk.bf16.mxu1 %vm705_vm0, %v1094_v11 }
 0x27f   : > { %1324 = vmatmul.mubr.bf16.gmra.mrb[36].mxu1 %v2991_v29 }
 0x280   : > { %1716 = vmatprep.mubr.msk.bf16.mxu1 %vm705_vm0, %v1096_v50 }
 0x287   : > { %1332 = vmatmul.mubr.bf16.gmra.mrb[40].mxu1 %v2992_v8  ;;  %v1074_v8 = vld [vmem:[#allocation2 + $0xc0] sm:$0xf] }
 0x288   : > { %1717 = vmatprep.mubr.msk.bf16.mxu1 %vm705_vm0, %v1098_v2 }
 0x28f   : > { %1340 = vmatmul.mubr.bf16.gmra.mrb[44].mxu1 %v1097_v52 }
 0x290   : > { %1718 = vmatprep.mubr.msk.bf16.mxu1 %vm705_vm0, %v1100_v7 }
 0x297   : > { %1348 = vmatmul.mubr.bf16.gmra.mrb[48].mxu1 %v1099_v30 }
 0x30a   : > { %v1253_v26 = vpop.f32.mrb[0].mxu1 }
 0x30b   : > { %v1255_v53 = vpop.f32.mrb[1].mxu1 }
 0x30c   : > { %v1256_v37 = vpop.f32.mrb[2].mxu1 }
 0x30d   : > { %v1258_v39 = vpop.f32.mrb[3].mxu1  ;;  %v1774_v18 = vpack.c.bf16 %v1256_v37, %v1253_v26 }
 0x30f   : > { %1775 = vst [vmem:[%s2908_s28] sm:$0xff] %v1774_v18  }
 0x312   : > { %v1261_v10 = vpop.f32.mrb[4].mxu1 }
 0x313   : > { %v1263_v24 = vpop.f32.mrb[5].mxu1 }
 0x314   : > { %v1264_v23 = vpop.f32.mrb[6].mxu1 }
 0x315   : > { %v1266_v57 = vpop.f32.mrb[7].mxu1  ;;  %v1779_v63 = vpack.c.bf16 %v1264_v23, %v1261_v10 }
 0x317   : > { %1831 = vst [vmem:[%s2908_s28 + $0x8] sm:$0xff] %v1779_v63  }
 0x31a   : > { %v1269_v1 = vpop.f32.mrb[8].mxu1 }
 0x31b   : > { %v1271_v59 = vpop.f32.mrb[9].mxu1 }
 0x31c   : > { %v1272_v31 = vpop.f32.mrb[10].mxu1 }
 0x31d   : > { %v1274_v25 = vpop.f32.mrb[11].mxu1  ;;  %v1784_v52 = vpack.c.bf16 %v1272_v31, %v1269_v1 }
 0x31f   : > { %1832 = vst [vmem:[%s2908_s28 + $0x10] sm:$0xff] %v1784_v52  }
 0x322   : > { %v1277_v16 = vpop.f32.mrb[12].mxu1 }
 0x323   : > { %v1279_v34 = vpop.f32.mrb[13].mxu1 }
 0x324   : > { %v1280_v58 = vpop.f32.mrb[14].mxu1 }
 0x325   : > { %v1282_v14 = vpop.f32.mrb[15].mxu1  ;;  %v1789_v62 = vpack.c.bf16 %v1280_v58, %v1277_v16 }
 0x327   : > { %1833 = vst [vmem:[%s2908_s28 + $0x18] sm:$0xff] %v1789_v62  }
 0x32a   : > { %v1285_v27 = vpop.f32.mrb[16].mxu1 }
 0x32b   : > { %v1287_v3 = vpop.f32.mrb[17].mxu1 }
 0x32c   : > { %v1288_v28 = vpop.f32.mrb[18].mxu1 }
 0x32d   : > { %v1290_v51 = vpop.f32.mrb[19].mxu1  ;;  %v1794_v45 = vpack.c.bf16 %v1288_v28, %v1285_v27 }
 0x32f   : > { %1834 = vst [vmem:[%s2908_s28 + $0x20] sm:$0xff] %v1794_v45  }
 0x332   : > { %v1293_v43 = vpop.f32.mrb[20].mxu1 }
 0x333   : > { %v1295_v49 = vpop.f32.mrb[21].mxu1 }
 0x334   : > { %v1296_v21 = vpop.f32.mrb[22].mxu1 }
 0x335   : > { %v1298_v60 = vpop.f32.mrb[23].mxu1  ;;  %v1799_v40 = vpack.c.bf16 %v1296_v21, %v1293_v43 }
 0x337   : > { %1835 = vst [vmem:[%s2908_s28 + $0x28] sm:$0xff] %v1799_v40  }
 0x33a   : > { %v1301_v48 = vpop.f32.mrb[24].mxu1 }
 0x33b   : > { %v1303_v36 = vpop.f32.mrb[25].mxu1 }
 0x33c   : > { %v1304_v56 = vpop.f32.mrb[26].mxu1 }
 0x33d   : > { %v1306_v47 = vpop.f32.mrb[27].mxu1  ;;  %v1804_v55 = vpack.c.bf16 %v1304_v56, %v1301_v48 }
 0x33f   : > { %1836 = vst [vmem:[%s2908_s28 + $0x30] sm:$0xff] %v1804_v55  }
 0x342   : > { %v1309_v61 = vpop.f32.mrb[28].mxu1 }
 0x343   : > { %v1311_v11 = vpop.f32.mrb[29].mxu1 }
 0x344   : > { %v1312_v22 = vpop.f32.mrb[30].mxu1 }
 0x345   : > { %v1314_v38 = vpop.f32.mrb[31].mxu1  ;;  %v1809_v50 = vpack.c.bf16 %v1312_v22, %v1309_v61 }
 0x347   : > { %1837 = vst [vmem:[%s2908_s28 + $0x38] sm:$0xff] %v1809_v50  }
 0x34a   : > { %v1317_v2 = vpop.f32.mrb[32].mxu1 }
 0x34b   : > { %v1319_v44 = vpop.f32.mrb[33].mxu1 }
 0x34c   : > { %v1320_v41 = vpop.f32.mrb[34].mxu1 }
 0x34d   : > { %v1322_v13 = vpop.f32.mrb[35].mxu1  ;;  %v1814_v5 = vpack.c.bf16 %v1320_v41, %v1317_v2 }
 0x34f   : > { %1838 = vst [vmem:[%s2908_s28 + $0x40] sm:$0xff] %v1814_v5  }
 0x352   : > { %v1325_v42 = vpop.f32.mrb[36].mxu1 }
 0x353   : > { %v1327_v19 = vpop.f32.mrb[37].mxu1 }
 0x354   : > { %v1328_v9 = vpop.f32.mrb[38].mxu1 }
 0x355   : > { %v1330_v33 = vpop.f32.mrb[39].mxu1  ;;  %v1819_v32 = vpack.c.bf16 %v1328_v9, %v1325_v42 }
 0x357   : > { %1839 = vst [vmem:[%s2908_s28 + $0x48] sm:$0xff] %v1819_v32  }
 0x35a   : > { %v1333_v12 = vpop.f32.mrb[40].mxu1 }
 0x35b   : > { %v1335_v54 = vpop.f32.mrb[41].mxu1 }
 0x35c   : > { %v1336_v0 = vpop.f32.mrb[42].mxu1 }
 0x35d   : > { %v1338_v46 = vpop.f32.mrb[43].mxu1  ;;  %v1824_v15 = vpack.c.bf16 %v1336_v0, %v1333_v12 }
 0x35f   : > { %1840 = vst [vmem:[%s2908_s28 + $0x50] sm:$0xff] %v1824_v15  }
 0x362   : > { %v1341_v6 = vpop.f32.mrb[44].mxu1 }
 0x363   : > { %v1343_v17 = vpop.f32.mrb[45].mxu1 }
 0x364   : > { %v1344_v20 = vpop.f32.mrb[46].mxu1 }
 0x365   : > { %v1346_v35 = vpop.f32.mrb[47].mxu1  ;;  %v1829_v29 = vpack.c.bf16 %v1344_v20, %v1341_v6 }
 0x367   : > { %1841 = vst [vmem:[%s2908_s28 + $0x58] sm:$0xff] %v1829_v29  }
 0x36a   : > { %v1349_v7 = vpop.f32.mrb[48].mxu1 }
 0x36b   : > { %v1379_v4 = vadd.f32 %v1349_v7, %v1074_v8  ;;  %v1351_v30 = vpop.f32.mrb[49].mxu1 }
 0x36c   : > { %v1352_v26 = vpop.f32.mrb[50].mxu1 }
 0x36d   : > { %1404 = vst [vmem:[#allocation2 + $0xc0] sm:$0xf] %v1379_v4  ;;  %v1353_v53 = vpop.f32.mrb[51].mxu1 }
 0x374   : > { %v1432_v37 = vld [vmem:[#allocation2 + $0xc0] sm:$0xf] }
 0x375   : > { %v1770_v39 = vpack.c.bf16 %v1432_v37, %v1432_v37 }
 0x377   : > { %1558 = vst [vmem:[%s2908_s28 + $0x60] sm:$0x3] %v1770_v39 }
 0x378 PF: > { %s13_s14 = sadd.s32 1, %s2034_s14   ;;  %s2994_s12 = smov %s2030_s13 }
 0x379   : > { %p10_p5 = scmp.ge.s32.totalorder %s13_s14, 4   ;;  %s2995_s13 = smov %s2997_s15 }
 0x37b   :  { %12 = sbr.rel (!%p10_p5) target bundleno = 2 (0x2), region = 76 }

// kernel: non_local_block.5
= control target key start
LH: loop header
LB: loop body
LE: loop exit
PB: predicated region body
PF: predicated region fallthrough
CT: control target
= control target key end

     0   :  { %s2002_s15 = smov 0   ;;  %s3054_s0 = inlined_call_operand.vmem [shape: bf16[2,18,18,128], index: 0, kind: input, shape index: {}]   ;;  %s3055_s1 = inlined_call_operand.vmem [shape: bf16[9,128,128], index: 1, kind: input, shape index: {}]   ;;  %s3056_s2 = inlined_call_operand.vmem [shape: f32[1,128], index: 2, kind: input, shape index: {}]   ;;  %s3057_s3 = inlined_call_operand.vmem [shape: f32[2,16,16,4], index: 3, kind: input, shape index: {}]   ;;  %s3058_s4 = inlined_call_operand.vmem [shape: f32[2,16,16,4], index: 4, kind: output, shape index: {}]  }
   0x1 LB: > { %s1427_s16 = sadd.s32 4294967295, %s1969_s15   ;;  %p1431_p0 = scmp.ge.s32.totalorder %s1969_s15, 1  ;;  %s1969_s15 = sphi %s2002_s15, %s14_s15  }
   0x2   : > { %p172_p1 = scmp.lt.s32.totalorder %s1969_s15, 3 }
   0x4   : > { %p173_p2 = pnand %p1431_p0, %p172_p1 }
   0x5   : > { %p203_p3 = scmp.lt.s32.totalorder (!%p173_p2), %s1427_s16, 1  ;;  %v2013_v0 = vld [vmem:[%s3056_s2] ss:$0 sm:$0xff] (!%p173_p2)  ;;  %v2023_v2 = vld [vmem:[%s3055_s1 + $0x4] sm:$0xf] (!%p173_p2)  ;;  %s2750_s28 = smov (!%p173_p2), 0  }
   0x6   : > { %176 = sbr.rel (%p173_p2) target bundleno = 461 (0x1cd), region = 36  ;;  %3062 = vst [vmem:[#allocation2_spill] sm:$0xff] (!%p173_p2), %v2013_v0  ;;  %v2018_v1 = vld [vmem:[%s3055_s1] sm:$0xf] (!%p173_p2)  ;;  %3064 = vst [vmem:[#allocation4_spill] sm:$0xff] (!%p173_p2), %v2023_v2 }
   0x7   : > { %3063 = vst [vmem:[#allocation3_spill] sm:$0xff] (!%p173_p2), %v2018_v1  ;;  %v2028_v3 = vld [vmem:[%s3055_s1 + $0x8] sm:$0xf] (!%p173_p2)  ;;  %v2033_v4 = vld [vmem:[%s3055_s1 + $0xc] sm:$0xf] (!%p173_p2) }
   0x8   : > { %3065 = vst [vmem:[#allocation5_spill] sm:$0xff] (!%p173_p2), %v2028_v3  ;;  %3066 = vst [vmem:[#allocation6_spill] sm:$0xff] (!%p173_p2), %v2033_v4  ;;  %v2038_v5 = vld [vmem:[%s3055_s1 + $0x10] sm:$0xf] (!%p173_p2)  ;;  %v2043_v6 = vld [vmem:[%s3055_s1 + $0x14] sm:$0xf] (!%p173_p2) }
   0x9   : > { %3067 = vst [vmem:[#allocation7_spill] sm:$0xff] (!%p173_p2), %v2038_v5  ;;  %3068 = vst [vmem:[#allocation8_spill] sm:$0xff] (!%p173_p2), %v2043_v6  ;;  %v2048_v7 = vld [vmem:[%s3055_s1 + $0x18] sm:$0xf] (!%p173_p2)  ;;  %v2053_v8 = vld [vmem:[%s3055_s1 + $0x1c] sm:$0xf] (!%p173_p2) }
   0xa   : > { %3069 = vst [vmem:[#allocation9_spill] sm:$0xff] (!%p173_p2), %v2048_v7  ;;  %3070 = vst [vmem:[#allocation10_spill] sm:$0xff] (!%p173_p2), %v2053_v8  ;;  %v2058_v9 = vld [vmem:[%s3055_s1 + $0x20] sm:$0xf] (!%p173_p2)  ;;  %v2063_v10 = vld [vmem:[%s3055_s1 + $0x24] sm:$0xf] (!%p173_p2) }
   0xb   : > { %3071 = vst [vmem:[#allocation11_spill] sm:$0xff] (!%p173_p2), %v2058_v9  ;;  %3072 = vst [vmem:[#allocation12_spill] sm:$0xff] (!%p173_p2), %v2063_v10  ;;  %v2068_v11 = vld [vmem:[%s3055_s1 + $0x28] sm:$0xf] (!%p173_p2)  ;;  %v2083_v12 = vld [vmem:[%s3055_s1 + $0x2c] sm:$0xf] (!%p173_p2) }
   0xc   : > { %3073 = vst [vmem:[#allocation13_spill] sm:$0xff] (!%p173_p2), %v2068_v11  ;;  %3074 = vst [vmem:[#allocation14_spill] sm:$0xff] (!%p173_p2), %v2083_v12  ;;  %v2088_v13 = vld [vmem:[%s3055_s1 + $0x30] sm:$0xf] (!%p173_p2)  ;;  %v2093_v14 = vld [vmem:[%s3055_s1 + $0x34] sm:$0xf] (!%p173_p2) }
   0xd   : > { %s3284_s16 = smov (!%p203_p3, %s1427_s16), 1  ;;  %3075 = vst [vmem:[#allocation15_spill] sm:$0xff] %v2088_v13  ;;  %3076 = vst [vmem:[#allocation16_spill] sm:$0xff] %v2093_v14  ;;  %v2103_v15 = vld [vmem:[%s3055_s1 + $0x38] sm:$0xf] }
   0xe   : > { %s1929_s11 = smul.u32 216, %s3284_s16  ;;  %s1665_s12 = sshll.u32 %s3284_s16, 8  ;;  %3077 = vst [vmem:[#allocation17_spill] sm:$0xff] %v2103_v15  ;;  %v2108_v16 = vld [vmem:[%s3055_s1 + $0x3c] sm:$0xf] }
   0xf   : > { %s2073_s21 = scalar_lea.vmem %s3057_s3, %s1665_s12  ;;  %s2078_s24 = scalar_lea.vmem %s3058_s4, %s1665_s12  ;;  %v2113_v17 = vld [vmem:[%s3055_s1 + $0x40] sm:$0xf]  ;;  %v2118_v18 = vld [vmem:[%s3055_s1 + $0x44] sm:$0xf]  ;;  %v2123_v19 = vld [vmem:[%s3055_s1 + $0x48] sm:$0xf] }
  0x10   : > { %s2098_s6 = scalar_lea.vmem %s3054_s0, %s1929_s11  ;;  %3078 = vst [vmem:[#allocation18_spill] sm:$0xff] %v2113_v17  ;;  %3079 = vst [vmem:[#allocation19_spill] sm:$0xff] %v2118_v18  ;;  %v2128_v20 = vld [vmem:[%s3055_s1 + $0x4c] sm:$0xf]  ;;  %v2133_v21 = vld [vmem:[%s3055_s1 + $0x50] sm:$0xf] }
  0x11   : > { %3080 = vst [vmem:[#allocation20_spill] sm:$0xff] %v2123_v19  ;;  %3081 = vst [vmem:[#allocation21_spill] sm:$0xff] %v2128_v20  ;;  %v2138_v22 = vld [vmem:[%s3055_s1 + $0x54] sm:$0xf]  ;;  %v2143_v23 = vld [vmem:[%s3055_s1 + $0x58] sm:$0xf] }
  0x12   : > { %3082 = vst [vmem:[#allocation22_spill] sm:$0xff] %v2133_v21  ;;  %3083 = vst [vmem:[#allocation23_spill] sm:$0xff] %v2138_v22  ;;  %v2148_v24 = vld [vmem:[%s3055_s1 + $0x5c] sm:$0xf]  ;;  %v2153_v25 = vld [vmem:[%s3055_s1 + $0x60] sm:$0xf] }
  0x13   : > { %3084 = vst [vmem:[#allocation24_spill] sm:$0xff] %v2143_v23  ;;  %3085 = vst [vmem:[#allocation25_spill] sm:$0xff] %v2148_v24  ;;  %v2158_v26 = vld [vmem:[%s3055_s1 + $0x64] sm:$0xf]  ;;  %v2163_v27 = vld [vmem:[%s3055_s1 + $0x68] sm:$0xf] }
  0x14   : > { %3086 = vst [vmem:[#allocation26_spill] sm:$0xff] %v2153_v25  ;;  %v2168_v28 = vld [vmem:[%s3055_s1 + $0x6c] sm:$0xf]  ;;  %v2173_v29 = vld [vmem:[%s3055_s1 + $0x70] sm:$0xf] }
  0x15   : > { %v2178_v30 = vld [vmem:[%s3055_s1 + $0x74] sm:$0xf]  ;;  %v2183_v31 = vld [vmem:[%s3055_s1 + $0x78] sm:$0xf]  ;;  %v2188_v32 = vld [vmem:[%s3055_s1 + $0x7c] sm:$0xf] }
  0x16   : > { %v2193_v33 = vld [vmem:[%s3055_s1 + $0x80] sm:$0xf]  ;;  %v2198_v34 = vld [vmem:[%s3055_s1 + $0x84] sm:$0xf]  ;;  %v2203_v35 = vld [vmem:[%s3055_s1 + $0x88] sm:$0xf] }
  0x17   : > { %v2208_v36 = vld [vmem:[%s3055_s1 + $0x8c] sm:$0xf]  ;;  %v2213_v37 = vld [vmem:[%s3055_s1 + $0x90] sm:$0xf]  ;;  %v2218_v38 = vld [vmem:[%s3055_s1 + $0x94] sm:$0xf] }
  0x18   : > { %v2223_v39 = vld [vmem:[%s3055_s1 + $0x98] sm:$0xf]  ;;  %v2228_v40 = vld [vmem:[%s3055_s1 + $0x9c] sm:$0xf]  ;;  %v2233_v41 = vld [vmem:[%s3055_s1 + $0xa0] sm:$0xf] }
  0x19   : > { %v2238_v42 = vld [vmem:[%s3055_s1 + $0xa4] sm:$0xf]  ;;  %v2243_v43 = vld [vmem:[%s3055_s1 + $0xa8] sm:$0xf]  ;;  %v2248_v44 = vld [vmem:[%s3055_s1 + $0xac] sm:$0xf] }
  0x1a   : > { %v2253_v45 = vld [vmem:[%s3055_s1 + $0xb0] sm:$0xf]  ;;  %v2258_v46 = vld [vmem:[%s3055_s1 + $0xb4] sm:$0xf]  ;;  %v2263_v47 = vld [vmem:[%s3055_s1 + $0xb8] sm:$0xf] }
  0x1b   : > { %3087 = vst [vmem:[#allocation27_spill] sm:$0xff] %v2263_v47  ;;  %v2268_v48 = vld [vmem:[%s3055_s1 + $0xbc] sm:$0xf]  ;;  %v2273_v49 = vld [vmem:[%s3055_s1 + $0xc0] sm:$0xf] }
  0x1c   : > { %3088 = vst [vmem:[#allocation28_spill] sm:$0xff] %v2268_v48  ;;  %v2278_v50 = vld [vmem:[%s3055_s1 + $0xc4] sm:$0xf]  ;;  %v2283_v51 = vld [vmem:[%s3055_s1 + $0xc8] sm:$0xf] }
  0x1d   : > { %v2288_v52 = vld [vmem:[%s3055_s1 + $0xcc] sm:$0xf]  ;;  %v2293_v53 = vld [vmem:[%s3055_s1 + $0xd0] sm:$0xf]  ;;  %v2298_v54 = vld [vmem:[%s3055_s1 + $0xd4] sm:$0xf] }
  0x1e   : > { %v2303_v55 = vld [vmem:[%s3055_s1 + $0xd8] sm:$0xf]  ;;  %v2308_v56 = vld [vmem:[%s3055_s1 + $0xdc] sm:$0xf]  ;;  %v2313_v57 = vld [vmem:[%s3055_s1 + $0xe0] sm:$0xf] }
  0x1f   : > { %v2318_v58 = vld [vmem:[%s3055_s1 + $0xe4] sm:$0xf]  ;;  %v2323_v59 = vld [vmem:[%s3055_s1 + $0xe8] sm:$0xf]  ;;  %v2328_v60 = vld [vmem:[%s3055_s1 + $0xec] sm:$0xf] }
  0x20   : > { %v2333_v61 = vld [vmem:[%s3055_s1 + $0xf0] sm:$0xf]  ;;  %v2338_v62 = vld [vmem:[%s3055_s1 + $0xf4] sm:$0xf]  ;;  %v2343_v63 = vld [vmem:[%s3055_s1 + $0xf8] sm:$0xf] }
  0x21   : > { %3089 = vst [vmem:[#allocation29_spill] sm:$0xff] %v2333_v61  ;;  %3090 = vst [vmem:[#allocation30_spill] sm:$0xff] %v2343_v63  ;;  %v2348_v0 = vld [vmem:[%s3055_s1 + $0xfc] sm:$0xf]  ;;  %v2353_v47 = vld [vmem:[%s3055_s1 + $0x100] sm:$0xf] }
  0x22   : > { %3091 = vst [vmem:[#allocation31_spill] sm:$0xff] %v2348_v0  ;;  %3092 = vst [vmem:[#allocation32_spill] sm:$0xff] %v2353_v47  ;;  %v2358_v48 = vld [vmem:[%s3055_s1 + $0x104] sm:$0xf]  ;;  %v2363_v61 = vld [vmem:[%s3055_s1 + $0x108] sm:$0xf] }
  0x23   : > { %3093 = vst [vmem:[#allocation33_spill] sm:$0xff] %v2358_v48  ;;  %3094 = vst [vmem:[#allocation34_spill] sm:$0xff] %v2363_v61  ;;  %v2368_v63 = vld [vmem:[%s3055_s1 + $0x10c] sm:$0xf]  ;;  %v2373_v0 = vld [vmem:[%s3055_s1 + $0x110] sm:$0xf] }
  0x24   : > { %3095 = vst [vmem:[#allocation35_spill] sm:$0xff] %v2368_v63  ;;  %3096 = vst [vmem:[#allocation36_spill] sm:$0xff] %v2373_v0  ;;  %v2378_v47 = vld [vmem:[%s3055_s1 + $0x114] sm:$0xf]  ;;  %v2383_v48 = vld [vmem:[%s3055_s1 + $0x118] sm:$0xf] }
  0x25   : > { %3097 = vst [vmem:[#allocation37_spill] sm:$0xff] %v2378_v47  ;;  %3098 = vst [vmem:[#allocation38_spill] sm:$0xff] %v2383_v48  ;;  %v2388_v61 = vld [vmem:[%s3055_s1 + $0x11c] sm:$0xf]  ;;  %v2393_v63 = vld [vmem:[%s3055_s1 + $0x120] sm:$0xf] }
  0x26   : > { %3099 = vst [vmem:[#allocation39_spill] sm:$0xff] %v2388_v61  ;;  %3100 = vst [vmem:[#allocation40_spill] sm:$0xff] %v2393_v63  ;;  %v2398_v0 = vld [vmem:[%s3055_s1 + $0x124] sm:$0xf]  ;;  %v2403_v47 = vld [vmem:[%s3055_s1 + $0x128] sm:$0xf] }
  0x27   : > { %3101 = vst [vmem:[#allocation41_spill] sm:$0xff] %v2398_v0  ;;  %3102 = vst [vmem:[#allocation42_spill] sm:$0xff] %v2403_v47  ;;  %v2408_v48 = vld [vmem:[%s3055_s1 + $0x12c] sm:$0xf]  ;;  %v2413_v61 = vld [vmem:[%s3055_s1 + $0x130] sm:$0xf] }
  0x28   : > { %3103 = vst [vmem:[#allocation43_spill] sm:$0xff] %v2408_v48  ;;  %3104 = vst [vmem:[#allocation44_spill] sm:$0xff] %v2413_v61  ;;  %v2418_v63 = vld [vmem:[%s3055_s1 + $0x134] sm:$0xf]  ;;  %v2423_v0 = vld [vmem:[%s3055_s1 + $0x138] sm:$0xf] }
  0x29   : > { %3105 = vst [vmem:[#allocation45_spill] sm:$0xff] %v2418_v63  ;;  %3106 = vst [vmem:[#allocation46_spill] sm:$0xff] %v2423_v0  ;;  %v2428_v47 = vld [vmem:[%s3055_s1 + $0x13c] sm:$0xf]  ;;  %v2433_v48 = vld [vmem:[%s3055_s1 + $0x140] sm:$0xf] }
  0x2a   : > { %3107 = vst [vmem:[#allocation47_spill] sm:$0xff] %v2428_v47  ;;  %3108 = vst [vmem:[#allocation48_spill] sm:$0xff] %v2433_v48  ;;  %v2438_v61 = vld [vmem:[%s3055_s1 + $0x144] sm:$0xf]  ;;  %v2443_v63 = vld [vmem:[%s3055_s1 + $0x148] sm:$0xf] }
  0x2b   : > { %3109 = vst [vmem:[#allocation49_spill] sm:$0xff] %v2438_v61  ;;  %3110 = vst [vmem:[#allocation50_spill] sm:$0xff] %v2443_v63  ;;  %v2448_v0 = vld [vmem:[%s3055_s1 + $0x14c] sm:$0xf]  ;;  %v2453_v47 = vld [vmem:[%s3055_s1 + $0x150] sm:$0xf] }
  0x2c   : > { %3111 = vst [vmem:[#allocation51_spill] sm:$0xff] %v2448_v0  ;;  %3112 = vst [vmem:[#allocation52_spill] sm:$0xff] %v2453_v47  ;;  %v2458_v48 = vld [vmem:[%s3055_s1 + $0x154] sm:$0xf]  ;;  %v2463_v61 = vld [vmem:[%s3055_s1 + $0x158] sm:$0xf] }
  0x2d   : > { %3113 = vst [vmem:[#allocation53_spill] sm:$0xff] %v2458_v48  ;;  %3114 = vst [vmem:[#allocation54_spill] sm:$0xff] %v2463_v61  ;;  %v2468_v63 = vld [vmem:[%s3055_s1 + $0x15c] sm:$0xf]  ;;  %v2473_v0 = vld [vmem:[%s3055_s1 + $0x160] sm:$0xf] }
  0x2e   : > { %3115 = vst [vmem:[#allocation55_spill] sm:$0xff] %v2468_v63  ;;  %3116 = vst [vmem:[#allocation56_spill] sm:$0xff] %v2473_v0  ;;  %v2478_v47 = vld [vmem:[%s3055_s1 + $0x164] sm:$0xf]  ;;  %v2483_v48 = vld [vmem:[%s3055_s1 + $0x168] sm:$0xf] }
  0x2f   : > { %3117 = vst [vmem:[#allocation57_spill] sm:$0xff] %v2478_v47  ;;  %3118 = vst [vmem:[#allocation58_spill] sm:$0xff] %v2483_v48  ;;  %v2488_v61 = vld [vmem:[%s3055_s1 + $0x16c] sm:$0xf]  ;;  %v2493_v63 = vld [vmem:[%s3055_s1 + $0x170] sm:$0xf] }
  0x30   : > { %3119 = vst [vmem:[#allocation59_spill] sm:$0xff] %v2488_v61  ;;  %3120 = vst [vmem:[#allocation60_spill] sm:$0xff] %v2493_v63  ;;  %v2498_v0 = vld [vmem:[%s3055_s1 + $0x174] sm:$0xf]  ;;  %v2503_v47 = vld [vmem:[%s3055_s1 + $0x178] sm:$0xf] }
  0x31   : > { %3121 = vst [vmem:[#allocation61_spill] sm:$0xff] %v2498_v0  ;;  %3122 = vst [vmem:[#allocation62_spill] sm:$0xff] %v2503_v47  ;;  %v2508_v48 = vld [vmem:[%s3055_s1 + $0x17c] sm:$0xf]  ;;  %v2513_v61 = vld [vmem:[%s3055_s1 + $0x180] sm:$0xf] }
  0x32   : > { %3123 = vst [vmem:[#allocation63_spill] sm:$0xff] %v2508_v48  ;;  %3124 = vst [vmem:[#allocation64_spill] sm:$0xff] %v2513_v61  ;;  %v2518_v63 = vld [vmem:[%s3055_s1 + $0x184] sm:$0xf]  ;;  %v2523_v0 = vld [vmem:[%s3055_s1 + $0x188] sm:$0xf] }
  0x33   : > { %3125 = vst [vmem:[#allocation65_spill] sm:$0xff] %v2518_v63  ;;  %3126 = vst [vmem:[#allocation66_spill] sm:$0xff] %v2523_v0  ;;  %v2528_v47 = vld [vmem:[%s3055_s1 + $0x18c] sm:$0xf]  ;;  %v2533_v48 = vld [vmem:[%s3055_s1 + $0x190] sm:$0xf] }
  0x34   : > { %3127 = vst [vmem:[#allocation67_spill] sm:$0xff] %v2528_v47  ;;  %3128 = vst [vmem:[#allocation68_spill] sm:$0xff] %v2533_v48  ;;  %v2538_v61 = vld [vmem:[%s3055_s1 + $0x194] sm:$0xf]  ;;  %v2543_v63 = vld [vmem:[%s3055_s1 + $0x198] sm:$0xf] }
  0x35   : > { %3129 = vst [vmem:[#allocation69_spill] sm:$0xff] %v2538_v61  ;;  %3130 = vst [vmem:[#allocation70_spill] sm:$0xff] %v2543_v63  ;;  %v2548_v0 = vld [vmem:[%s3055_s1 + $0x19c] sm:$0xf]  ;;  %v2553_v47 = vld [vmem:[%s3055_s1 + $0x1a0] sm:$0xf] }
  0x36   : > { %3131 = vst [vmem:[#allocation71_spill] sm:$0xff] %v2548_v0  ;;  %3132 = vst [vmem:[#allocation72_spill] sm:$0xff] %v2553_v47  ;;  %v2558_v48 = vld [vmem:[%s3055_s1 + $0x1a4] sm:$0xf]  ;;  %v2563_v61 = vld [vmem:[%s3055_s1 + $0x1a8] sm:$0xf] }
  0x37   : > { %3133 = vst [vmem:[#allocation73_spill] sm:$0xff] %v2558_v48  ;;  %3134 = vst [vmem:[#allocation74_spill] sm:$0xff] %v2563_v61  ;;  %v2568_v63 = vld [vmem:[%s3055_s1 + $0x1ac] sm:$0xf]  ;;  %v2573_v0 = vld [vmem:[%s3055_s1 + $0x1b0] sm:$0xf] }
  0x38   : > { %3135 = vst [vmem:[#allocation75_spill] sm:$0xff] %v2568_v63  ;;  %3136 = vst [vmem:[#allocation76_spill] sm:$0xff] %v2573_v0  ;;  %v2578_v47 = vld [vmem:[%s3055_s1 + $0x1b4] sm:$0xf]  ;;  %v2583_v48 = vld [vmem:[%s3055_s1 + $0x1b8] sm:$0xf] }
  0x39   : > { %3137 = vst [vmem:[#allocation77_spill] sm:$0xff] %v2578_v47  ;;  %3138 = vst [vmem:[#allocation78_spill] sm:$0xff] %v2583_v48  ;;  %v2588_v61 = vld [vmem:[%s3055_s1 + $0x1bc] sm:$0xf]  ;;  %v2593_v63 = vld [vmem:[%s3055_s1 + $0x1c0] sm:$0xf] }
  0x3a   : > { %3139 = vst [vmem:[#allocation79_spill] sm:$0xff] %v2588_v61  ;;  %3140 = vst [vmem:[#allocation80_spill] sm:$0xff] %v2593_v63  ;;  %v2598_v0 = vld [vmem:[%s3055_s1 + $0x1c4] sm:$0xf]  ;;  %v2603_v47 = vld [vmem:[%s3055_s1 + $0x1c8] sm:$0xf] }
  0x3b   : > { %3141 = vst [vmem:[#allocation81_spill] sm:$0xff] %v2598_v0  ;;  %3142 = vst [vmem:[#allocation82_spill] sm:$0xff] %v2603_v47  ;;  %v2608_v48 = vld [vmem:[%s3055_s1 + $0x1cc] sm:$0xf]  ;;  %v2613_v61 = vld [vmem:[%s3055_s1 + $0x1d0] sm:$0xf] }
  0x3c   : > { %3143 = vst [vmem:[#allocation83_spill] sm:$0xff] %v2608_v48  ;;  %3144 = vst [vmem:[#allocation84_spill] sm:$0xff] %v2613_v61  ;;  %v2618_v63 = vld [vmem:[%s3055_s1 + $0x1d4] sm:$0xf]  ;;  %v2623_v0 = vld [vmem:[%s3055_s1 + $0x1d8] sm:$0xf] }
  0x3d   : > { %3145 = vst [vmem:[#allocation85_spill] sm:$0xff] %v2618_v63  ;;  %3146 = vst [vmem:[#allocation86_spill] sm:$0xff] %v2623_v0  ;;  %v2628_v47 = vld [vmem:[%s3055_s1 + $0x1dc] sm:$0xf]  ;;  %v2633_v48 = vld [vmem:[%s3055_s1 + $0x1e0] sm:$0xf] }
  0x3e   : > { %3147 = vst [vmem:[#allocation87_spill] sm:$0xff] %v2628_v47  ;;  %3148 = vst [vmem:[#allocation88_spill] sm:$0xff] %v2633_v48  ;;  %v2638_v61 = vld [vmem:[%s3055_s1 + $0x1e4] sm:$0xf]  ;;  %v2643_v63 = vld [vmem:[%s3055_s1 + $0x1e8] sm:$0xf] }
  0x3f   : > { %3149 = vst [vmem:[#allocation89_spill] sm:$0xff] %v2638_v61  ;;  %3150 = vst [vmem:[#allocation90_spill] sm:$0xff] %v2643_v63  ;;  %v2648_v0 = vld [vmem:[%s3055_s1 + $0x1ec] sm:$0xf]  ;;  %v2653_v47 = vld [vmem:[%s3055_s1 + $0x1f0] sm:$0xf] }
  0x40   : > { %3151 = vst [vmem:[#allocation91_spill] sm:$0xff] %v2648_v0  ;;  %3152 = vst [vmem:[#allocation92_spill] sm:$0xff] %v2653_v47  ;;  %v2658_v48 = vld [vmem:[%s3055_s1 + $0x1f4] sm:$0xf]  ;;  %v2663_v61 = vld [vmem:[%s3055_s1 + $0x1f8] sm:$0xf] }
  0x41   : > { %3153 = vst [vmem:[#allocation93_spill] sm:$0xff] %v2658_v48  ;;  %3154 = vst [vmem:[#allocation94_spill] sm:$0xff] %v2663_v61  ;;  %v2668_v63 = vld [vmem:[%s3055_s1 + $0x1fc] sm:$0xf]  ;;  %v2673_v0 = vld [vmem:[%s3055_s1 + $0x200] sm:$0xf] }
  0x42   : > { %3155 = vst [vmem:[#allocation95_spill] sm:$0xff] %v2668_v63  ;;  %3156 = vst [vmem:[#allocation96_spill] sm:$0xff] %v2673_v0  ;;  %v2678_v47 = vld [vmem:[%s3055_s1 + $0x204] sm:$0xf]  ;;  %v2683_v48 = vld [vmem:[%s3055_s1 + $0x208] sm:$0xf] }
  0x43   : > { %3157 = vst [vmem:[#allocation97_spill] sm:$0xff] %v2678_v47  ;;  %3158 = vst [vmem:[#allocation98_spill] sm:$0xff] %v2683_v48  ;;  %v2688_v61 = vld [vmem:[%s3055_s1 + $0x20c] sm:$0xf]  ;;  %v2693_v63 = vld [vmem:[%s3055_s1 + $0x210] sm:$0xf] }
  0x44   : > { %3159 = vst [vmem:[#allocation99_spill] sm:$0xff] %v2688_v61  ;;  %3160 = vst [vmem:[#allocation100_spill] sm:$0xff] %v2693_v63  ;;  %v2698_v0 = vld [vmem:[%s3055_s1 + $0x214] sm:$0xf]  ;;  %v2703_v47 = vld [vmem:[%s3055_s1 + $0x218] sm:$0xf] }
  0x45   : > { %3161 = vst [vmem:[#allocation101_spill] sm:$0xff] %v2698_v0  ;;  %3162 = vst [vmem:[#allocation102_spill] sm:$0xff] %v2703_v47  ;;  %v2708_v48 = vld [vmem:[%s3055_s1 + $0x21c] sm:$0xf]  ;;  %v2713_v61 = vld [vmem:[%s3055_s1 + $0x220] sm:$0xf] }
  0x46   : > { %3163 = vst [vmem:[#allocation103_spill] sm:$0xff] %v2708_v48  ;;  %3164 = vst [vmem:[#allocation104_spill] sm:$0xff] %v2713_v61  ;;  %v2718_v63 = vld [vmem:[%s3055_s1 + $0x224] sm:$0xf]  ;;  %v2723_v0 = vld [vmem:[%s3055_s1 + $0x228] sm:$0xf] }
  0x47   : > { %3165 = vst [vmem:[#allocation105_spill] sm:$0xff] %v2718_v63  ;;  %3166 = vst [vmem:[#allocation106_spill] sm:$0xff] %v2723_v0  ;;  %v2728_v47 = vld [vmem:[%s3055_s1 + $0x22c] sm:$0xf]  ;;  %v2733_v48 = vld [vmem:[%s3055_s1 + $0x230] sm:$0xf] }
  0x48   : > { %3167 = vst [vmem:[#allocation107_spill] sm:$0xff] %v2728_v47  ;;  %3168 = vst [vmem:[#allocation108_spill] sm:$0xff] %v2733_v48  ;;  %v2738_v61 = vld [vmem:[%s3055_s1 + $0x234] sm:$0xf]  ;;  %v2743_v63 = vld [vmem:[%s3055_s1 + $0x238] sm:$0xf] }
  0x49   : > { %3169 = vst [vmem:[#allocation109_spill] sm:$0xff] %v2738_v61  ;;  %3170 = vst [vmem:[#allocation110_spill] sm:$0xff] %v2743_v63  ;;  %v2748_v0 = vld [vmem:[%s3055_s1 + $0x23c] sm:$0xf] }
  0x4a   : > { %3171 = vst [vmem:[#allocation111_spill] sm:$0xff] %v2748_v0 }
  0x4b LB: >> { %v3172_v18 = vld [vmem:[#allocation19_spill] sm:$0xff]  ;;  %v3173_v17 = vld [vmem:[#allocation18_spill] sm:$0xff]  ;;  %v3174_v2 = vld [vmem:[#allocation4_spill] sm:$0xff]  ;;  %v3060_v61 = vmov 0.0   ;;  %s1667_s29 = smul.u32 12, %s1973_s28  ;;  %vm1976_vm0 = vmmov 0   ;;  %s1973_s28 = sphi %s2750_s28, %s377_s28  }
  0x4c   : >> { %v1568_v48 = vcombine.low %v3173_v17, %v3172_v18  ;;  %v3175_v1 = vld [vmem:[#allocation3_spill] sm:$0xff]  ;;  %1749 = vmatprep.subr.bf16.mxu0 %v3060_v61  ;;  %1769 = vmatprep.subr.bf16.mxu1 %v3060_v61  ;;  %v3176_v20 = vld [vmem:[#allocation21_spill] sm:$0xff]  ;;  %v3177_v19 = vld [vmem:[#allocation20_spill] sm:$0xff]  ;;  %vm392_vm1 = vsmask.f32 7424  ;;  %vm589_vm2 = vcmask 1046528  }
  0x4d   : >> { %v1576_v63 = vcombine.low %v3175_v1, %v3174_v2  ;;  %v1569_v0 = vcombine.low %v3177_v19, %v3176_v20  ;;  %v3178_v4 = vld [vmem:[#allocation6_spill] sm:$0xff]  ;;  %v3179_v3 = vld [vmem:[#allocation5_spill] sm:$0xff]  ;;  %1765 = vmatprep.mubr.msk.bf16.mxu0 %vm1976_vm0, %v3060_v61  ;;  %s2771_s30 = scalar_lea.vmem %s2098_s6, %s1667_s29  ;;  %1785 = vmatprep.mubr.msk.bf16.mxu1 %vm1976_vm0, %v3060_v61  ;;  %v3180_v22 = vld [vmem:[#allocation23_spill] sm:$0xff]  ;;  %s1662_s5 = sshll.u32 %s1973_s28, 4  ;;  %vm1340_vm4 = vcmask 31744  }
  0x4e   : >> { %1750 = vmatpush3.bf16.msra.mxu0 %v1568_v48  ;;  %v1577_v47 = vcombine.low %v3179_v3, %v3178_v4  ;;  %v3181_v21 = vld [vmem:[#allocation22_spill] sm:$0xff]  ;;  %v3182_v6 = vld [vmem:[#allocation8_spill] sm:$0xff]  ;;  %v3183_v5 = vld [vmem:[#allocation7_spill] sm:$0xff]  ;;  %s1334_s7 = scalar_lea.vmem %s2073_s21, %s1662_s5  ;;  %s1339_s8 = scalar_lea.vmem %s2078_s24, %s1662_s5 }
  0x4f   : >> { %1770 = vmatpush3.bf16.msra.mxu1 %v1576_v63  ;;  %1751 = vmatprep.subr.bf16.mxu0 %v3060_v61  ;;  %v1570_v48 = vcombine.low %v3181_v21, %v3180_v22  ;;  %v1578_v63 = vcombine.low %v3183_v5, %v3182_v6  ;;  %v3184_v24 = vld [vmem:[#allocation25_spill] sm:$0xff]  ;;  %v3185_v23 = vld [vmem:[#allocation24_spill] sm:$0xff]  ;;  %v3186_v8 = vld [vmem:[#allocation10_spill] sm:$0xff]  ;;  %v3191_v6 = vmov 0.0   ;;  %s377_s28 = sadd.s32 1, %s1973_s28  }
  0x50   : >> { %1771 = vmatprep.subr.bf16.mxu1 %v3060_v61  ;;  %v1571_v1 = vcombine.low %v3185_v23, %v3184_v24  ;;  %v3187_v7 = vld [vmem:[#allocation9_spill] sm:$0xff]  ;;  %v2789_v2 = vld [vmem:[%s2771_s30 + $0x4] sm:$0xf]  ;;  %v2792_v3 = vld [vmem:[%s2771_s30 + $0x14] ss:$0 sps:$4 sm:$0x11]  }
  0x51   : >> { %v3188_v25 = vld [vmem:[#allocation26_spill] sm:$0xff]  ;;  %v3189_v10 = vld [vmem:[#allocation12_spill] sm:$0xff]  ;;  %v3190_v9 = vld [vmem:[#allocation11_spill] sm:$0xff]  ;;  %p374_p4 = scmp.ge.s32.totalorder %s377_s28, 16  }
  0x52   : >> { %1752 = vmatpush3.bf16.msra.mxu0 %v1569_v0  ;;  %v1579_v0 = vcombine.low %v3187_v7, %v3186_v8  ;;  %v1604_v5 = vld [vmem:[%s2771_s30 + $0xc] sm:$0xf]  ;;  %v3192_v12 = vld [vmem:[#allocation14_spill] sm:$0xff]  ;;  %v3193_v11 = vld [vmem:[#allocation13_spill] sm:$0xff] }
  0x53   : >> { %1772 = vmatpush3.bf16.msra.mxu1 %v1577_v47  ;;  %1753 = vmatprep.subr.bf16.mxu0 %v3060_v61  ;;  %v381_v47 = vld [vmem:[%s2771_s30] sm:$0xf]  ;;  %v1581_v7 = vcombine.low %v3193_v11, %v3192_v12  ;;  %v2814_v8 = vld [vmem:[%s2771_s30 + $0x8] ss:$0 sps:$4 sm:$0x11]   ;;  %v3194_v14 = vld [vmem:[#allocation16_spill] sm:$0xff] }
  0x54   : >> { %1773 = vmatprep.subr.bf16.mxu1 %v3060_v61  ;;  %v2799_v4 = vcombine.low %v381_v47, %v2789_v2  ;;  %v1573_v47 = vcombine.low %v2163_v27, %v2168_v28  ;;  %v1957_v17 = vld [vmem:[%s2771_s30 + $0x20] ss:$0 sps:$4 sm:$0x11]   ;;  %v1638_v19 = vld [vmem:[%s2771_s30 + $0x18] sm:$0xf]  ;;  %v3195_v13 = vld [vmem:[#allocation15_spill] sm:$0xff] }
  0x55   : >> { %v1639_v20 = vld [vmem:[%s2771_s30 + $0x1c] sm:$0xf]  ;;  %v1582_v11 = vcombine.low %v3195_v13, %v3194_v14  ;;  %v401_v22 = vshll.u32 %v2814_v8, 16 }
  0x56   : >> { %1754 = vmatpush3.bf16.msra.mxu0 %v1570_v48  ;;  %v1572_v48 = vcombine.low %v3188_v25, %v2158_v26  ;;  %v394_v12 = vshrl.u32 %v2799_v4, 16  ;;  %v3196_v15 = vld [vmem:[#allocation17_spill] sm:$0xff] }
  0x57   : >> { %1774 = vmatpush3.bf16.msra.mxu1 %v1578_v63  ;;  %1755 = vmatprep.subr.bf16.mxu0 %v3060_v61  ;;  %v1580_v63 = vcombine.low %v3190_v9, %v3189_v10  ;;  %v396_v9 = vshll.u32 %v2799_v4, 16  ;;  %v403_v14 = vrot.slane %v401_v22, 1  ;;  %v1225_v22 = vrot.slane %v1957_v17, 1 }
  0x58   : >> { %1775 = vmatprep.subr.bf16.mxu1 %v3060_v61  ;;  %v2803_v61 = vld [vmem:[%s2771_s30 + $0x10] sm:$0xf] }
  0x59   : >> { %v398_v21 = vrot.slane %v396_v9, 1 }
  0x5a   : >> { %1756 = vmatpush3.bf16.msra.mxu0 %v1571_v1  ;;  %v1607_v1 = vcombine.low %v1604_v5, %v2803_v61 }
  0x5b   : >> { %1776 = vmatpush3.bf16.msra.mxu1 %v1579_v0  ;;  %1757 = vmatprep.subr.bf16.mxu0 %v3191_v6  ;;  %v807_v0 = vshll.u32 %v2792_v3, 16  ;;  %v399_v9 = vor.u32 %v398_v21, %v394_v12 }
  0x5c   : >> { %1777 = vmatprep.subr.bf16.mxu1 %v3191_v6  ;;  %v800_v5 = vshrl.u32 %v1607_v1, 16  ;;  %v802_v10 = vshll.u32 %v1607_v1, 16 }
  0x5d   : >> { %v809_v18 = vrot.slane %v807_v0, 1  ;;  %v1124_v0 = vshll.u32 %v1957_v17, 16  ;;  %v1597_v17 = vcombine.low %v2283_v51, %v2288_v52 }
  0x5e   : >> { %1758 = vmatpush3.bf16.msra.mxu0 %v1572_v48  ;;  %v1574_v48 = vcombine.low %v2173_v29, %v2178_v30 }
  0x5f   : >> { %1778 = vmatpush3.bf16.msra.mxu1 %v1580_v63  ;;  %1759 = vmatprep.subr.bf16.mxu0 %v3191_v6  ;;  %v804_v63 = vrot.slane %v802_v10, 1  ;;  %v1641_v10 = vcombine.low %v1638_v19, %v1639_v20  ;;  %v1651_v19 = vld [vmem:[%s2771_s30 + $0x18] sm:$0xe] }
  0x60   : >> { %1779 = vmatprep.subr.bf16.mxu1 %v3191_v6  ;;  %v1652_v25 = vcombine.low %v1651_v19, %v1639_v20 }
  0x61   : >> { %v805_v1 = vor.u32 %v804_v63, %v800_v5  ;;  %v1117_v23 = vshrl.u32 %v1641_v10, 16  ;;  %v1119_v24 = vshll.u32 %v1641_v10, 16  ;;  %v1126_v63 = vrot.slane %v1124_v0, 1 }
  0x62   : >> { %1760 = vmatpush3.bf16.msra.mxu0 %v1573_v47  ;;  %v1583_v47 = vcombine.low %v3196_v15, %v2108_v16  ;;  %v1585_v15 = vcombine.low %v2193_v33, %v2198_v34  ;;  %v1224_v21 = vrot.slane %v1652_v25, 1  ;;  %v1599_v25 = vcombine.low %v2303_v55, %v2308_v56 }
  0x63   : >> { %1780 = vmatpush3.bf16.msra.mxu1 %v1581_v7  ;;  %1761 = vmatprep.subr.bf16.mxu0 %v3191_v6  ;;  %v1575_v7 = vcombine.low %v2183_v31, %v2188_v32  ;;  %v2835_v13 = vsel %vm392_vm1, %v805_v1, %v809_v18  ;;  %v1121_v5 = vrot.slane %v1119_v24, 1  ;;  %v1596_v18 = vcombine.low %v2273_v49, %v2278_v50 }
  0x64   : >> { %1781 = vmatprep.subr.bf16.mxu1 %v3191_v6  ;;  %v2851_v24 = vsel %vm589_vm2, %v1224_v21, %v1225_v22  ;;  %v1600_v1 = vcombine.low %v2313_v57, %v2318_v58  ;;  %v1590_v10 = vcombine.low %v2243_v43, %v2248_v44  ;;  %v1601_v0 = vcombine.low %v2323_v59, %v2328_v60  ;;  %v3201_v21 = vld [vmem:[#allocation30_spill] sm:$0xff] }
  0x65   : >> { %v1122_v12 = vor.u32 %v1121_v5, %v1117_v23  ;;  %v1588_v23 = vcombine.low %v2223_v39, %v2228_v40 }
  0x66   : >> { %1762 = vmatpush3.bf16.msra.mxu0 %v1574_v48  ;;  %v1589_v48 = vcombine.low %v2233_v41, %v2238_v42 }
  0x67   : >> { %1782 = vmatpush3.bf16.msra.mxu1 %v1582_v11  ;;  %1763 = vmatprep.subr.bf16.mxu0 %v3191_v6  ;;  %v404_v11 = vsel %vm392_vm1, %v399_v9, %v403_v14  ;;  %v2848_v20 = vsel %vm392_vm1, %v1122_v12, %v1126_v63  ;;  %v1586_v14 = vcombine.low %v2203_v35, %v2208_v36  ;;  %v3197_v9 = vld [vmem:[#allocation29_spill] sm:$0xff]  ;;  %v3198_v63 = vld [vmem:[#allocation28_spill] sm:$0xff]  ;;  %v3200_v12 = vld [vmem:[#allocation31_spill] sm:$0xff] }
  0x68   : >> { %1783 = vmatprep.subr.bf16.mxu1 %v3191_v6  ;;  %v1602_v19 = vcombine.low %v3197_v9, %v2338_v62  ;;  %v1603_v22 = vcombine.low %v3201_v21, %v3200_v12  ;;  %v3209_v9 = vld [vmem:[#allocation50_spill] sm:$0xff]  ;;  %v3213_v12 = vld [vmem:[#allocation52_spill] sm:$0xff] }
  0x6a   : >> { %1764 = vmatpush3.bf16.msra.mxu0 %v1575_v7  ;;  %v585_v7 = vld [vmem:[%s2771_s30] sm:$0xe] }
  0x6b   : >> { %1784 = vmatpush3.bf16.msra.mxu1 %v1583_v47  ;;  %1789 = vmatprep.subr.bf16.mxu0 %v3191_v6  ;;  %v1591_v47 = vcombine.low %v2253_v45, %v2258_v46  ;;  %v1584_v5 = vcombine.low %v585_v7, %v2789_v2  ;;  %v1951_v2 = vld [vmem:[%s2771_s30 + $0xc] sm:$0xff]  }
  0x6c   : >> { %1809 = vmatprep.subr.bf16.mxu1 %v3191_v6 }
  0x6d   : >> { %1766 = vmatmul.mubr.bf16.vlgmr.msra.gmra.mrb[0].mxu0 %v404_v11 }
  0x6e   : >> { %1786 = vmatmul.mubr.bf16.vlgmr.msra.gmra.mrb[0].mxu1 %v2799_v4  ;;  %1790 = vmatpush3.bf16.msra.mxu0 %v1585_v15  ;;  %v1587_v4 = vcombine.low %v2213_v37, %v2218_v38  ;;  %v1598_v15 = vcombine.low %v2293_v53, %v2298_v54 }
  0x6f   : >> { %1810 = vmatpush3.bf16.msra.mxu1 %v1596_v18  ;;  %1791 = vmatprep.subr.bf16.mxu0 %v3191_v6  ;;  %v3199_v18 = vld [vmem:[#allocation27_spill] sm:$0xff] }
  0x70   : >> { %1811 = vmatprep.subr.bf16.mxu1 %v3191_v6  ;;  %1805 = vmatprep.mubr.msk.bf16.mxu0 %vm1976_vm0, %v3191_v6  ;;  %v1592_v11 = vcombine.low %v3199_v18, %v3198_v63  ;;  %v3211_v63 = vld [vmem:[#allocation36_spill] sm:$0xff] }
  0x71   : >> { %1825 = vmatprep.mubr.msk.bf16.mxu1 %vm1976_vm0, %v3191_v6 }
  0x72   : >> { %1792 = vmatpush3.bf16.msra.mxu0 %v1586_v14  ;;  %v590_v14 = vrot.slane %v1584_v5, 1  ;;  %v3210_v5 = vld [vmem:[#allocation37_spill] sm:$0xff] }
  0x73   : >> { %1812 = vmatpush3.bf16.msra.mxu1 %v1597_v17  ;;  %1793 = vmatprep.subr.bf16.mxu0 %v3191_v6  ;;  %v591_v17 = vrot.slane %v2814_v8, 1  ;;  %v3206_v8 = vld [vmem:[#allocation35_spill] sm:$0xff]  ;;  %v1611_v18 = vcombine.low %v3211_v63, %v3210_v5 }
  0x74   : >> { %1813 = vmatprep.subr.bf16.mxu1 %v3191_v6  ;;  %v1617_v63 = vld [vmem:[%s2771_s30 + $0xc] sm:$0xe] }
  0x76   : >> { %1794 = vmatpush3.bf16.msra.mxu0 %v1587_v4  ;;  %v592_v4 = vsel %vm589_vm2, %v590_v14, %v591_v17  ;;  %v3215_v14 = vld [vmem:[#allocation38_spill] sm:$0xff] }
  0x77   : >> { %1814 = vmatpush3.bf16.msra.mxu1 %v1598_v15  ;;  %1795 = vmatprep.subr.bf16.mxu0 %v3191_v6  ;;  %v3202_v15 = vld [vmem:[#allocation33_spill] sm:$0xff] }
  0x78   : >> { %1815 = vmatprep.subr.bf16.mxu1 %v3191_v6 }
  0x7a   : >> { %1796 = vmatpush3.bf16.msra.mxu0 %v1588_v23  ;;  %v3203_v23 = vld [vmem:[#allocation32_spill] sm:$0xff] }
  0x7b   : >> { %1816 = vmatpush3.bf16.msra.mxu1 %v1599_v25  ;;  %1797 = vmatprep.subr.bf16.mxu0 %v3191_v6  ;;  %v1609_v25 = vcombine.low %v3203_v23, %v3202_v15  ;;  %v3218_v23 = vld [vmem:[#allocation41_spill] sm:$0xff] }
  0x7c   : >> { %1817 = vmatprep.subr.bf16.mxu1 %v3191_v6 }
  0x7e   : >> { %1798 = vmatpush3.bf16.msra.mxu0 %v1589_v48  ;;  %v3204_v48 = vld [vmem:[#allocation49_spill] sm:$0xff] }
  0x7f   : >> { %1818 = vmatpush3.bf16.msra.mxu1 %v1600_v1  ;;  %1799 = vmatprep.subr.bf16.mxu0 %v3191_v6  ;;  %v3205_v1 = vld [vmem:[#allocation48_spill] sm:$0xff] }
  0x80   : >> { %1819 = vmatprep.subr.bf16.mxu1 %v3191_v6 }
  0x82   : >> { %1800 = vmatpush3.bf16.msra.mxu0 %v1590_v10  ;;  %v1619_v10 = vcombine.low %v3205_v1, %v3204_v48  ;;  %v3220_v1 = vld [vmem:[#allocation57_spill] sm:$0xff] }
  0x83   : >> { %1820 = vmatpush3.bf16.msra.mxu1 %v1601_v0  ;;  %1801 = vmatprep.subr.bf16.mxu0 %v3191_v6  ;;  %v3207_v0 = vld [vmem:[#allocation34_spill] sm:$0xff] }
  0x84   : >> { %1821 = vmatprep.subr.bf16.mxu1 %v3191_v6  ;;  %v1610_v7 = vcombine.low %v3207_v0, %v3206_v8  ;;  %v3222_v0 = vld [vmem:[#allocation43_spill] sm:$0xff] }
  0x86   : >> { %1802 = vmatpush3.bf16.msra.mxu0 %v1591_v47  ;;  %v3208_v47 = vld [vmem:[#allocation51_spill] sm:$0xff] }
  0x87   : >> { %1822 = vmatpush3.bf16.msra.mxu1 %v1602_v19  ;;  %1803 = vmatprep.subr.bf16.mxu0 %v3191_v6  ;;  %v1620_v19 = vcombine.low %v3209_v9, %v3208_v47  ;;  %v3224_v9 = vld [vmem:[#allocation59_spill] sm:$0xff] }
  0x88   : >> { %1823 = vmatprep.subr.bf16.mxu1 %v3191_v6 }
  0x8a   : >> { %1804 = vmatpush3.bf16.msra.mxu0 %v1592_v11  ;;  %v3212_v11 = vld [vmem:[#allocation53_spill] sm:$0xff] }
  0x8b   : >> { %1824 = vmatpush3.bf16.msra.mxu1 %v1603_v22  ;;  %1829 = vmatprep.subr.bf16.mxu0 %v3191_v6  ;;  %v1621_v21 = vcombine.low %v3213_v12, %v3212_v11  ;;  %v3214_v22 = vld [vmem:[#allocation39_spill] sm:$0xff]  ;;  %v3227_v11 = vld [vmem:[#allocation44_spill] sm:$0xff] }
  0x8c   : >> { %1849 = vmatprep.subr.bf16.mxu1 %v3191_v6  ;;  %v1612_v17 = vcombine.low %v3215_v14, %v3214_v22  ;;  %v3229_v22 = vld [vmem:[#allocation60_spill] sm:$0xff] }
  0x8d   : >> { %1806 = vmatmul.mubr.bf16.vlgmr.msra.gmra.mrb[4].mxu0 %v592_v4  ;;  %v3217_v4 = vld [vmem:[#allocation54_spill] sm:$0xff] }
  0x8e   : >> { %1826 = vmatmul.mubr.bf16.vlgmr.msra.gmra.mrb[4].mxu1 %v1951_v2  ;;  %1830 = vmatpush3.bf16.msra.mxu0 %v1609_v25  ;;  %v3216_v2 = vld [vmem:[#allocation55_spill] sm:$0xff]  ;;  %v3219_v25 = vld [vmem:[#allocation40_spill] sm:$0xff] }
  0x8f   : >> { %1850 = vmatpush3.bf16.msra.mxu1 %v1619_v10  ;;  %1831 = vmatprep.subr.bf16.mxu0 %v3191_v6  ;;  %v1622_v15 = vcombine.low %v3217_v4, %v3216_v2  ;;  %v1613_v48 = vcombine.low %v3219_v25, %v3218_v23  ;;  %v3221_v10 = vld [vmem:[#allocation56_spill] sm:$0xff]  ;;  %v3230_v2 = vld [vmem:[#allocation47_spill] sm:$0xff]  ;;  %v3231_v4 = vld [vmem:[#allocation46_spill] sm:$0xff] }
  0x90   : >> { %1851 = vmatprep.subr.bf16.mxu1 %v3191_v6  ;;  %1845 = vmatprep.mubr.msk.bf16.mxu0 %vm1976_vm0, %v3191_v6  ;;  %v1623_v8 = vcombine.low %v3221_v10, %v3220_v1  ;;  %v3232_v23 = vld [vmem:[#allocation63_spill] sm:$0xff]  ;;  %v3233_v25 = vld [vmem:[#allocation62_spill] sm:$0xff]  ;;  %v908_v10 = vrot.slane %v2792_v3, 1 }
  0x91   : >> { %1865 = vmatprep.mubr.msk.bf16.mxu1 %vm1976_vm0, %v3191_v6  ;;  %v3238_v3 = vld [vmem:[#allocation67_spill] sm:$0xff] }
  0x92   : >> { %1832 = vmatpush3.bf16.msra.mxu0 %v1610_v7  ;;  %v3223_v7 = vld [vmem:[#allocation42_spill] sm:$0xff] }
  0x93   : >> { %1852 = vmatpush3.bf16.msra.mxu1 %v1620_v19  ;;  %1833 = vmatprep.subr.bf16.mxu0 %v3191_v6  ;;  %v1614_v47 = vcombine.low %v3223_v7, %v3222_v0  ;;  %v3225_v19 = vld [vmem:[#allocation58_spill] sm:$0xff] }
  0x94   : >> { %1853 = vmatprep.subr.bf16.mxu1 %v3191_v6  ;;  %v1624_v5 = vcombine.low %v3225_v19, %v3224_v9  ;;  %v3237_v9 = vld [vmem:[#allocation80_spill] sm:$0xff] }
  0x96   : >> { %1834 = vmatpush3.bf16.msra.mxu0 %v1611_v18  ;;  %v3226_v18 = vld [vmem:[#allocation45_spill] sm:$0xff] }
  0x97   : >> { %1854 = vmatpush3.bf16.msra.mxu1 %v1621_v21  ;;  %1835 = vmatprep.subr.bf16.mxu0 %v3191_v6  ;;  %v1615_v12 = vcombine.low %v3227_v11, %v3226_v18  ;;  %v3228_v21 = vld [vmem:[#allocation61_spill] sm:$0xff]  ;;  %v3240_v18 = vld [vmem:[#allocation83_spill] sm:$0xff]  ;;  %v3241_v11 = vld [vmem:[#allocation82_spill] sm:$0xff] }
  0x98   : >> { %1855 = vmatprep.subr.bf16.mxu1 %v3191_v6  ;;  %v1625_v14 = vcombine.low %v3229_v22, %v3228_v21  ;;  %v3243_v21 = vld [vmem:[#allocation68_spill] sm:$0xff] }
  0x9a   : >> { %1836 = vmatpush3.bf16.msra.mxu0 %v1612_v17  ;;  %v1618_v17 = vcombine.low %v1617_v63, %v2803_v61  ;;  %v3234_v61 = vld [vmem:[#allocation65_spill] sm:$0xff] }
  0x9b   : >> { %1856 = vmatpush3.bf16.msra.mxu1 %v1622_v15  ;;  %1837 = vmatprep.subr.bf16.mxu0 %v3191_v6  ;;  %v1616_v15 = vcombine.low %v3231_v4, %v3230_v2  ;;  %v3246_v4 = vld [vmem:[#allocation71_spill] sm:$0xff] }
  0x9c   : >> { %1857 = vmatprep.subr.bf16.mxu1 %v3191_v6  ;;  %v907_v1 = vrot.slane %v1618_v17, 1  ;;  %v3245_v17 = vld [vmem:[#allocation84_spill] sm:$0xff] }
  0x9e   : >> { %1838 = vmatpush3.bf16.msra.mxu0 %v1613_v48  ;;  %v1626_v48 = vcombine.low %v3233_v25, %v3232_v23  ;;  %v909_v7 = vsel %vm589_vm2, %v907_v1, %v908_v10  ;;  %v3248_v25 = vld [vmem:[#allocation87_spill] sm:$0xff]  ;;  %v3250_v10 = vld [vmem:[#allocation73_spill] sm:$0xff] }
  0x9f   : >> { %1858 = vmatpush3.bf16.msra.mxu1 %v1623_v8  ;;  %1839 = vmatprep.subr.bf16.mxu0 %v3191_v6  ;;  %v3235_v8 = vld [vmem:[#allocation64_spill] sm:$0xff] }
  0xa0   : >> { %1859 = vmatprep.subr.bf16.mxu1 %v3191_v6  ;;  %v1630_v0 = vcombine.low %v3235_v8, %v3234_v61  ;;  %v3251_v61 = vld [vmem:[#allocation72_spill] sm:$0xff] }
  0xa1   : >> { %v1634_v8 = vcombine.low %v3251_v61, %v3250_v10  ;;  %v3267_v10 = vld [vmem:[#allocation96_spill] sm:$0xff] }
  0xa2   : >> { %1840 = vmatpush3.bf16.msra.mxu0 %v1614_v47  ;;  %v3236_v47 = vld [vmem:[#allocation81_spill] sm:$0xff] }
  0xa3   : >> { %1860 = vmatpush3.bf16.msra.mxu1 %v1624_v5  ;;  %1841 = vmatprep.subr.bf16.mxu0 %v3191_v6  ;;  %v1643_v19 = vcombine.low %v3237_v9, %v3236_v47  ;;  %v3239_v5 = vld [vmem:[#allocation66_spill] sm:$0xff]  ;;  %v3254_v9 = vld [vmem:[#allocation75_spill] sm:$0xff] }
  0xa4   : >> { %1861 = vmatprep.subr.bf16.mxu1 %v3191_v6  ;;  %v1631_v63 = vcombine.low %v3239_v5, %v3238_v3  ;;  %v3256_v5 = vld [vmem:[#allocation91_spill] sm:$0xff] }
  0xa6   : >> { %1842 = vmatpush3.bf16.msra.mxu0 %v1615_v12  ;;  %v1644_v12 = vcombine.low %v3241_v11, %v3240_v18  ;;  %v3258_v11 = vld [vmem:[#allocation77_spill] sm:$0xff] }
  0xa7   : >> { %1862 = vmatpush3.bf16.msra.mxu1 %v1625_v14  ;;  %1843 = vmatprep.subr.bf16.mxu0 %v3191_v6  ;;  %v3244_v14 = vld [vmem:[#allocation85_spill] sm:$0xff] }
  0xa8   : >> { %1863 = vmatprep.subr.bf16.mxu1 %v3191_v6  ;;  %v1645_v2 = vcombine.low %v3245_v17, %v3244_v14  ;;  %v3262_v17 = vld [vmem:[#allocation79_spill] sm:$0xff] }
  0xaa   : >> { %1844 = vmatpush3.bf16.msra.mxu0 %v1616_v15  ;;  %v3247_v15 = vld [vmem:[#allocation70_spill] sm:$0xff] }
  0xab   : >> { %1864 = vmatpush3.bf16.msra.mxu1 %v1626_v48  ;;  %1869 = vmatprep.subr.bf16.mxu0 %v3191_v6  ;;  %v1633_v23 = vcombine.low %v3247_v15, %v3246_v4  ;;  %v3249_v48 = vld [vmem:[#allocation86_spill] sm:$0xff]  ;;  %v3264_v15 = vld [vmem:[#allocation95_spill] sm:$0xff] }
  0xac   : >> { %1889 = vmatprep.subr.bf16.mxu1 %v3191_v6  ;;  %v1646_v1 = vcombine.low %v3249_v48, %v3248_v25  ;;  %v1955_v48 = vld [vmem:[%s2771_s30 + $0x18] sm:$0xff]  }
  0xad   : >> { %1846 = vmatmul.mubr.bf16.vlgmr.msra.gmra.mrb[8].mxu0 %v2835_v13  ;;  %v3242_v13 = vld [vmem:[#allocation69_spill] sm:$0xff] }
  0xae   : >> { %1866 = vmatmul.mubr.bf16.vlgmr.msra.gmra.mrb[8].mxu1 %v909_v7  ;;  %1870 = vmatpush3.bf16.msra.mxu0 %v1630_v0  ;;  %v1632_v22 = vcombine.low %v3243_v21, %v3242_v13  ;;  %v3252_v0 = vld [vmem:[#allocation89_spill] sm:$0xff]  ;;  %v3253_v7 = vld [vmem:[#allocation88_spill] sm:$0xff] }
  0xaf   : >> { %1890 = vmatpush3.bf16.msra.mxu1 %v1643_v19  ;;  %1871 = vmatprep.subr.bf16.mxu0 %v3191_v6  ;;  %v1647_v47 = vcombine.low %v3253_v7, %v3252_v0  ;;  %v3255_v19 = vld [vmem:[#allocation74_spill] sm:$0xff]  ;;  %v3260_v21 = vld [vmem:[#allocation93_spill] sm:$0xff] }
  0xb0   : >> { %1891 = vmatprep.subr.bf16.mxu1 %v3191_v6  ;;  %1885 = vmatprep.mubr.msk.bf16.mxu0 %vm1976_vm0, %v3191_v6  ;;  %v1635_v3 = vcombine.low %v3255_v19, %v3254_v9  ;;  %v3269_v0 = vld [vmem:[#allocation98_spill] sm:$0xff]  ;;  %v3271_v9 = vld [vmem:[#allocation100_spill] sm:$0xff] }
  0xb1   : >> { %1905 = vmatprep.mubr.msk.bf16.mxu1 %vm1976_vm0, %v3191_v6 }
  0xb2   : >> { %1872 = vmatpush3.bf16.msra.mxu0 %v1631_v63  ;;  %v3257_v63 = vld [vmem:[#allocation90_spill] sm:$0xff] }
  0xb3   : >> { %1892 = vmatpush3.bf16.msra.mxu1 %v1644_v12  ;;  %1873 = vmatprep.subr.bf16.mxu0 %v3191_v6  ;;  %v1648_v18 = vcombine.low %v3257_v63, %v3256_v5  ;;  %v3259_v12 = vld [vmem:[#allocation76_spill] sm:$0xff]  ;;  %v3273_v5 = vld [vmem:[#allocation102_spill] sm:$0xff] }
  0xb4   : >> { %1893 = vmatprep.subr.bf16.mxu1 %v3191_v6  ;;  %v1636_v13 = vcombine.low %v3259_v12, %v3258_v11  ;;  %v3276_v12 = vld [vmem:[#allocation107_spill] sm:$0xff] }
  0xb6   : >> { %1874 = vmatpush3.bf16.msra.mxu0 %v1632_v22  ;;  %v3261_v22 = vld [vmem:[#allocation92_spill] sm:$0xff] }
  0xb7   : >> { %1894 = vmatpush3.bf16.msra.mxu1 %v1645_v2  ;;  %1875 = vmatprep.subr.bf16.mxu0 %v3191_v6  ;;  %v1649_v14 = vcombine.low %v3261_v22, %v3260_v21  ;;  %v3263_v2 = vld [vmem:[#allocation78_spill] sm:$0xff]  ;;  %v3278_v22 = vld [vmem:[#allocation109_spill] sm:$0xff] }
  0xb8   : >> { %1895 = vmatprep.subr.bf16.mxu1 %v3191_v6  ;;  %v1637_v4 = vcombine.low %v3263_v2, %v3262_v17  ;;  %v3280_v2 = vld [vmem:[#allocation111_spill] sm:$0xff] }
  0xba   : >> { %1876 = vmatpush3.bf16.msra.mxu0 %v1633_v23  ;;  %v3265_v23 = vld [vmem:[#allocation94_spill] sm:$0xff] }
  0xbb   : >> { %1896 = vmatpush3.bf16.msra.mxu1 %v1646_v1  ;;  %1877 = vmatprep.subr.bf16.mxu0 %v3191_v6  ;;  %v1650_v25 = vcombine.low %v3265_v23, %v3264_v15  ;;  %v3266_v1 = vld [vmem:[#allocation97_spill] sm:$0xff] }
  0xbc   : >> { %1897 = vmatprep.subr.bf16.mxu1 %v3191_v6  ;;  %v1653_v61 = vcombine.low %v3267_v10, %v3266_v1 }
  0xbe   : >> { %1878 = vmatpush3.bf16.msra.mxu0 %v1634_v8  ;;  %v3268_v8 = vld [vmem:[#allocation99_spill] sm:$0xff] }
  0xbf   : >> { %1898 = vmatpush3.bf16.msra.mxu1 %v1647_v47  ;;  %1879 = vmatprep.subr.bf16.mxu0 %v3191_v6  ;;  %v1654_v7 = vcombine.low %v3269_v0, %v3268_v8  ;;  %v3270_v47 = vld [vmem:[#allocation101_spill] sm:$0xff] }
  0xc0   : >> { %1899 = vmatprep.subr.bf16.mxu1 %v3191_v6  ;;  %v1655_v19 = vcombine.low %v3271_v9, %v3270_v47 }
  0xc2   : >> { %1880 = vmatpush3.bf16.msra.mxu0 %v1635_v3  ;;  %v3272_v3 = vld [vmem:[#allocation103_spill] sm:$0xff] }
  0xc3   : >> { %1900 = vmatpush3.bf16.msra.mxu1 %v1648_v18  ;;  %1881 = vmatprep.subr.bf16.mxu0 %v3191_v6  ;;  %v1656_v63 = vcombine.low %v3273_v5, %v3272_v3  ;;  %v3275_v18 = vld [vmem:[#allocation104_spill] sm:$0xff] }
  0xc4   : >> { %1901 = vmatprep.subr.bf16.mxu1 %v3191_v6 }
  0xc6   : >> { %1882 = vmatpush3.bf16.msra.mxu0 %v1636_v13  ;;  %v3277_v13 = vld [vmem:[#allocation106_spill] sm:$0xff] }
  0xc7   : >> { %1902 = vmatpush3.bf16.msra.mxu1 %v1649_v14  ;;  %1883 = vmatprep.subr.bf16.mxu0 %v3191_v6  ;;  %v1658_v21 = vcombine.low %v3277_v13, %v3276_v12  ;;  %v3279_v14 = vld [vmem:[#allocation108_spill] sm:$0xff] }
  0xc8   : >> { %1903 = vmatprep.subr.bf16.mxu1 %v3191_v6  ;;  %v1659_v17 = vcombine.low %v3279_v14, %v3278_v22 }
  0xca   : >> { %1884 = vmatpush3.bf16.msra.mxu0 %v1637_v4  ;;  %v3281_v4 = vld [vmem:[#allocation110_spill] sm:$0xff] }
  0xcb   : >> { %1904 = vmatpush3.bf16.msra.mxu1 %v1650_v25  ;;  %1909 = vmatprep.subr.bf16.mxu0 %v3191_v6  ;;  %v1660_v15 = vcombine.low %v3281_v4, %v3280_v2 }
  0xcd   : >> { %1886 = vmatmul.mubr.bf16.vlgmr.msra.gmra.mrb[12].mxu0 %v1955_v48 }
  0xce   : >> { %1906 = vmatmul.mubr.bf16.vlgmr.msra.gmra.mrb[12].mxu1 %v2848_v20  ;;  %1910 = vmatpush3.bf16.msra.mxu0 %v1653_v61  ;;  %v3274_v20 = vld [vmem:[#allocation105_spill] sm:$0xff] }
  0xcf   : >> { %1925 = vmatprep.mubr.msk.bf16.mxu0 %vm1976_vm0, %v3191_v6  ;;  %1911 = vmatprep.subr.bf16.mxu0 %v3191_v6  ;;  %v1657_v11 = vcombine.low %v3275_v18, %v3274_v20 }
  0xd2   : >> { %1912 = vmatpush3.bf16.msra.mxu0 %v1654_v7 }
  0xd3   : >> { %1913 = vmatprep.subr.bf16.mxu0 %v3191_v6 }
  0xd6   : >> { %1914 = vmatpush3.bf16.msra.mxu0 %v1655_v19 }
  0xd7   : >> { %1915 = vmatprep.subr.bf16.mxu0 %v3191_v6 }
  0xda   : >> { %1916 = vmatpush3.bf16.msra.mxu0 %v1656_v63 }
  0xdb   : >> { %1917 = vmatprep.subr.bf16.mxu0 %v3191_v6 }
  0xde   : >> { %1918 = vmatpush3.bf16.msra.mxu0 %v1657_v11 }
  0xdf   : >> { %1919 = vmatprep.subr.bf16.mxu0 %v3191_v6 }
  0xe2   : >> { %1920 = vmatpush3.bf16.msra.mxu0 %v1658_v21 }
  0xe3   : >> { %1921 = vmatprep.subr.bf16.mxu0 %v3191_v6 }
  0xe6   : >> { %1922 = vmatpush3.bf16.msra.mxu0 %v1659_v17 }
  0xe7   : >> { %1923 = vmatprep.subr.bf16.mxu0 %v3191_v6 }
  0xea   : >> { %1924 = vmatpush3.bf16.msra.mxu0 %v1660_v15 }
  0xed   : >> { %1926 = vmatmul.mubr.bf16.vlgmr.msra.gmra.mrb[16].mxu0 %v2851_v24 }
 0x140   : >> { %v488_v23 = vpop.f32.mrb[0].mxu0 }
 0x141   : >> { %v578_v25 = vpop.f32.mrb[0].mxu1  ;;  %v1767_v1 = vpop.f32.mrb[1].mxu0 }
 0x142   : >> { %v579_v48 = vadd.f32 %v578_v25, %v488_v23  ;;  %v1787_v10 = vpop.f32.mrb[1].mxu1  ;;  %v491_v61 = vpop.f32.mrb[2].mxu0 }
 0x143   : >> { %v581_v8 = vpop.f32.mrb[2].mxu1  ;;  %v1768_v7 = vpop.f32.mrb[3].mxu0 }
 0x144   : >> { %v582_v0 = vadd.f32 %v581_v8, %v491_v61  ;;  %v1788_v47 = vpop.f32.mrb[3].mxu1 }
 0x160   : >> { %v676_v9 = vpop.f32.mrb[4].mxu0 }
 0x161   : >> { %v779_v19 = vpop.f32.mrb[4].mxu1  ;;  %v683_v3 = vadd.f32 %v676_v9, %v579_v48  ;;  %v1807_v5 = vpop.f32.mrb[5].mxu0 }
 0x162   : >> { %v1827_v63 = vpop.f32.mrb[5].mxu1  ;;  %v679_v20 = vpop.f32.mrb[6].mxu0 }
 0x163   : >> { %v782_v6 = vpop.f32.mrb[6].mxu1  ;;  %v684_v18 = vadd.f32 %v679_v20, %v582_v0  ;;  %v786_v11 = vadd.f32 %v779_v19, %v683_v3  ;;  %v1808_v24 = vpop.f32.mrb[7].mxu0 }
 0x164   : >> { %v1828_v12 = vpop.f32.mrb[7].mxu1 }
 0x165   : >> { %v787_v13 = vadd.f32 %v782_v6, %v684_v18 }
 0x180   : >> { %v894_v21 = vpop.f32.mrb[8].mxu0 }
 0x181   : >> { %v993_v22 = vpop.f32.mrb[8].mxu1  ;;  %v901_v14 = vadd.f32 %v894_v21, %v786_v11  ;;  %v1847_v17 = vpop.f32.mrb[9].mxu0 }
 0x182   : >> { %v1867_v2 = vpop.f32.mrb[9].mxu1  ;;  %v897_v4 = vpop.f32.mrb[10].mxu0 }
 0x183   : >> { %v996_v15 = vpop.f32.mrb[10].mxu1  ;;  %v902_v23 = vadd.f32 %v897_v4, %v787_v13  ;;  %v1000_v25 = vadd.f32 %v993_v22, %v901_v14  ;;  %v1848_v48 = vpop.f32.mrb[11].mxu0  ;;  %v3282_v13 = vld [vmem:[#allocation2_spill] sm:$0xff] }
 0x184   : >> { %v1868_v1 = vpop.f32.mrb[11].mxu1  ;;  %v1335_v2 = vld [vmem:[%s1334_s7] sm:$0xff] }
 0x185   : >> { %v1001_v10 = vadd.f32 %v996_v15, %v902_v23 }
 0x1a0   : >> { %v1096_v61 = vpop.f32.mrb[12].mxu0 }
 0x1a1   : >> { %v1211_v8 = vpop.f32.mrb[12].mxu1  ;;  %v1103_v0 = vadd.f32 %v1096_v61, %v1000_v25  ;;  %v1887_v7 = vpop.f32.mrb[13].mxu0  ;;  %v1336_v25 = vld [vmem:[%s1334_s7 + $0x8] sm:$0xff] }
 0x1a2   : >> { %v1907_v47 = vpop.f32.mrb[13].mxu1  ;;  %v1099_v9 = vpop.f32.mrb[14].mxu0 }
 0x1a3   : >> { %v1214_v19 = vpop.f32.mrb[14].mxu1  ;;  %v1104_v3 = vadd.f32 %v1099_v9, %v1001_v10  ;;  %v1218_v5 = vadd.f32 %v1211_v8, %v1103_v0  ;;  %v1888_v63 = vpop.f32.mrb[15].mxu0 }
 0x1a4   : >> { %v1908_v20 = vpop.f32.mrb[15].mxu1 }
 0x1a5   : >> { %v1219_v6 = vadd.f32 %v1214_v19, %v1104_v3 }
 0x1c0   : >> { %v1310_v18 = vpop.f32.mrb[16].mxu0 }
 0x1c1   : >> { %v1317_v11 = vadd.f32 %v1310_v18, %v1218_v5  ;;  %v1927_v24 = vpop.f32.mrb[17].mxu0 }
 0x1c2   : >> { %v1313_v12 = vpop.f32.mrb[18].mxu0 }
 0x1c3   : >> { %v1325_v21 = vadd.f32 %v3282_v13, %v1317_v11  ;;  %v1318_v22 = vadd.f32 %v1313_v12, %v1219_v6  ;;  %v1928_v14 = vpop.f32.mrb[19].mxu0 }
 0x1c5   : >> { %vm1327_vm3 = vcmp.ge.f32.partialorder %v1325_v21, 0.0  ;;  %v1329_v17 = vmul.f32 0.01, %v1325_v21  ;;  %v1326_v4 = vadd.f32 %v3282_v13, %v1318_v22 }
 0x1c6   : > { %376 = sbr.rel (!%p374_p4) target bundleno = 75 (0x4b), region = 89 }
 0x1c7   : >> { %v1331_v15 = vsel %vm1327_vm3, %v1325_v21, %v1329_v17  ;;  %vm1328_vm5 = vcmp.ge.f32.partialorder %v1326_v4, 0.0  ;;  %v1330_v23 = vmul.f32 0.01, %v1326_v4 }
 0x1c8   : >> { %v1337_v48 = vadd.f32 %v1335_v2, %v1331_v15 }
 0x1c9   : >> { %v1332_v1 = vsel %vm1328_vm5, %v1326_v4, %v1330_v23 }
 0x1ca   : >> { %1341 = vst.msk [vmem:[%s1339_s8] sm:$0xff] %vm1340_vm4, %v1337_v48  ;;  %v1338_v10 = vadd.f32 %v1336_v25, %v1332_v1 }
 0x1cc   : >> { %1342 = vst.msk [vmem:[%s1339_s8 + $0x8] sm:$0xff] %vm1340_vm4, %v1338_v10 }
 0x1cd PF: > { %s14_s15 = sadd.s32 1, %s1969_s15  }
 0x1ce   : > { %p11_p5 = scmp.ge.s32.totalorder %s14_s15, 4  }
 0x1d0   :  { %13 = sbr.rel (!%p11_p5) target bundleno = 1 (0x1), region = 100 }

</bundles_post_ra>
